<compile_context>
chip_gen: v6e
topology: v6e:2x2x1
jax: 0.10.0
libtpu: 0.0.40
codegen_flags: <defaults>
</compile_context>

<pallas_src>
import jax
import jax.numpy as jnp
from jax.experimental import pallas as pl
from jax.experimental.pallas import tpu as pltpu

FEAT = 1024      # I3D feature dim consumed by the classifier heads
NUM_CLS = 25     # number of gesture classes
HEAD_N = 128     # lane-dense padded head width (4 heads * 25 = 100 -> 128)


# --------------------------------------------------------------------------
# Fused kernel: flattened weight-streaming encoders + block-structured heads
# --------------------------------------------------------------------------
def _trinet_fused_kernel(mod_ref, first_ref, last_ref,            # prefetch (SMEM)
                         x_ref, w_ref, b_ref, scale_ref, wh_ref, hb_ref,
                         o_ref,                                   # resident output
                         acc_ref):                                # scratch
    t = pl.program_id(0)

    # Bias-initialize the resident (B, 128) logit block exactly once.
    @pl.when(t == 0)
    def _():
        o_ref[...] = jnp.zeros_like(o_ref) + hb_ref[...]

    # First K tile of a modality: reset the feature accumulator.
    @pl.when(first_ref[t] == 1)
    def _():
        acc_ref[...] = jnp.zeros_like(acc_ref)

    # int8 weight -> bf16 dequant (per-column scale deferred to the
    # accumulator), MXU matmul with f32 accumulation.  Every grid step does
    # useful DMA + math (no dead steps).
    w_bf16 = w_ref[...].astype(jnp.float32).astype(jnp.bfloat16)
    acc_ref[...] += jnp.dot(x_ref[...], w_bf16,
                            preferred_element_type=jnp.float32)

    # Last K tile of a modality: apply dequant scale + encoder bias, then the
    # block-structured head while the features are still VMEM resident,
    # accumulating straight into the shared logit block.
    @pl.when(last_ref[t] == 1)
    def _():
        feat = (acc_ref[...] * scale_ref[...] + b_ref[...]).astype(jnp.bfloat16)
        o_ref[...] += jnp.dot(feat, wh_ref[...],
                              preferred_element_type=jnp.float32)


# --------------------------------------------------------------------------
# Parameter packing (done once; int8 weight storage + tile schedule)
# --------------------------------------------------------------------------
def pack_params(p, *, tk=2048):
    assert tk % 128 == 0
    enc_ws = [p["enc_rgb_w"], p["enc_of_w"], p["enc_depth_w"]]
    enc_bs = [p["enc_rgb_b"], p["enc_of_b"], p["enc_depth_b"]]

    w_chunks, w_q_list, scale_list = [], [], []
    ktiles, mod_ids, first, last = [], [], [], []
    for m, w in enumerate(enc_ws):
        f = w.shape[0]
        nkt = int(pl.cdiv(f, tk))
        assert nkt >= 1
        fpad = nkt * tk
        # Per-output-column symmetric int8 quantization with f32 scale.
        amax = jnp.max(jnp.abs(w), axis=0, keepdims=True)          # (1, 1024)
        scale = jnp.maximum(amax, 1e-8) / 127.0
        w_q = jnp.clip(jnp.round(w / scale), -127.0, 127.0).astype(jnp.int8)
        w_q_list.append(w_q)
        scale_list.append(scale)
        w_chunks.append(jnp.pad(w_q, ((0, fpad - f), (0, 0))))
        ktiles.append(nkt)
        for k in range(nkt):
            mod_ids.append(m)
            first.append(1 if k == 0 else 0)
            last.append(1 if k == nkt - 1 else 0)

    # Block-structured head weight (3, 1024, 128), bf16: cols 0-74 hold
    # cls_m{1,2,3} in their own modality block, cols 75-99 hold each
    # modality's slice of cls_mm, remaining 28 cols are zero padding (kept so
    # the output store stays lane-dense / unmasked — review item 8).
    wh = jnp.zeros((3, FEAT, HEAD_N), jnp.float32)
    wh = wh.at[0, :, 0 * NUM_CLS:1 * NUM_CLS].set(p["w1"])
    wh = wh.at[1, :, 1 * NUM_CLS:2 * NUM_CLS].set(p["w2"])
    wh = wh.at[2, :, 2 * NUM_CLS:3 * NUM_CLS].set(p["w3"])
    wh = wh.at[0, :, 3 * NUM_CLS:4 * NUM_CLS].set(p["wm1"])
    wh = wh.at[1, :, 3 * NUM_CLS:4 * NUM_CLS].set(p["wm2"])
    wh = wh.at[2, :, 3 * NUM_CLS:4 * NUM_CLS].set(p["wm3"])

    hb = jnp.zeros((1, HEAD_N), jnp.float32)
    hb = hb.at[:, 0 * NUM_CLS:1 * NUM_CLS].set(p["b1"])
    hb = hb.at[:, 1 * NUM_CLS:2 * NUM_CLS].set(p["b2"])
    hb = hb.at[:, 2 * NUM_CLS:3 * NUM_CLS].set(p["b3"])
    hb = hb.at[:, 3 * NUM_CLS:4 * NUM_CLS].set(p["bm"])

    return {
        "tk": tk,
        "ktiles_list": ktiles,                          # python ints (static)
        "total_tiles": len(mod_ids),                    # python int (static)
        "mod_ids": jnp.asarray(mod_ids, jnp.int32),     # scalar-prefetch
        "first_flags": jnp.asarray(first, jnp.int32),   # scalar-prefetch
        "last_flags": jnp.asarray(last, jnp.int32),     # scalar-prefetch
        "w_cat": jnp.concatenate(w_chunks, axis=0),     # (sum_k_pad, 1024) i8
        "b_stack": jnp.stack([b.reshape(1, FEAT) for b in enc_bs], 0),   # f32
        "scale_stack": jnp.stack(scale_list, 0),        # (3, 1, 1024) f32
        "wh_stack": wh.astype(jnp.bfloat16),            # (3, 1024, 128) bf16
        "head_bias": hb,                                # (1, 128) f32
        # kept only for the pure-JAX reference / verification:
        "w_q_list": w_q_list,
        "scale_list": scale_list,
    }


# --------------------------------------------------------------------------
# Full TriNet forward
# --------------------------------------------------------------------------
def trinet_forward(rgb, of, depth, packed):
    tk = packed["tk"]
    B = rgb.shape[0]

    # Flatten + bf16-cast + pad each modality's activations to a tile
    # multiple, concatenated along K in the same order as w_cat (tiny: ~48 KB).
    xs = []
    for x, nkt in zip((rgb, of, depth), packed["ktiles_list"]):
        xf = x.reshape(B, -1).astype(jnp.bfloat16)
        xs.append(jnp.pad(xf, ((0, 0), (0, nkt * tk - xf.shape[1]))))
    x_cat = jnp.concatenate(xs, axis=1)

    T = packed["total_tiles"]

    logits = pl.pallas_call(
        _trinet_fused_kernel,
        out_shape=jax.ShapeDtypeStruct((B, HEAD_N), jnp.float32),
        grid_spec=pltpu.PrefetchScalarGridSpec(
            num_scalar_prefetch=3,
            grid=(T,),
            in_specs=[
                # activations (B, tk) bf16 — tiny, one tile per grid step
                pl.BlockSpec((B, tk), lambda t, mod, fst, lst: (0, t)),
                # encoder weight (tk, 1024) int8 — the HBM-bound stream
                pl.BlockSpec((tk, FEAT), lambda t, mod, fst, lst: (t, 0)),
                # encoder bias, resident per modality
                pl.BlockSpec((None, 1, FEAT),
                             lambda t, mod, fst, lst: (mod[t], 0, 0)),
                # per-output-column dequant scale, resident per modality
                pl.BlockSpec((None, 1, FEAT),
                             lambda t, mod, fst, lst: (mod[t], 0, 0)),
                # block-structured head weight, resident per modality
                pl.BlockSpec((None, FEAT, HEAD_N),
                             lambda t, mod, fst, lst: (mod[t], 0, 0)),
                # packed bias of all four heads, fully resident
                pl.BlockSpec((1, HEAD_N), lambda t, mod, fst, lst: (0, 0)),
            ],
            # Single resident output block (constant index_map): one HBM
            # writeback at the end, no epilogue reduction kernel.
            out_specs=pl.BlockSpec((B, HEAD_N),
                                   lambda t, mod, fst, lst: (0, 0)),
            scratch_shapes=[pltpu.VMEM((B, FEAT), jnp.float32)],
        ),
        compiler_params=pltpu.CompilerParams(
            dimension_semantics=("arbitrary",),
            vmem_limit_bytes=16 * 1024 * 1024),
    )(packed["mod_ids"], packed["first_flags"], packed["last_flags"],
      x_cat, packed["w_cat"], packed["b_stack"], packed["scale_stack"],
      packed["wh_stack"], packed["head_bias"])

    out_m1 = logits[:, 0 * NUM_CLS:1 * NUM_CLS]
    out_m2 = logits[:, 1 * NUM_CLS:2 * NUM_CLS]
    out_m3 = logits[:, 2 * NUM_CLS:3 * NUM_CLS]
    out_mm = logits[:, 3 * NUM_CLS:4 * NUM_CLS]
    return out_m1, out_m2, out_m3, out_mm


# --------------------------------------------------------------------------
# Pure-JAX reference (same int8-dequant / bf16-MXU / f32-accumulate math)
# --------------------------------------------------------------------------
def trinet_reference(rgb, of, depth, p, packed):
    def enc_q(x, w_q, scale, b):
        w_bf = w_q.astype(jnp.float32).astype(jnp.bfloat16)
        acc = jnp.dot(x.astype(jnp.bfloat16), w_bf,
                      preferred_element_type=jnp.float32)
        return acc * scale + b

    def head(f, w, b):
        return jnp.dot(f.astype(jnp.bfloat16), w.astype(jnp.bfloat16),
                       preferred_element_type=jnp.float32) + b

    B = rgb.shape[0]
    f1 = enc_q(rgb.reshape(B, -1), packed["w_q_list"][0],
               packed["scale_list"][0], p["enc_rgb_b"])
    f2 = enc_q(of.reshape(B, -1), packed["w_q_list"][1],
               packed["scale_list"][1], p["enc_of_b"])
    f3 = enc_q(depth.reshape(B, -1), packed["w_q_list"][2],
               packed["scale_list"][2], p["enc_depth_b"])
    o1 = head(f1, p["w1"], p["b1"])
    o2 = head(f2, p["w2"], p["b2"])
    o3 = head(f3, p["w3"], p["b3"])
    fcat = jnp.concatenate([f1, f2, f3], axis=1)
    wmm = jnp.concatenate([p["wm1"], p["wm2"], p["wm3"]], axis=0)
    omm = head(fcat, wmm, p["bm"])
    return o1, o2, o3, omm


def init_params(key, f_rgb_in, f_of_in, f_depth_in):
    ks = jax.random.split(key, 16)

    def lin(kw, kb, fin, fout):
        scale = 1.0 / jnp.sqrt(jnp.float32(fin))
        w = jax.random.uniform(kw, (fin, fout), jnp.float32, -scale, scale)
        b = jax.random.uniform(kb, (1, fout), jnp.float32, -scale, scale)
        return w, b

    p = {}
    p["enc_rgb_w"], p["enc_rgb_b"] = lin(ks[0], ks[1], f_rgb_in, FEAT)
    p["enc_of_w"], p["enc_of_b"] = lin(ks[2], ks[3], f_of_in, FEAT)
    p["enc_depth_w"], p["enc_depth_b"] = lin(ks[4], ks[5], f_depth_in, FEAT)
    p["w1"], p["b1"] = lin(ks[6], ks[7], FEAT, NUM_CLS)
    p["w2"], p["b2"] = lin(ks[8], ks[9], FEAT, NUM_CLS)
    p["w3"], p["b3"] = lin(ks[10], ks[11], FEAT, NUM_CLS)
    # cls_mm: Linear(3 * 1024, 25) — split along the concat axis into 3 chunks
    scale = 1.0 / jnp.sqrt(jnp.float32(3 * FEAT))
    wmm = jax.random.uniform(ks[12], (3 * FEAT, NUM_CLS), jnp.float32,
                             -scale, scale)
    p["wm1"] = wmm[:FEAT]
    p["wm2"] = wmm[FEAT:2 * FEAT]
    p["wm3"] = wmm[2 * FEAT:]
    p["bm"] = jax.random.uniform(ks[13], (1, NUM_CLS), jnp.float32,
                                 -scale, scale)
    return p


if __name__ == "__main__":
    key = jax.random.PRNGKey(0)
    k_rgb, k_of, k_depth, k_param = jax.random.split(key, 4)

    B, T, H, W = 2, 8, 16, 16
    rgb = jax.random.normal(k_rgb, (B, 3, T, H, W), jnp.float32)      # NCDHW
    of = jax.random.normal(k_of, (B, 2, T, H, W), jnp.float32)        # NCDHW
    depth = jax.random.normal(k_depth, (B, 1, T, H, W), jnp.float32)  # NCDHW

    params = init_params(k_param,
                         f_rgb_in=3 * T * H * W,
                         f_of_in=2 * T * H * W,
                         f_depth_in=1 * T * H * W)
    packed = pack_params(params, tk=2048)

    fwd = jax.jit(lambda r, o, d: trinet_forward(r, o, d, packed))
    outs = fwd(rgb, of, depth)
    outs = jax.block_until_ready(outs)

    refs = trinet_reference(rgb, of, depth, params, packed)
    for o, r in zip(outs, refs):
        assert o.shape == (B, NUM_CLS)
        assert jnp.allclose(o, r, atol=5e-3, rtol=5e-3)

    print("KERNEL_OK")
</pallas_src>

<mosaic_0001>
module attributes {stable_mosaic.version = 11 : i64} {
  func.func @_trinet_fused_kernel(%arg0: i32, %arg1: memref<6xi32, #tpu.memory_space<smem>>, %arg2: memref<6xi32, #tpu.memory_space<smem>>, %arg3: memref<6xi32, #tpu.memory_space<smem>>, %arg4: memref<2x2048xbf16, #tpu.memory_space<vmem>>, %arg5: memref<2048x1024xi8, #tpu.memory_space<vmem>>, %arg6: memref<1x1x1024xf32, #tpu.memory_space<vmem>>, %arg7: memref<1x1x1024xf32, #tpu.memory_space<vmem>>, %arg8: memref<1x1024x128xbf16, #tpu.memory_space<vmem>>, %arg9: memref<1x128xf32, #tpu.memory_space<vmem>>, %arg10: memref<2x128xf32, #tpu.memory_space<vmem>>, %arg11: memref<2x1024xf32, #tpu.memory_space<vmem>>) attributes {dimension_semantics = [#tpu.dimension_semantics<arbitrary>], iteration_bounds = array<i64: 6>, scalar_prefetch = 3 : i64, scratch_operands = 1 : i64, tpu.core_type = #tpu.core_type<tc>, window_params = [{transform_indices = @transform_0, window_bounds = array<i64: 2, 2048>}, {transform_indices = @transform_1, window_bounds = array<i64: 2048, 1024>}, {transform_indices = @transform_2, window_bounds = array<i64: 1, 1, 1024>}, {transform_indices = @transform_3, window_bounds = array<i64: 1, 1, 1024>}, {transform_indices = @transform_4, window_bounds = array<i64: 1, 1024, 128>}, {pipeline_mode = #tpu.pipeline_mode<synchronous>, transform_indices = @transform_5, window_bounds = array<i64: 1, 128>}, {pipeline_mode = #tpu.pipeline_mode<synchronous>, transform_indices = @transform_6, window_bounds = array<i64: 2, 128>}]} {
    %c0_i32 = arith.constant 0 : i32
    %0 = arith.cmpi eq, %arg0, %c0_i32 : i32
    %1 = arith.extui %0 : i1 to i32
    %c0_i32_0 = arith.constant 0 : i32
    %2 = arith.cmpi ne, %1, %c0_i32_0 : i32
    scf.if %2 {
      %cst_11 = arith.constant 0.000000e+00 : f32
      %21 = vector.broadcast %cst_11 : f32 to vector<2x128xf32>
      %c0_12 = arith.constant 0 : index
      %c0_13 = arith.constant 0 : index
      %22 = vector.load %arg9[%c0_12, %c0_13] : memref<1x128xf32, #tpu.memory_space<vmem>>, vector<1x128xf32>
      %23 = vector.broadcast %22 : vector<1x128xf32> to vector<2x128xf32>
      %24 = arith.addf %21, %23 : vector<2x128xf32>
      %c0_14 = arith.constant 0 : index
      %c0_15 = arith.constant 0 : index
      %25 = vector.load %arg10[%c0_14, %c0_15] : memref<2x128xf32, #tpu.memory_space<vmem>>, vector<2x128xf32>
      tpu.vector_store %arg10[%c0_14, %c0_15], %24 {strides = array<i32>} : memref<2x128xf32, #tpu.memory_space<vmem>>, vector<2x128xf32>,
    } else {
    }
    %3 = arith.index_cast %arg0 : i32 to index
    %4 = memref.load %arg2[%3] : memref<6xi32, #tpu.memory_space<smem>>
    %c1_i32 = arith.constant 1 : i32
    %5 = arith.cmpi eq, %4, %c1_i32 : i32
    %6 = arith.extui %5 : i1 to i32
    %c0_i32_1 = arith.constant 0 : i32
    %7 = arith.cmpi ne, %6, %c0_i32_1 : i32
    scf.if %7 {
      %cst_11 = arith.constant 0.000000e+00 : f32
      %21 = vector.broadcast %cst_11 : f32 to vector<2x1024xf32>
      %c0_12 = arith.constant 0 : index
      %c0_13 = arith.constant 0 : index
      %22 = vector.load %arg11[%c0_12, %c0_13] : memref<2x1024xf32, #tpu.memory_space<vmem>>, vector<2x1024xf32>
      tpu.vector_store %arg11[%c0_12, %c0_13], %21 {strides = array<i32>} : memref<2x1024xf32, #tpu.memory_space<vmem>>, vector<2x1024xf32>,
    } else {
    }
    %c0 = arith.constant 0 : index
    %c0_2 = arith.constant 0 : index
    %8 = vector.load %arg5[%c0, %c0_2] : memref<2048x1024xi8, #tpu.memory_space<vmem>>, vector<2048x1024xi8>
    %9 = arith.sitofp %8 : vector<2048x1024xi8> to vector<2048x1024xf32>
    %10 = arith.truncf %9 : vector<2048x1024xf32> to vector<2048x1024xbf16>
    %c0_3 = arith.constant 0 : index
    %c0_4 = arith.constant 0 : index
    %11 = vector.load %arg11[%c0_3, %c0_4] : memref<2x1024xf32, #tpu.memory_space<vmem>>, vector<2x1024xf32>
    %c0_5 = arith.constant 0 : index
    %c0_6 = arith.constant 0 : index
    %12 = vector.load %arg4[%c0_5, %c0_6] : memref<2x2048xbf16, #tpu.memory_space<vmem>>, vector<2x2048xbf16>
    %cst = arith.constant dense<0.000000e+00> : vector<2x1024xf32>
    %13 = tpu.matmul %12, %10, %cst {dimension_numbers = #tpu.dot_dimension_numbers<[1], [0], [0], [1], [0, 0, 1, 1], [], []>} : vector<2x2048xbf16>, vector<2048x1024xbf16>, vector<2x1024xf32> -> vector<2x1024xf32>
    %14 = arith.addf %11, %13 : vector<2x1024xf32>
    %c0_7 = arith.constant 0 : index
    %c0_8 = arith.constant 0 : index
    %15 = vector.load %arg11[%c0_7, %c0_8] : memref<2x1024xf32, #tpu.memory_space<vmem>>, vector<2x1024xf32>
    tpu.vector_store %arg11[%c0_7, %c0_8], %14 {strides = array<i32>} : memref<2x1024xf32, #tpu.memory_space<vmem>>, vector<2x1024xf32>,
    %16 = arith.index_cast %arg0 : i32 to index
    %17 = memref.load %arg3[%16] : memref<6xi32, #tpu.memory_space<smem>>
    %c1_i32_9 = arith.constant 1 : i32
    %18 = arith.cmpi eq, %17, %c1_i32_9 : i32
    %19 = arith.extui %18 : i1 to i32
    %c0_i32_10 = arith.constant 0 : i32
    %20 = arith.cmpi ne, %19, %c0_i32_10 : i32
    scf.if %20 {
      %c0_11 = arith.constant 0 : index
      %c0_12 = arith.constant 0 : index
      %21 = vector.load %arg11[%c0_11, %c0_12] : memref<2x1024xf32, #tpu.memory_space<vmem>>, vector<2x1024xf32>
      %c0_13 = arith.constant 0 : index
      %c0_14 = arith.constant 0 : index
      %c0_15 = arith.constant 0 : index
      %22 = vector.load %arg7[%c0_13, %c0_14, %c0_15] : memref<1x1x1024xf32, #tpu.memory_space<vmem>>, vector<1x1x1024xf32>
      %23 = vector.shape_cast %22 : vector<1x1x1024xf32> to vector<1x1024xf32>
      %24 = vector.broadcast %23 : vector<1x1024xf32> to vector<2x1024xf32>
      %25 = arith.mulf %21, %24 : vector<2x1024xf32>
      %c0_16 = arith.constant 0 : index
      %c0_17 = arith.constant 0 : index
      %c0_18 = arith.constant 0 : index
      %26 = vector.load %arg6[%c0_16, %c0_17, %c0_18] : memref<1x1x1024xf32, #tpu.memory_space<vmem>>, vector<1x1x1024xf32>
      %27 = vector.shape_cast %26 : vector<1x1x1024xf32> to vector<1x1024xf32>
      %28 = vector.broadcast %27 : vector<1x1024xf32> to vector<2x1024xf32>
      %29 = arith.addf %25, %28 : vector<2x1024xf32>
      %30 = arith.truncf %29 : vector<2x1024xf32> to vector<2x1024xbf16>
      %c0_19 = arith.constant 0 : index
      %c0_20 = arith.constant 0 : index
      %31 = vector.load %arg10[%c0_19, %c0_20] : memref<2x128xf32, #tpu.memory_space<vmem>>, vector<2x128xf32>
      %c0_21 = arith.constant 0 : index
      %c0_22 = arith.constant 0 : index
      %c0_23 = arith.constant 0 : index
      %32 = vector.load %arg8[%c0_21, %c0_22, %c0_23] : memref<1x1024x128xbf16, #tpu.memory_space<vmem>>, vector<1x1024x128xbf16>
      %33 = vector.shape_cast %32 : vector<1x1024x128xbf16> to vector<1024x128xbf16>
      %cst_24 = arith.constant dense<0.000000e+00> : vector<2x128xf32>
      %34 = tpu.matmul %30, %33, %cst_24 {dimension_numbers = #tpu.dot_dimension_numbers<[1], [0], [0], [1], [0, 0, 1, 1], [], []>} : vector<2x1024xbf16>, vector<1024x128xbf16>, vector<2x128xf32> -> vector<2x128xf32>
      %35 = arith.addf %31, %34 : vector<2x128xf32>
      %c0_25 = arith.constant 0 : index
      %c0_26 = arith.constant 0 : index
      %36 = vector.load %arg10[%c0_25, %c0_26] : memref<2x128xf32, #tpu.memory_space<vmem>>, vector<2x128xf32>
      tpu.vector_store %arg10[%c0_25, %c0_26], %35 {strides = array<i32>} : memref<2x128xf32, #tpu.memory_space<vmem>>, vector<2x128xf32>,
    } else {
    }
    return
  }
  func.func @transform_0(%arg0: i32, %arg1: memref<6xi32, #tpu.memory_space<smem>>, %arg2: memref<6xi32, #tpu.memory_space<smem>>, %arg3: memref<6xi32, #tpu.memory_space<smem>>) -> (i32, i32) {
    %c0_i32 = arith.constant 0 : i32
    %c0_i32_0 = arith.constant 0 : i32
    return %c0_i32, %arg0 : i32, i32
  }
  func.func @transform_1(%arg0: i32, %arg1: memref<6xi32, #tpu.memory_space<smem>>, %arg2: memref<6xi32, #tpu.memory_space<smem>>, %arg3: memref<6xi32, #tpu.memory_space<smem>>) -> (i32, i32) {
    %c0_i32 = arith.constant 0 : i32
    %c0_i32_0 = arith.constant 0 : i32
    return %arg0, %c0_i32 : i32, i32
  }
  func.func @transform_2(%arg0: i32, %arg1: memref<6xi32, #tpu.memory_space<smem>>, %arg2: memref<6xi32, #tpu.memory_space<smem>>, %arg3: memref<6xi32, #tpu.memory_space<smem>>) -> (i32, i32, i32) {
    %0 = arith.index_cast %arg0 : i32 to index
    %1 = memref.load %arg1[%0] : memref<6xi32, #tpu.memory_space<smem>>
    %c0_i32 = arith.constant 0 : i32
    %c0_i32_0 = arith.constant 0 : i32
    %c0_i32_1 = arith.constant 0 : i32
    return %1, %c0_i32, %c0_i32_0 : i32, i32, i32
  }
  func.func @transform_3(%arg0: i32, %arg1: memref<6xi32, #tpu.memory_space<smem>>, %arg2: memref<6xi32, #tpu.memory_space<smem>>, %arg3: memref<6xi32, #tpu.memory_space<smem>>) -> (i32, i32, i32) {
    %0 = arith.index_cast %arg0 : i32 to index
    %1 = memref.load %arg1[%0] : memref<6xi32, #tpu.memory_space<smem>>
    %c0_i32 = arith.constant 0 : i32
    %c0_i32_0 = arith.constant 0 : i32
    %c0_i32_1 = arith.constant 0 : i32
    return %1, %c0_i32, %c0_i32_0 : i32, i32, i32
  }
  func.func @transform_4(%arg0: i32, %arg1: memref<6xi32, #tpu.memory_space<smem>>, %arg2: memref<6xi32, #tpu.memory_space<smem>>, %arg3: memref<6xi32, #tpu.memory_space<smem>>) -> (i32, i32, i32) {
    %0 = arith.index_cast %arg0 : i32 to index
    %1 = memref.load %arg1[%0] : memref<6xi32, #tpu.memory_space<smem>>
    %c0_i32 = arith.constant 0 : i32
    %c0_i32_0 = arith.constant 0 : i32
    %c0_i32_1 = arith.constant 0 : i32
    return %1, %c0_i32, %c0_i32_0 : i32, i32, i32
  }
  func.func @transform_5(%arg0: i32, %arg1: memref<6xi32, #tpu.memory_space<smem>>, %arg2: memref<6xi32, #tpu.memory_space<smem>>, %arg3: memref<6xi32, #tpu.memory_space<smem>>) -> (i32, i32) {
    %c0_i32 = arith.constant 0 : i32
    %c0_i32_0 = arith.constant 0 : i32
    %c0_i32_1 = arith.constant 0 : i32
    return %c0_i32, %c0_i32_0 : i32, i32
  }
  func.func @transform_6(%arg0: i32, %arg1: memref<6xi32, #tpu.memory_space<smem>>, %arg2: memref<6xi32, #tpu.memory_space<smem>>, %arg3: memref<6xi32, #tpu.memory_space<smem>>) -> (i32, i32) {
    %c0_i32 = arith.constant 0 : i32
    %c0_i32_0 = arith.constant 0 : i32
    %c0_i32_1 = arith.constant 0 : i32
    return %c0_i32, %c0_i32_0 : i32, i32
  }
}

</mosaic_0001>

<bundles_post_ra>
// kernel: _lambda_.1
= control target key start
LH: loop header
LB: loop body
LE: loop exit
PB: predicated region body
PF: predicated region fallthrough
CT: control target
= control target key end

     0   :  { %s5163_s30 = smov [#allocation4]   ;;  %s5164_s12 = smov [#allocation5]   ;;  %s6550_s0 = inlined_call_operand.hbm [shape: s32[6], index: 0, kind: input, shape index: {}]   ;;  %s6551_s3 = inlined_call_operand.vmem [shape: bf16[2,12288], index: 3, kind: input, shape index: {}]   ;;  %s6552_s4 = inlined_call_operand.hbm [shape: s8[12288,1024], index: 4, kind: input, shape index: {}]   ;;  %s6553_s5 = inlined_call_operand.hbm [shape: f32[3,1,1024], index: 5, kind: input, shape index: {}]   ;;  %s6554_s6 = inlined_call_operand.hbm [shape: f32[3,1,1024], index: 6, kind: input, shape index: {}]   ;;  %s6555_s7 = inlined_call_operand.hbm [shape: bf16[3,1024,128], index: 7, kind: input, shape index: {}]   ;;  %s6556_s8 = inlined_call_operand.hbm [shape: f32[1,128], index: 8, kind: input, shape index: {}]   ;;  %s6557_s9 = inlined_call_operand.vmem [shape: f32[2,128], index: 9, kind: output, shape index: {}]   ;;  %s6558_s1 = inlined_call_operand.hbm [shape: s32[6], index: 1, kind: input, shape index: {}]   ;;  %s6559_s2 = inlined_call_operand.hbm [shape: s32[6], index: 2, kind: input, shape index: {}]  }
   0x1   :  { %6577 = sst [smem:[#allocation32_spill]] %s6551_s3  ;;  %s5165_s15 = smov [#allocation6]  }
   0x2   :  { %6578 = sst [smem:[#allocation33_spill]] %s6552_s4 }
   0x3   :  { %6579 = sst [smem:[#allocation34_spill]] %s6553_s5 }
   0x4   :  { %6580 = sst [smem:[#allocation35_spill]] %s6554_s6 }
   0x5   :  { %6581 = sst [smem:[#allocation36_spill]] %s6555_s7 }
   0x6   :  { %6582 = sst [smem:[#allocation37_spill]] %s6556_s8 }
   0x7   :  { %6583 = sst [smem:[#allocation38_spill]] %s6557_s9 }
   0x8   :  { %15 = dma.hbm_to_smem %s6550_s0, 16, %s5163_s30, [#allocation3] }
   0x9   :  { %17 = dma.hbm_to_smem %s6558_s1, 16, %s5164_s12, [#allocation3] }
   0xa   :  { %19 = dma.hbm_to_smem %s6559_s2, 16, %s5165_s15, [#allocation3] }
   0xb   :  { %5089 = dma.done.wait [#allocation3], 48 }
   0xc   :  { %5090 = vsyncadd [#allocation3], 4294967248 }
   0xd   :  { %21 = sfence }
   0xe   :  { %22 = vsyncpa [#allocation8], 0 }
   0xf   :  { %24 = vsyncpa [#allocation8 + $0x1], 0 }
  0x10   :  { %25 = vsyncpa [#allocation10], 0 }
  0x11   :  { %27 = vsyncpa [#allocation10 + $0x1], 0 }
  0x12   :  { %28 = vsyncpa [#allocation13], 0 }
  0x13   :  { %30 = vsyncpa [#allocation13 + $0x1], 0  ;;  %s5236_s0 = smov 0   ;;  %s5238_s18 = smov 0  }
  0x14   :  { %s5240_s19 = smov 0   ;;  %s5242_s1 = smov 0  }
  0x15   :  { %s5244_s20 = smov 0   ;;  %s5246_s2 = smov 0  }
  0x16   :  { %s5248_s21 = smov 0   ;;  %s5250_s22 = smov 0  }
  0x17   :  { %s5252_s23 = smov 0   ;;  %s5254_s24 = smov 0  }
  0x18   :  { %s5256_s25 = smov 0   ;;  %s5258_s26 = smov 0  }
  0x19   :  { %s5260_s27 = smov 0  }
  0x1a LB: > { %6584 = sst [smem:[#allocation27_spill]] %s5141_s22  ;;  %s5302_s28 = sadd.s32 4294967295, %s5161_s27   ;;  %s5161_s27 = sphi %s5260_s27, %s6658_s27   ;;  %s5157_s26 = sphi %s5258_s26, %s6657_s26   ;;  %s5153_s25 = sphi %s5256_s25, %s6656_s25   ;;  %s5149_s24 = sphi %s5254_s24, %s6655_s24   ;;  %s5145_s23 = sphi %s5252_s23, %s6647_s23   ;;  %s5141_s22 = sphi %s5250_s22, %s6646_s22   ;;  %s5137_s21 = sphi %s5248_s21, %s6654_s21   ;;  %s5133_s2 = sphi %s5246_s2, %s6653_s2   ;;  %s5129_s20 = sphi %s5244_s20, %s6652_s20   ;;  %s5125_s1 = sphi %s5242_s1, %s6651_s1   ;;  %s5121_s19 = sphi %s5240_s19, %s6650_s19   ;;  %s5117_s18 = sphi %s5238_s18, %s6649_s18   ;;  %s5113_s0 = sphi %s5236_s0, %s6648_s0  }
  0x1b   : > { %6585 = sst [smem:[#allocation28_spill]] %s5145_s23  ;;  %p4465_p0 = scmp.ge.s32.totalorder %s5161_s27, 1 }
  0x1c   : > { %p219_p1 = scmp.lt.s32.totalorder %s5161_s27, 7  ;;  %s5166_s29 = smov [#allocation14]  }
  0x1d   : > { %s232_s30 = sshll.u32 %s5166_s29, 4  ;;  %p6568_p2 = scmp.eq.s32.totalorder %s5302_s28, 0  ;;  %s233_s30 = int_to_ptr.vmem [resolvable:$true] %s232_s30 }
  0x1e   : > { %p5308_p4 = pnand %p4465_p0, %p219_p1  ;;  %s5321_s12 = sadd.s32 1, %s5161_s27  }
  0x1f   : > { %s92_s13 = sld [smem:[#allocation4 + %s5161_s27]]  ;;  %s4910_s14 = scalar_lea.vmem %s233_s30, 16 }
  0x20   : > { %s6586_s10 = scalar_select %p5308_p4, 1, 0 }
  0x21   : > { %p4669_p5 = pneg %p5308_p4  ;;  %p4911_p8 = scmp.ne.s32.totalorder %s233_s30, %s4910_s14 }
  0x22   : > { %6587 = sst [smem:[#allocation29_spill]] %s6586_s10  ;;  %s4917_s15 = scalar_lea.vmem %s233_s30, 32 }
  0x23   : > { %p5316_p6 = pnand %p4669_p5, %p6568_p2  ;;  %p4918_p11 = scmp.lt.s32.totalorder %s233_s30, %s233_s30 }
  0x24   : > { %p4919_p12 = scmp.lt.s32.totalorder %s4917_s15, %s4910_s14 }
  0x25   : > { %p4901_p7 = pneg %p5316_p6 }
  0x26   : > { %p4920_p13 = por %p4919_p12, %p4918_p11 }
  0x27   : > { %p4913_p9 = pnand %p4911_p8, %p4901_p7 }
  0x29   : > { %p4914_p10 = pneg %p4913_p9 }
  0x2b   : > { %p4921_p0 = pnand %p4920_p13, %p4914_p10 }
  0x2d   : > { %4924 = shalt.err (!%p4921_p0)
}
  0x2e   : > { %s6589_s8 = sld [smem:[#allocation37_spill]]  ;;  %p6569_p1 = scmp.eq.s32.totalorder %s5161_s27, 0 }
  0x2f   : > { %s93_s29 = sld [smem:[#allocation4 + %s5321_s12]]  ;;  %p104_p5 = scmp.ne.s32.totalorder %s5145_s23, %s5141_s22 }
  0x30   : > { %p110_p7 = scmp.ne.s32.totalorder %s5141_s22, %s5137_s21  ;;  %s97_s11 = sadd.s32 1, %s5145_s23 }
  0x31   : > { %s5339_s14 = sld [smem:[#allocation4 + %s5321_s12]]  ;;  %p6567_p9 = scmp.lt.s32.totalorder %s5161_s27, 6 }
  0x32   : > { %p5343_p8 = por %p110_p7, %p6568_p2  ;;  %s275_s21 = sand.u32 1, %s5145_s23  }
  0x33   : > { %s4472_s17 = sshll.u32 %s275_s21, 3  ;;  %s6596_s5 = sld [smem:[#allocation34_spill]] }
  0x34   : > { %4672 = dma.hbm_to_vmem [thread:$0]  (!%p5316_p6), %s6589_s8, 16, %s233_s30, [#allocation13]  }
  0x35   : > { %s6590_s15 = scalar_select %p5343_p8, 1, 0 }
  0x36   : > { %p5350_p6 = por %p104_p5, %p6569_p1  ;;  %s94_s8 = ssub.s32 %s92_s13, %s93_s29 }
  0x37   : > { %6591 = sst [smem:[#allocation30_spill]] %s6590_s15  ;;  %p95_p10 = scmp.eq.s32.totalorder %s94_s8, 0 }
  0x38   : > { %s277_s9 = scalar_lea.vmem [#allocation9], %s4472_s17  ;;  %p5372_p11 = pnand %p6567_p9, %p5350_p6 }
  0x39   : > { %s286_s3 = sshll.u32 %s277_s9, 4  ;;  %s66_s9 = ssub.s32 %s5161_s27, %s5321_s12  ;;  %s5376_s3 = int_to_ptr.vmem [resolvable:$true] %s286_s3 }
  0x3a   : > { %s4654_s15 = scalar_select %p5350_p6, [#allocation4], [#allocation15] }
  0x3b   : > { %s5359_s22 = scalar_select %p95_p10, %s5145_s23, %s97_s11  }
  0x3c   : > { %s4655_s10 = scalar_select %p5350_p6, %s5161_s27, 0 }
  0x3d   : > { %6593 = sst [smem:[#allocation31_spill]] %s5359_s22  ;;  %s6660_s15 = smov (!%p6567_p9, %s4654_s15), [#allocation18] }
  0x3e   : > { %s6662_s10 = smov (!%p6567_p9, %s4655_s10), 0  ;;  %p5380_p12 = scmp.eq.s32.totalorder %s66_s9, 0 }
  0x3f   : > { %s278_s8 = sld [smem:[%s6660_s15 + %s6662_s10]]  ;;  %s6597_s22 = sand.u32 1, %s5161_s27  }
  0x40   : > { %s6595_s29 = scalar_select %p5380_p12, 1, 0 }
  0x41   : > { %s5394_s23 = scalar_lea.sflag [#allocation10], %s6597_s22  ;;  %p4927_p7 = pneg %p5372_p11 }
  0x42   : > { %s4930_s9 = scalar_lea.hbm %s6596_s5, 384 }
  0x45   : > { %s4560_s21 = sshll.u32 %s278_s8, 7 }
  0x46   : > { %s284_s30 = scalar_lea.hbm %s6596_s5, %s4560_s21 }
  0x47   : > { %s4925_s7 = scalar_lea.hbm %s284_s30, 128  ;;  %p4931_p3 = scmp.lt.s32.totalorder %s284_s30, %s6596_s5 }
  0x48   : > { %p4926_p5 = scmp.ne.s32.totalorder %s284_s30, %s4925_s7  ;;  %p4932_p9 = scmp.lt.s32.totalorder %s4930_s9, %s4925_s7 }
  0x4a   : > { %p4928_p6 = pnand %p4927_p7, %p4926_p5  ;;  %p4933_p2 = por %p4932_p9, %p4931_p3 }
  0x4c   : > { %p4929_p10 = pneg %p4928_p6 }
  0x4e   : > { %p4934_p0 = pnand %p4933_p2, %p4929_p10 }
  0x50   : > { %4937 = shalt.err (!%p4934_p0)
}
  0x51   : > { %s4938_s22 = scalar_lea.vmem %s5376_s3, 128  ;;  %s5167_s16 = smov [#allocation9]  }
  0x52   : > { %p4939_p1 = scmp.ne.s32.totalorder %s5376_s3, %s4938_s22  ;;  %s4943_s21 = sshll.u32 %s5167_s16, 4  ;;  %s4944_s21 = int_to_ptr.vmem [resolvable:$false] %s4943_s21 }
  0x53   : > { %s4945_s17 = scalar_lea.vmem %s4944_s21, 256  ;;  %p4946_p6 = scmp.lt.s32.totalorder %s5376_s3, %s4944_s21 }
  0x54   : > { %p4941_p13 = pnand %p4939_p1, %p4927_p7  ;;  %p4947_p8 = scmp.lt.s32.totalorder %s4945_s17, %s4938_s22 }
  0x56   : > { %p4942_p5 = pneg %p4941_p13  ;;  %p4948_p4 = por %p4947_p8, %p4946_p6 }
  0x58   : > { %p4949_p12 = pnand %p4948_p4, %p4942_p5 }
  0x5a   : > { %4952 = shalt.err (!%p4949_p12)
}
  0x5b   : > { %4681 = dma.hbm_to_vmem [thread:$0]  (!%p5372_p11), %s284_s30, 128, %s5376_s3, %s5394_s23  }
  0x5c   : > { %s6598_s7 = sadd.s32 1, %s5157_s26  ;;  %p6599_p2 = scmp.ne.s32.totalorder %s6595_s29, 0 }
  0x5d   : > { %p6600_p3 = scmp.ne.s32.totalorder %s5157_s26, %s5153_s25  ;;  %p6601_p4 = scmp.eq.s32.totalorder %s5161_s27, 0 }
  0x5e   : > { %s5416_s11 = scalar_select %p6599_p2, %s5157_s26, %s6598_s7  }
  0x5f   : > { %p78_p1 = por %p6601_p4, %p6600_p3  ;;  %p6602_p8 = scmp.ne.s32.totalorder %s5153_s25, %s5149_s24 }
  0x60   : > { %p6603_p9 = scmp.eq.s32.totalorder %s5302_s28, 0  ;;  %s251_s10 = sand.u32 1, %s5157_s26  }
  0x61   : > { %s4559_s15 = sshll.u32 %s5161_s27, 16  ;;  %s4468_s9 = sshll.u32 %s251_s10, 12 }
  0x62   : > { %p5428_p12 = por %p6603_p9, %p6602_p8  ;;  %s6605_s4 = sld [smem:[#allocation33_spill]] }
  0x63   : > { %s255_s29 = scalar_lea.vmem [#allocation7], %s4468_s9  ;;  %p6606_p11 = scmp.lt.s32.totalorder %s5161_s27, 6 }
  0x64   : > { %s6604_s13 = scalar_select %p5428_p12, 1, 0 }
  0x65   : > { %s263_s30 = sshll.u32 %s255_s29, 4  ;;  %p5441_p13 = pnand %p6606_p11, %p78_p1  ;;  %s5445_s30 = int_to_ptr.vmem [resolvable:$true] %s263_s30 }
  0x66   : > { %s5447_s16 = scalar_lea.sflag [#allocation8], %s251_s10 }
  0x67   : > { %p4955_p7 = pneg %p5441_p13 }
  0x68   : > { %s5437_s3 = scalar_lea.hbm %s6605_s4, %s4559_s15  ;;  %s4958_s15 = scalar_lea.hbm %s6605_s4, 393216 }
  0x69   : > { %s4953_s21 = scalar_lea.hbm %s5437_s3, 65536  ;;  %p4959_p6 = scmp.lt.s32.totalorder %s5437_s3, %s6605_s4 }
  0x6a   : > { %p4954_p0 = scmp.ne.s32.totalorder %s5437_s3, %s4953_s21  ;;  %p4960_p2 = scmp.lt.s32.totalorder %s4958_s15, %s4953_s21 }
  0x6c   : > { %p4956_p10 = pnand %p4955_p7, %p4954_p0  ;;  %p4961_p3 = por %p4960_p2, %p4959_p6 }
  0x6e   : > { %p4957_p5 = pneg %p4956_p10 }
  0x70   : > { %p4962_p4 = pnand %p4961_p3, %p4957_p5 }
  0x72   : > { %4965 = shalt.err (!%p4962_p4)
}
  0x73   : > { %s4966_s10 = scalar_lea.vmem %s5445_s30, 65536  ;;  %s5168_s22 = smov [#allocation7]  }
  0x74   : > { %p4967_p1 = scmp.ne.s32.totalorder %s5445_s30, %s4966_s10  ;;  %s4971_s29 = sshll.u32 %s5168_s22, 4  ;;  %s4972_s29 = int_to_ptr.vmem [resolvable:$false] %s4971_s29 }
  0x75   : > { %s4973_s17 = scalar_lea.vmem %s4972_s29, 131072  ;;  %p4974_p11 = scmp.lt.s32.totalorder %s5445_s30, %s4972_s29 }
  0x76   : > { %p4969_p8 = pnand %p4967_p1, %p4955_p7  ;;  %p4975_p0 = scmp.lt.s32.totalorder %s4973_s17, %s4966_s10 }
  0x78   : > { %p4970_p9 = pneg %p4969_p8  ;;  %p4976_p10 = por %p4975_p0, %p4974_p11 }
  0x7a   : > { %p4977_p12 = pnand %p4976_p10, %p4970_p9 }
  0x7c   : > { %4980 = shalt.err (!%p4977_p12)
}
  0x7d   : > { %s5169_s21 = smov 1024   ;;  %s6573_s7 = smov 64  }
  0x7e   : > { %4676 = dma.hbm_to_vmem [thread:$0]  (!%p5441_p13), %s5437_s3, 65536, %s5445_s30, %s5447_s16, %s5169_s21, %s5169_s21, %s6573_s7  }
  0x7f   : > { %s120_s15 = sld [smem:[#allocation4 + %s5161_s27]]  ;;  %p132_p12 = scmp.ne.s32.totalorder %s5133_s2, %s5129_s20 }
  0x80   : > { %s121_s9 = sld [smem:[#allocation4 + %s5321_s12]]  ;;  %p138_p7 = scmp.ne.s32.totalorder %s5129_s20, %s5125_s1 }
  0x81   : > { %s295_s8 = sand.u32 1, %s5133_s2   ;;  %p6608_p5 = scmp.eq.s32.totalorder %s5161_s27, 0 }
  0x82   : > { %s4475_s24 = sshll.u32 %s295_s8, 3  ;;  %p6610_p13 = scmp.eq.s32.totalorder %s5302_s28, 0 }
  0x83   : > { %p5478_p6 = por %p132_p12, %p6608_p5  ;;  %s125_s22 = sadd.s32 1, %s5133_s2 }
  0x84   : > { %p5484_p2 = por %p138_p7, %p6610_p13  ;;  %s297_s29 = scalar_lea.vmem [#allocation11], %s4475_s24 }
  0x85   : > { %s4657_s1 = scalar_select %p5478_p6, [#allocation4], [#allocation16] }
  0x86   : > { %s6611_s3 = scalar_select %p5484_p2, 1, 0 }
  0x87   : > { %s4658_s30 = scalar_select %p5478_p6, %s5161_s27, 0 }
  0x88   : > { %s122_s16 = ssub.s32 %s120_s15, %s121_s9  ;;  %s306_s17 = sshll.u32 %s297_s29, 4  ;;  %s5512_s17 = int_to_ptr.vmem [resolvable:$true] %s306_s17 }
  0x89   : > { %p123_p3 = scmp.eq.s32.totalorder %s122_s16, 0  ;;  %p6612_p4 = scmp.lt.s32.totalorder %s5161_s27, 6 }
  0x8a   : > { %s5510_s9 = sld [smem:[#allocation4 + %s5161_s27]]  ;;  %p160_p11 = scmp.ne.s32.totalorder %s5121_s19, %s5117_s18 }
  0x8b   : > { %s6664_s1 = smov (!%p6612_p4, %s4657_s1), [#allocation19]  ;;  %p6613_p1 = pmov %p6612_p4 }
  0x8c   : > { %s5497_s21 = scalar_select %p123_p3, %s5133_s2, %s125_s22  }
  0x8d   : > { %s6666_s30 = smov (!%p6613_p1, %s4658_s30), 0  ;;  %p6614_p8 = pmov %p6613_p1 }
  0x8e   : > { %s298_s15 = sld [smem:[%s6664_s1 + %s6666_s30]]  ;;  %p166_p0 = scmp.ne.s32.totalorder %s5117_s18, %s5113_s0 }
  0x8f   : > { %p5505_p9 = pnand %p6614_p8, %p5478_p6  ;;  %p6616_p10 = pmov %p6608_p5 }
  0x90   : > { %s6618_s6 = sld [smem:[#allocation35_spill]]  ;;  %p6619_p7 = pmov %p6610_p13 }
  0x91   : > { %p5521_p12 = por %p160_p11, %p6616_p10  ;;  %p4983_p13 = pneg %p5505_p9 }
  0x92   : > { %p5530_p5 = por %p166_p0, %p6619_p7 }
  0x93   : > { %s6617_s22 = scalar_select %p5521_p12, 1, 0 }
  0x94   : > { %s4561_s16 = sshll.u32 %s298_s15, 7 }
  0x95   : > { %s6620_s1 = scalar_select %p5530_p5, 1, 0 }
  0x96   : > { %s304_s7 = scalar_lea.hbm %s6618_s6, %s4561_s16  ;;  %s4986_s24 = scalar_lea.hbm %s6618_s6, 384 }
  0x97   : > { %s4981_s30 = scalar_lea.hbm %s304_s7, 128  ;;  %p4987_p1 = scmp.lt.s32.totalorder %s304_s7, %s6618_s6 }
  0x98   : > { %p4982_p6 = scmp.ne.s32.totalorder %s304_s7, %s4981_s30  ;;  %p4988_p8 = scmp.lt.s32.totalorder %s4986_s24, %s4981_s30 }
  0x9a   : > { %p4984_p3 = pnand %p4983_p13, %p4982_p6  ;;  %p4989_p11 = por %p4988_p8, %p4987_p1 }
  0x9c   : > { %p4985_p4 = pneg %p4984_p3 }
  0x9e   : > { %p4990_p0 = pnand %p4989_p11, %p4985_p4 }
  0xa0   : > { %4993 = shalt.err (!%p4990_p0)
}
  0xa1   : > { %s4994_s16 = scalar_lea.vmem %s5512_s17, 128  ;;  %s5171_s10 = smov [#allocation11]  }
  0xa2   : > { %p4995_p10 = scmp.ne.s32.totalorder %s5512_s17, %s4994_s16  ;;  %s4999_s29 = sshll.u32 %s5171_s10, 4  ;;  %s5000_s29 = int_to_ptr.vmem [resolvable:$false] %s4999_s29 }
  0xa3   : > { %s5001_s0 = scalar_lea.vmem %s5000_s29, 256  ;;  %p5002_p3 = scmp.lt.s32.totalorder %s5512_s17, %s5000_s29 }
  0xa4   : > { %p4997_p7 = pnand %p4995_p10, %p4983_p13  ;;  %p5003_p5 = scmp.lt.s32.totalorder %s5001_s0, %s4994_s16 }
  0xa6   : > { %p4998_p6 = pneg %p4997_p7  ;;  %p5004_p2 = por %p5003_p5, %p5002_p3 }
  0xa8   : > { %p5005_p12 = pnand %p5004_p2, %p4998_p6 }
  0xaa   : > { %5008 = shalt.err (!%p5005_p12)
}
  0xab   : > { %4686 = dma.hbm_to_vmem [thread:$0]  (!%p5505_p9), %s304_s7, 128, %s5512_s17, %s5394_s23  }
  0xac   : > { %s150_s4 = ssub.s32 %s5510_s9, %s5339_s14  ;;  %s153_s5 = sadd.s32 1, %s5121_s19 }
  0xad   : > { %p151_p2 = scmp.eq.s32.totalorder %s150_s4, 0  ;;  %s6621_s8 = sand.u32 1, %s5121_s19  }
  0xae   : > { %s4478_s24 = sshll.u32 %s6621_s8, 9  ;;  %p6622_p12 = scmp.ne.s32.totalorder %s6617_s22, 0 }
  0xaf   : > { %s5557_s15 = scalar_select %p151_p2, %s5121_s19, %s153_s5  }
  0xb0   : > { %s4660_s30 = scalar_select %p6622_p12, [#allocation4], [#allocation17] }
  0xb1   : > { %s4661_s16 = scalar_select %p6622_p12, %s5161_s27, 0 }
  0xb2   : > { %p6623_p5 = scmp.lt.s32.totalorder %s5161_s27, 6  ;;  %s317_s7 = scalar_lea.vmem [#allocation12], %s4478_s24 }
  0xb3   : > { %s325_s17 = sshll.u32 %s317_s7, 4  ;;  %s6627_s0 = sld [smem:[#allocation36_spill]]  ;;  %s5574_s17 = int_to_ptr.vmem [resolvable:$true] %s325_s17 }
  0xb4   : > { %s6668_s30 = smov (!%p6623_p5, %s4660_s30), [#allocation20]  ;;  %p6624_p13 = pmov %p6623_p5 }
  0xb5   : > { %p6625_p4 = pmov %p6623_p5  ;;  %s6629_s8 = sand.u32 1, %s5161_s27  }
  0xb6   : > { %s6670_s16 = smov (!%p6624_p13, %s4661_s16), 0  ;;  %s5583_s22 = scalar_lea.sflag [#allocation13], %s6629_s8 }
  0xb7   : > { %p5570_p1 = pnand %p6625_p4, %p6622_p12  ;;  %s318_s14 = sld [smem:[%s6668_s30 + %s6670_s16]] }
  0xb9   : > { %s6628_s4 = smov %s6627_s0  ;;  %p5011_p8 = pneg %p5570_p1 }
  0xba   : > { %s5014_s16 = scalar_lea.hbm %s6628_s4, 24576 }
  0xbd   : > { %s4562_s9 = sshll.u32 %s318_s14, 13 }
  0xbe   : > { %s5579_s5 = scalar_lea.hbm %s6627_s0, %s4562_s9 }
  0xbf   : > { %s5009_s6 = scalar_lea.hbm %s5579_s5, 8192  ;;  %p5015_p10 = scmp.lt.s32.totalorder %s5579_s5, %s6628_s4 }
  0xc0   : > { %p5010_p9 = scmp.ne.s32.totalorder %s5579_s5, %s5009_s6  ;;  %p5016_p7 = scmp.lt.s32.totalorder %s5014_s16, %s5009_s6 }
  0xc2   : > { %p5012_p11 = pnand %p5011_p8, %p5010_p9  ;;  %p5017_p6 = por %p5016_p7, %p5015_p10 }
  0xc4   : > { %p5013_p0 = pneg %p5012_p11 }
  0xc6   : > { %p5018_p3 = pnand %p5017_p6, %p5013_p0 }
  0xc8   : > { %5021 = shalt.err (!%p5018_p3)
}
  0xc9   : > { %s5022_s27 = scalar_lea.vmem %s5574_s17, 8192  ;;  %s5172_s9 = smov [#allocation12]  }
  0xca   : > { %p5023_p2 = scmp.ne.s32.totalorder %s5574_s17, %s5022_s27  ;;  %s5027_s10 = sshll.u32 %s5172_s9, 4  ;;  %s5028_s10 = int_to_ptr.vmem [resolvable:$false] %s5027_s10 }
  0xcb   : > { %s5029_s29 = scalar_lea.vmem %s5028_s10, 16384  ;;  %p5030_p13 = scmp.lt.s32.totalorder %s5574_s17, %s5028_s10 }
  0xcc   : > { %p5025_p12 = pnand %p5023_p2, %p5011_p8  ;;  %p5031_p4 = scmp.lt.s32.totalorder %s5029_s29, %s5022_s27 }
  0xce   : > { %p5026_p5 = pneg %p5025_p12  ;;  %p5032_p9 = por %p5031_p4, %p5030_p13 }
  0xd0   : > { %p5033_p11 = pnand %p5032_p9, %p5026_p5 }
  0xd2   : > { %5036 = shalt.err (!%p5033_p11)
}
  0xd3   : > { %s5173_s6 = smov 4   ;;  %s6630_s0 = smov 64  }
  0xd4   : > { %4691 = dma.hbm_to_vmem [thread:$0]  (!%p5570_p1), %s5579_s5, 8192, %s5574_s17, %s5583_s22, %s6630_s0, %s6630_s0, %s5173_s6  }
  0xd5   : > { %s6631_s8 = sld [smem:[#allocation29_spill]] }
  0xdb   : > { %p6632_p8 = scmp.ne.s32.totalorder %s6631_s8, 0 }
  0xdc   : > { %s339_s24 = sand.u32 (!%p6632_p8), 1, %s5153_s25   ;;  %p6633_p0 = scmp.ne.s32.totalorder (!%p6632_p8), %s6604_s13, 0 }
  0xdd   : > { %337 = sbr.rel (%p6632_p8) target bundleno = 1778 (0x6f2), region = 44  ;;  %s4482_s30 = sshll.u32 (!%p6632_p8), %s339_s24, 12 }
  0xde   : > { %s340_s16 = scalar_lea.sflag (!%p6632_p8), [#allocation8], %s339_s24  ;;  %s5609_s14 = scalar_lea.vmem (!%p6632_p8), [#allocation7], %s4482_s30 }
  0xe2   : > { %5092 = dma.done.wait (%p6633_p0), %s340_s16, 65536  }
  0xe3   : > { %5094 = vsyncadd (%p6633_p0), %s340_s16, 4294901760  ;;  %s6634_s23 = sld [smem:[#allocation27_spill]]  ;;  %s348_s27 = sand.u32 1, %s5302_s28  }
  0xe4   : > { %s6635_s7 = sld [smem:[#allocation30_spill]]  ;;  %s349_s22 = scalar_lea.sflag [#allocation10], %s348_s27 }
  0xe9   : > { %s350_s17 = sand.u32 1, %s6634_s23  }
  0xea   : > { %s5617_s5 = sshll.u32 %s350_s17, 3  ;;  %p6636_p1 = scmp.ne.s32.totalorder %s6635_s7, 0 }
  0xeb   : > { %s352_s9 = scalar_lea.vmem [#allocation9], %s5617_s5 }
  0xec   : > { %5096 = dma.done.wait (%p6636_p1), %s349_s22, 128  }
  0xed   : > { %5098 = vsyncadd (%p6636_p1), %s349_s22, 4294967168  ;;  %s359_s10 = sand.u32 1, %s5129_s20   ;;  %p6637_p10 = scmp.ne.s32.totalorder %s6611_s3, 0 }
  0xee   : > { %s5625_s13 = sshll.u32 %s359_s10, 3 }
  0xef   : > { %s361_s29 = scalar_lea.vmem [#allocation11], %s5625_s13 }
  0xf0   : > { %5100 = dma.done.wait (%p6637_p10), %s349_s22, 128  }
  0xf1   : > { %5102 = vsyncadd (%p6637_p10), %s349_s22, 4294967168  ;;  %s368_s6 = sand.u32 1, %s5117_s18   ;;  %s367_s8 = scalar_lea.sflag [#allocation13], %s348_s27 }
  0xf2   : > { %s4485_s0 = sshll.u32 %s368_s6, 9  ;;  %p6638_p7 = scmp.ne.s32.totalorder %s6620_s1, 0 }
  0xf3   : > { %s5633_s24 = scalar_lea.vmem [#allocation12], %s4485_s0 }
  0xf4   : > { %5104 = dma.done.wait (%p6638_p7), %s367_s8, 8192  }
  0xf5   : > { %5106 = vsyncadd (%p6638_p7), %s367_s8, 4294959104  ;;  %p6639_p6 = scmp.eq.s32.totalorder %s5302_s28, 0 }
  0xf7   : > { %5108 = dma.done.wait (%p6639_p6), [#allocation13], 16   ;;  %p6640_p3 = pmov %p6639_p6 }
  0xf8   : > { %s4487_s3 = sshll.u32 %s5302_s28, 4  ;;  %s6641_s23 = sld [smem:[#allocation32_spill]] }
  0xf9   : > { %5110 = vsyncadd (%p6640_p3), [#allocation13], 4294967280  ;;  %p418_p2 = scmp.lt.s32.totalorder %s4487_s3, 95  ;;  %p6642_p12 = scmp.ne.s32.totalorder %s5302_s28, 0 }
  0xfa   : > { %s6643_s17 = sld [smem:[#allocation38_spill]] (!%p6642_p12) }
  0xfb   : > { %s6672_s3 = smov (!%p418_p2, %s4487_s3), 95  ;;  %430 = sbr.rel (%p6642_p12) target bundleno = 258 (0x102), region = 68 }
  0xfe   : > { %s5647_s7 = scalar_lea.vmem %s6641_s23, %s6672_s3 }
 0x100   : > { %v4489_v0 = vld [vmem:[#allocation14] ss:$0 sm:$0xff] }
 0x101   : > { %439 = vst [vmem:[%s6643_s17] sm:$0x3] %v4489_v0 }
 0x102 PF: > { %s440_s22 = sld [smem:[#allocation5 + %s5302_s28]] }
 0x108   : > { %p4490_p5 = scmp.ne.s32.totalorder %s440_s22, 1 }
 0x10a   : > { %444 = sbr.rel (%p4490_p5) target bundleno = 273 (0x111), region = 72 }
 0x10f   : > { %v5174_v1 = vmov 0.0  }
 0x110   : > { %445 = vst [vmem:[#allocation2] sm:$0xff] %v5174_v1  ;;  %446 = vst [vmem:[#allocation2 + $0x8] sm:$0xff] %v5174_v1 }
 0x111 PF: > { %v472_v2 = vld [vmem:[%s5609_s14 + $0xc8] sm:$0xff]  ;;  %v471_v4 = vld [vmem:[%s5609_s14 + $0xc0] sm:$0xff]  ;;  %v1993_v32 = vlaneseq  ;;  %v5175_v37 = vmov 1966171168   ;;  %v5672_v45 = vld [vmem:[%s5647_s7] sm:$0xff] }
 0x112   : > { %v536_v3 = vld [vmem:[%s5609_s14 + $0x2c8] sm:$0xff]  ;;  %v1008_v5 = vunpack.c.l.s8.bf16 %v472_v2  ;;  %v1016_v6 = vunpack.c.h.s8.bf16 %v472_v2  ;;  %v535_v9 = vld [vmem:[%s5609_s14 + $0x2c0] sm:$0xff]  ;;  %v1015_v10 = vunpack.c.h.s8.bf16 %v471_v4  ;;  %v1007_v14 = vunpack.c.l.s8.bf16 %v471_v4 }
 0x113   : > { %v1136_v7 = vunpack.c.l.s8.bf16 %v536_v3  ;;  %v1144_v8 = vunpack.c.h.s8.bf16 %v536_v3  ;;  %v1143_v11 = vunpack.c.h.s8.bf16 %v535_v9  ;;  %v464_v12 = vld [vmem:[%s5609_s14 + $0x88] sm:$0xff]  ;;  %v1135_v15 = vunpack.c.l.s8.bf16 %v535_v9  ;;  %v463_v18 = vld [vmem:[%s5609_s14 + $0x80] sm:$0xff] }
 0x114   : > { %v528_v13 = vld [vmem:[%s5609_s14 + $0x288] sm:$0xff]  ;;  %2103 = vmatprep.subr.bf16.mxu0 %v1016_v6  ;;  %v1000_v16 = vunpack.c.h.s8.bf16 %v464_v12  ;;  %v527_v19 = vld [vmem:[%s5609_s14 + $0x280] sm:$0xff]  ;;  %v999_v20 = vunpack.c.h.s8.bf16 %v463_v18  ;;  %v992_v22 = vunpack.c.l.s8.bf16 %v464_v12  ;;  %v991_v26 = vunpack.c.l.s8.bf16 %v463_v18 }
 0x115   : > { %2144 = vmatprep.subr.bf16.mxu1 %v1144_v8  ;;  %2104 = vmatpush1.bf16.msra.mxu0 %v1015_v10  ;;  %v1128_v17 = vunpack.c.h.s8.bf16 %v528_v13  ;;  %v1127_v21 = vunpack.c.h.s8.bf16 %v527_v19  ;;  %v1120_v23 = vunpack.c.l.s8.bf16 %v528_v13  ;;  %v456_v24 = vld [vmem:[%s5609_s14 + $0x48] sm:$0xff]  ;;  %v1119_v27 = vunpack.c.l.s8.bf16 %v527_v19  ;;  %v455_v30 = vld [vmem:[%s5609_s14 + $0x40] sm:$0xff] }
 0x116   : > { %2145 = vmatpush1.bf16.msra.mxu1 %v1143_v11  ;;  %2105 = vmatprep.subr.bf16.mxu0 %v1008_v5  ;;  %v520_v25 = vld [vmem:[%s5609_s14 + $0x248] sm:$0xff]  ;;  %v984_v28 = vunpack.c.h.s8.bf16 %v456_v24  ;;  %v519_v31 = vld [vmem:[%s5609_s14 + $0x240] sm:$0xff]  ;;  %v983_v33 = vunpack.c.h.s8.bf16 %v455_v30  ;;  %v976_v35 = vunpack.c.l.s8.bf16 %v456_v24  ;;  %v1991_v38 = vunpack.c.l.s4 %v5175_v37 }
 0x117   : > { %2146 = vmatprep.subr.bf16.mxu1 %v1136_v7  ;;  %v1112_v29 = vunpack.c.h.s8.bf16 %v520_v25  ;;  %v1111_v34 = vunpack.c.h.s8.bf16 %v519_v31  ;;  %v1104_v36 = vunpack.c.l.s8.bf16 %v520_v25  ;;  %v5667_v39 = vshrl.u32 %v1993_v32, 7  ;;  %v448_v40 = vld [vmem:[%s5609_s14 + $0x8] sm:$0xff]  ;;  %v447_v48 = vld [vmem:[%s5609_s14] sm:$0xff] }
 0x118   : > { %v512_v41 = vld [vmem:[%s5609_s14 + $0x208] sm:$0xff]  ;;  %v1992_v42 = vunpack.c.0.s8 %v1991_v38  ;;  %v975_v43 = vunpack.c.l.s8.bf16 %v455_v30  ;;  %v1103_v44 = vunpack.c.l.s8.bf16 %v519_v31  ;;  %v968_v46 = vunpack.c.h.s8.bf16 %v448_v40  ;;  %v511_v49 = vld [vmem:[%s5609_s14 + $0x200] sm:$0xff] }
 0x119   : > { %2106 = vmatpush1.bf16.msra.mxu0 %v1007_v14  ;;  %v1096_v47 = vunpack.c.h.s8.bf16 %v512_v41  ;;  %v967_v52 = vunpack.c.h.s8.bf16 %v447_v48  ;;  %v1095_v53 = vunpack.c.h.s8.bf16 %v511_v49  ;;  %v960_v54 = vunpack.c.l.s8.bf16 %v448_v40  ;;  %v504_v57 = vld [vmem:[%s5609_s14 + $0x1c8] sm:$0xff]  ;;  %v503_v0 = vld [vmem:[%s5609_s14 + $0x1c0] sm:$0xff] }
 0x11a   : > { %2147 = vmatpush1.bf16.msra.mxu1 %v1135_v15  ;;  %2107 = vmatprep.subr.bf16.mxu0 %v1000_v16  ;;  %v5677_v50 = vsub.s32 %v1992_v42, %v5667_v39  ;;  %v1088_v55 = vunpack.c.l.s8.bf16 %v512_v41  ;;  %v568_v58 = vld [vmem:[%s5609_s14 + $0x3c8] sm:$0xff]  ;;  %v959_v60 = vunpack.c.l.s8.bf16 %v447_v48  ;;  %v1087_v61 = vunpack.c.l.s8.bf16 %v511_v49  ;;  %v567_v1 = vld [vmem:[%s5609_s14 + $0x3c0] sm:$0xff] }
 0x11b   : > { %2148 = vmatprep.subr.bf16.mxu1 %v1128_v17  ;;  %v1080_v62 = vunpack.c.h.s8.bf16 %v504_v57  ;;  %v1208_v63 = vunpack.c.h.s8.bf16 %v568_v58  ;;  %v1079_v3 = vunpack.c.h.s8.bf16 %v503_v0  ;;  %v1207_v4 = vunpack.c.h.s8.bf16 %v567_v1  ;;  %v496_v7 = vld [vmem:[%s5609_s14 + $0x188] sm:$0xff]  ;;  %v495_v13 = vld [vmem:[%s5609_s14 + $0x180] sm:$0xff] }
 0x11c   : > { %v5681_v51 = vrot.slane %v5672_v45, %v5677_v50  ;;  %v1072_v5 = vunpack.c.l.s8.bf16 %v504_v57  ;;  %v1200_v6 = vunpack.c.l.s8.bf16 %v568_v58  ;;  %v560_v8 = vld [vmem:[%s5609_s14 + $0x388] sm:$0xff]  ;;  %v1071_v9 = vunpack.c.l.s8.bf16 %v503_v0  ;;  %v559_v14 = vld [vmem:[%s5609_s14 + $0x380] sm:$0xff] }
 0x11d   : > { %2108 = vmatpush1.bf16.msra.mxu0 %v999_v20  ;;  %v1199_v10 = vunpack.c.l.s8.bf16 %v567_v1  ;;  %v1064_v11 = vunpack.c.h.s8.bf16 %v496_v7  ;;  %v1192_v12 = vunpack.c.h.s8.bf16 %v560_v8  ;;  %v1063_v15 = vunpack.c.h.s8.bf16 %v495_v13  ;;  %v488_v19 = vld [vmem:[%s5609_s14 + $0x148] sm:$0xff]  ;;  %v487_v25 = vld [vmem:[%s5609_s14 + $0x140] sm:$0xff] }
 0x11e   : > { %2149 = vmatpush1.bf16.msra.mxu1 %v1127_v21  ;;  %2109 = vmatprep.subr.bf16.mxu0 %v992_v22  ;;  %v2004_v56 = vcombine.high %v5681_v51, %v5681_v51  ;;  %v1191_v16 = vunpack.c.h.s8.bf16 %v559_v14  ;;  %v1056_v17 = vunpack.c.l.s8.bf16 %v496_v7  ;;  %v1184_v18 = vunpack.c.l.s8.bf16 %v560_v8  ;;  %v552_v20 = vld [vmem:[%s5609_s14 + $0x348] sm:$0xff]  ;;  %v479_v38 = vld [vmem:[%s5609_s14 + $0x100] sm:$0xff] }
 0x11f   : > { %2150 = vmatprep.subr.bf16.mxu1 %v1120_v23  ;;  %v1055_v21 = vunpack.c.l.s8.bf16 %v495_v13  ;;  %v1183_v22 = vunpack.c.l.s8.bf16 %v559_v14  ;;  %v1048_v23 = vunpack.c.h.s8.bf16 %v488_v19  ;;  %v1176_v24 = vunpack.c.h.s8.bf16 %v552_v20  ;;  %v480_v31 = vld [vmem:[%s5609_s14 + $0x108] sm:$0xff]  ;;  %v543_v40 = vld [vmem:[%s5609_s14 + $0x300] sm:$0xff] }
 0x120   : > { %v5688_v59 = vrot.slane %v2004_v56, %v5677_v50  ;;  %v1168_v30 = vunpack.c.l.s8.bf16 %v552_v20  ;;  %v544_v32 = vld [vmem:[%s5609_s14 + $0x308] sm:$0xff]  ;;  %v1031_v42 = vunpack.c.h.s8.bf16 %v479_v38  ;;  %v5721_v49 = vrot.slane %v5681_v51, %v5677_v50  ;;  %v599_v56 = vld [vmem:[%s5609_s14 + $0x4c0] sm:$0xff] }
 0x121   : > { %2110 = vmatpush1.bf16.msra.mxu0 %v991_v26  ;;  %v551_v26 = vld [vmem:[%s5609_s14 + $0x340] sm:$0xff]  ;;  %v1160_v37 = vunpack.c.h.s8.bf16 %v544_v32  ;;  %v1271_v51 = vunpack.c.h.s8.bf16 %v599_v56  ;;  %v592_v0 = vld [vmem:[%s5609_s14 + $0x488] sm:$0xff] }
 0x122   : > { %2151 = vmatpush1.bf16.msra.mxu1 %v1119_v27  ;;  %2111 = vmatprep.subr.bf16.mxu0 %v984_v28  ;;  %v5694_v2 = vcombine.high %v5688_v59, %v5688_v59  ;;  %v1047_v27 = vunpack.c.h.s8.bf16 %v487_v25  ;;  %v1175_v28 = vunpack.c.h.s8.bf16 %v551_v26  ;;  %v663_v57 = vld [vmem:[%s5609_s14 + $0x6c0] sm:$0xff]  ;;  %v656_v1 = vld [vmem:[%s5609_s14 + $0x688] sm:$0xff] }
 0x123   : > { %2152 = vmatprep.subr.bf16.mxu1 %v1112_v29  ;;  %2135 = vmatprep.mubr.bf16.mxu0 %v5688_v59  ;;  %v1040_v29 = vunpack.c.l.s8.bf16 %v488_v19  ;;  %v1384_v7 = vunpack.c.h.s8.bf16 %v656_v1  ;;  %v591_v8 = vld [vmem:[%s5609_s14 + $0x480] sm:$0xff]  ;;  %v1376_v13 = vunpack.c.l.s8.bf16 %v656_v1  ;;  %v584_v14 = vld [vmem:[%s5609_s14 + $0x448] sm:$0xff] }
 0x124   : > { %2176 = vmatprep.mubr.bf16.mxu1 %v5694_v2  ;;  %v583_v20 = vld [vmem:[%s5609_s14 + $0x440] sm:$0xff] }
 0x125   : > { %2112 = vmatpush1.bf16.msra.mxu0 %v983_v33  ;;  %v1989_v33 = vcombine.high %v5672_v45, %v5672_v45  ;;  %v1152_v45 = vunpack.c.l.s8.bf16 %v544_v32  ;;  %v575_v32 = vld [vmem:[%s5609_s14 + $0x400] sm:$0xff] }
 0x126   : > { %2153 = vmatpush1.bf16.msra.mxu1 %v1111_v34  ;;  %2113 = vmatprep.subr.bf16.mxu0 %v976_v35  ;;  %v1039_v34 = vunpack.c.l.s8.bf16 %v487_v25  ;;  %v1167_v35 = vunpack.c.l.s8.bf16 %v551_v26  ;;  %v576_v26 = vld [vmem:[%s5609_s14 + $0x408] sm:$0xff] }
 0x127   : > { %2154 = vmatprep.subr.bf16.mxu1 %v1104_v36  ;;  %v1032_v36 = vunpack.c.h.s8.bf16 %v480_v31  ;;  %v5713_v41 = vrot.slane %v1989_v33, %v5677_v50  ;;  %v639_v33 = vld [vmem:[%s5609_s14 + $0x600] sm:$0xff] }
 0x129   : > { %2114 = vmatpush1.bf16.msra.mxu0 %v975_v43  ;;  %v1159_v43 = vunpack.c.h.s8.bf16 %v543_v40  ;;  %v2005_v48 = vcombine.high %v5713_v41, %v5713_v41 }
 0x12a   : > { %2155 = vmatpush1.bf16.msra.mxu1 %v1103_v44  ;;  %2115 = vmatprep.subr.bf16.mxu0 %v968_v46  ;;  %v1024_v44 = vunpack.c.l.s8.bf16 %v480_v31  ;;  %v600_v46 = vld [vmem:[%s5609_s14 + $0x4c8] sm:$0xff] }
 0x12b   : > { %2156 = vmatprep.subr.bf16.mxu1 %v1096_v47  ;;  %v664_v47 = vld [vmem:[%s5609_s14 + $0x6c8] sm:$0xff]  ;;  %v5726_v58 = vrot.slane %v2005_v48, %v5677_v50 }
 0x12d   : > { %2116 = vmatpush1.bf16.msra.mxu0 %v967_v52  ;;  %v1023_v52 = vunpack.c.l.s8.bf16 %v479_v38  ;;  %v632_v38 = vld [vmem:[%s5609_s14 + $0x5c8] sm:$0xff] }
 0x12e   : > { %2157 = vmatpush1.bf16.msra.mxu1 %v1095_v53  ;;  %2117 = vmatprep.subr.bf16.mxu0 %v960_v54  ;;  %v1151_v53 = vunpack.c.l.s8.bf16 %v543_v40  ;;  %v1272_v54 = vunpack.c.h.s8.bf16 %v600_v46  ;;  %v696_v40 = vld [vmem:[%s5609_s14 + $0x7c8] sm:$0xff] }
 0x12f   : > { %2158 = vmatprep.subr.bf16.mxu1 %v1088_v55  ;;  %v1400_v55 = vunpack.c.h.s8.bf16 %v664_v47 }
 0x131   : > { %2118 = vmatpush1.bf16.msra.mxu0 %v959_v60  ;;  %v5730_v60 = vcombine.high %v5721_v49, %v5721_v49 }
 0x132   : > { %2159 = vmatpush1.bf16.msra.mxu1 %v1087_v61  ;;  %2119 = vmatprep.subr.bf16.mxu0 %v1080_v62  ;;  %v1399_v61 = vunpack.c.h.s8.bf16 %v663_v57  ;;  %v1264_v62 = vunpack.c.l.s8.bf16 %v600_v46  ;;  %v631_v46 = vld [vmem:[%s5609_s14 + $0x5c0] sm:$0xff] }
 0x133   : > { %2160 = vmatprep.subr.bf16.mxu1 %v1208_v63  ;;  %v1392_v63 = vunpack.c.l.s8.bf16 %v664_v47  ;;  %v695_v47 = vld [vmem:[%s5609_s14 + $0x7c0] sm:$0xff]  ;;  %v1335_v48 = vunpack.c.h.s8.bf16 %v631_v46 }
 0x135   : > { %2120 = vmatpush2.bf16.msra.mxu0 %v1079_v3  ;;  %v5736_v3 = vcombine.high %v5726_v58, %v5726_v58 }
 0x136   : > { %2161 = vmatpush2.bf16.msra.mxu1 %v1207_v4  ;;  %2121 = vmatprep.subr.bf16.mxu0 %v1072_v5  ;;  %v1263_v4 = vunpack.c.l.s8.bf16 %v599_v56  ;;  %v1391_v5 = vunpack.c.l.s8.bf16 %v663_v57  ;;  %v688_v56 = vld [vmem:[%s5609_s14 + $0x788] sm:$0xff]  ;;  %v1327_v57 = vunpack.c.l.s8.bf16 %v631_v46 }
 0x137   : > { %2162 = vmatprep.subr.bf16.mxu1 %v1200_v6  ;;  %v1256_v6 = vunpack.c.h.s8.bf16 %v592_v0 }
 0x139   : > { %2122 = vmatpush2.bf16.msra.mxu0 %v1071_v9  ;;  %v655_v9 = vld [vmem:[%s5609_s14 + $0x680] sm:$0xff] }
 0x13a   : > { %2163 = vmatpush2.bf16.msra.mxu1 %v1199_v10  ;;  %2123 = vmatprep.subr.bf16.mxu0 %v1064_v11  ;;  %v1255_v10 = vunpack.c.h.s8.bf16 %v591_v8  ;;  %v1383_v11 = vunpack.c.h.s8.bf16 %v655_v9 }
 0x13b   : > { %2164 = vmatprep.subr.bf16.mxu1 %v1192_v12  ;;  %v1248_v12 = vunpack.c.l.s8.bf16 %v592_v0  ;;  %v687_v0 = vld [vmem:[%s5609_s14 + $0x780] sm:$0xff] }
 0x13d   : > { %2124 = vmatpush2.bf16.msra.mxu0 %v1063_v15  ;;  %v648_v15 = vld [vmem:[%s5609_s14 + $0x648] sm:$0xff] }
 0x13e   : > { %2165 = vmatpush2.bf16.msra.mxu1 %v1191_v16  ;;  %2125 = vmatprep.subr.bf16.mxu0 %v1056_v17  ;;  %v1247_v16 = vunpack.c.l.s8.bf16 %v591_v8  ;;  %v1375_v17 = vunpack.c.l.s8.bf16 %v655_v9  ;;  %v1368_v19 = vunpack.c.h.s8.bf16 %v648_v15  ;;  %v1360_v25 = vunpack.c.l.s8.bf16 %v648_v15  ;;  %v680_v8 = vld [vmem:[%s5609_s14 + $0x748] sm:$0xff] }
 0x13f   : > { %2166 = vmatprep.subr.bf16.mxu1 %v1184_v18  ;;  %v1240_v18 = vunpack.c.h.s8.bf16 %v584_v14 }
 0x141   : > { %2126 = vmatpush2.bf16.msra.mxu0 %v1055_v21  ;;  %v647_v21 = vld [vmem:[%s5609_s14 + $0x640] sm:$0xff] }
 0x142   : > { %2167 = vmatpush2.bf16.msra.mxu1 %v1183_v22  ;;  %2127 = vmatprep.subr.bf16.mxu0 %v1048_v23  ;;  %v1239_v22 = vunpack.c.h.s8.bf16 %v583_v20  ;;  %v1367_v23 = vunpack.c.h.s8.bf16 %v647_v21 }
 0x143   : > { %2168 = vmatprep.subr.bf16.mxu1 %v1176_v24  ;;  %v1232_v24 = vunpack.c.l.s8.bf16 %v584_v14  ;;  %v679_v14 = vld [vmem:[%s5609_s14 + $0x740] sm:$0xff] }
 0x145   : > { %2128 = vmatpush2.bf16.msra.mxu0 %v1047_v27  ;;  %v640_v27 = vld [vmem:[%s5609_s14 + $0x608] sm:$0xff] }
 0x146   : > { %2169 = vmatpush2.bf16.msra.mxu1 %v1175_v28  ;;  %2129 = vmatprep.subr.bf16.mxu0 %v1040_v29  ;;  %v1231_v28 = vunpack.c.l.s8.bf16 %v583_v20  ;;  %v1359_v29 = vunpack.c.l.s8.bf16 %v647_v21  ;;  %v1352_v31 = vunpack.c.h.s8.bf16 %v640_v27  ;;  %v672_v20 = vld [vmem:[%s5609_s14 + $0x708] sm:$0xff]  ;;  %v5767_v21 = vld [vmem:[%s5647_s7 + $0x8] sm:$0xff] }
 0x147   : > { %2170 = vmatprep.subr.bf16.mxu1 %v1168_v30  ;;  %v1224_v30 = vunpack.c.h.s8.bf16 %v576_v26 }
 0x149   : > { %2130 = vmatpush2.bf16.msra.mxu0 %v1039_v34  ;;  %v1223_v34 = vunpack.c.h.s8.bf16 %v575_v32 }
 0x14a   : > { %2171 = vmatpush2.bf16.msra.mxu1 %v1167_v35  ;;  %2131 = vmatprep.subr.bf16.mxu0 %v1032_v36  ;;  %v1351_v35 = vunpack.c.h.s8.bf16 %v639_v33  ;;  %v1216_v36 = vunpack.c.l.s8.bf16 %v576_v26  ;;  %v607_v26 = vld [vmem:[%s5609_s14 + $0x500] sm:$0xff] }
 0x14b   : > { %2172 = vmatprep.subr.bf16.mxu1 %v1160_v37  ;;  %v1344_v37 = vunpack.c.l.s8.bf16 %v640_v27  ;;  %v671_v27 = vld [vmem:[%s5609_s14 + $0x700] sm:$0xff] }
 0x14d   : > { %2132 = vmatpush2.bf16.msra.mxu0 %v1031_v42  ;;  %v1215_v42 = vunpack.c.l.s8.bf16 %v575_v32  ;;  %v1408_v32 = vunpack.c.l.s8.bf16 %v672_v20 }
 0x14e   : > { %2173 = vmatpush2.bf16.msra.mxu1 %v1159_v43  ;;  %2133 = vmatprep.subr.bf16.mxu0 %v1024_v44  ;;  %v1343_v43 = vunpack.c.l.s8.bf16 %v639_v33  ;;  %v1336_v44 = vunpack.c.h.s8.bf16 %v632_v38  ;;  %v728_v33 = vld [vmem:[%s5609_s14 + $0x8c8] sm:$0xff] }
 0x14f   : > { %2174 = vmatprep.subr.bf16.mxu1 %v1152_v45  ;;  %v1464_v45 = vunpack.c.h.s8.bf16 %v696_v40 }
 0x151   : > { %2134 = vmatpush2.bf16.msra.mxu0 %v1023_v52  ;;  %v1463_v52 = vunpack.c.h.s8.bf16 %v695_v47 }
 0x152   : > { %2175 = vmatpush2.bf16.msra.mxu1 %v1151_v53  ;;  %2185 = vmatprep.subr.bf16.mxu0 %v1272_v54  ;;  %v1328_v53 = vunpack.c.l.s8.bf16 %v632_v38  ;;  %v1456_v54 = vunpack.c.l.s8.bf16 %v696_v40  ;;  %v1407_v38 = vunpack.c.l.s8.bf16 %v671_v27  ;;  %v1528_v40 = vunpack.c.h.s8.bf16 %v728_v33 }
 0x153   : > { %2226 = vmatprep.subr.bf16.mxu1 %v1400_v55  ;;  %v624_v55 = vld [vmem:[%s5609_s14 + $0x588] sm:$0xff] }
 0x154   : > { %2136 = vmatmul.mubr.bf16.vlgmr.msra.gmra.mxu0 %v5721_v49 }
 0x155   : > { %2177 = vmatmul.mubr.bf16.vlgmr.msra.gmra.mxu1 %v5730_v60  ;;  %2186 = vmatpush1.bf16.msra.mxu0 %v1271_v51  ;;  %v1455_v51 = vunpack.c.l.s8.bf16 %v695_v47 }
 0x156   : > { %2227 = vmatpush1.bf16.msra.mxu1 %v1399_v61  ;;  %2187 = vmatprep.subr.bf16.mxu0 %v1264_v62  ;;  %v1320_v61 = vunpack.c.h.s8.bf16 %v624_v55  ;;  %v1448_v62 = vunpack.c.h.s8.bf16 %v688_v56 }
 0x157   : > { %2228 = vmatprep.subr.bf16.mxu1 %v1392_v63  ;;  %2217 = vmatprep.mubr.bf16.mxu0 %v5726_v58  ;;  %v623_v63 = vld [vmem:[%s5609_s14 + $0x580] sm:$0xff] }
 0x158   : > { %2258 = vmatprep.mubr.bf16.mxu1 %v5736_v3  ;;  %v1319_v1 = vunpack.c.h.s8.bf16 %v623_v63  ;;  %v1311_v9 = vunpack.c.l.s8.bf16 %v623_v63  ;;  %v783_v63 = vld [vmem:[%s5609_s14 + $0xa80] sm:$0xff] }
 0x159   : > { %2188 = vmatpush1.bf16.msra.mxu0 %v1263_v4  ;;  %v1447_v4 = vunpack.c.h.s8.bf16 %v687_v0 }
 0x15a   : > { %2229 = vmatpush1.bf16.msra.mxu1 %v1391_v5  ;;  %2189 = vmatprep.subr.bf16.mxu0 %v1256_v6  ;;  %v1312_v5 = vunpack.c.l.s8.bf16 %v624_v55  ;;  %v1440_v6 = vunpack.c.l.s8.bf16 %v688_v56 }
 0x15b   : > { %2230 = vmatprep.subr.bf16.mxu1 %v1384_v7  ;;  %v616_v7 = vld [vmem:[%s5609_s14 + $0x548] sm:$0xff] }
 0x15d   : > { %2190 = vmatpush1.bf16.msra.mxu0 %v1255_v10  ;;  %v1439_v10 = vunpack.c.l.s8.bf16 %v687_v0 }
 0x15e   : > { %2231 = vmatpush1.bf16.msra.mxu1 %v1383_v11  ;;  %2191 = vmatprep.subr.bf16.mxu0 %v1248_v12  ;;  %v1304_v11 = vunpack.c.h.s8.bf16 %v616_v7  ;;  %v1432_v12 = vunpack.c.h.s8.bf16 %v680_v8 }
 0x15f   : > { %2232 = vmatprep.subr.bf16.mxu1 %v1376_v13  ;;  %v615_v13 = vld [vmem:[%s5609_s14 + $0x540] sm:$0xff] }
 0x160   : > { %v1303_v15 = vunpack.c.h.s8.bf16 %v615_v13 }
 0x161   : > { %2192 = vmatpush1.bf16.msra.mxu0 %v1247_v16  ;;  %v1431_v16 = vunpack.c.h.s8.bf16 %v679_v14 }
 0x162   : > { %2233 = vmatpush1.bf16.msra.mxu1 %v1375_v17  ;;  %2193 = vmatprep.subr.bf16.mxu0 %v1240_v18  ;;  %v1296_v17 = vunpack.c.l.s8.bf16 %v616_v7  ;;  %v1424_v18 = vunpack.c.l.s8.bf16 %v680_v8  ;;  %v776_v7 = vld [vmem:[%s5609_s14 + $0xa48] sm:$0xff] }
 0x163   : > { %2234 = vmatprep.subr.bf16.mxu1 %v1368_v19  ;;  %v608_v19 = vld [vmem:[%s5609_s14 + $0x508] sm:$0xff] }
 0x165   : > { %2194 = vmatpush1.bf16.msra.mxu0 %v1239_v22  ;;  %v1295_v22 = vunpack.c.l.s8.bf16 %v615_v13  ;;  %v775_v13 = vld [vmem:[%s5609_s14 + $0xa40] sm:$0xff] }
 0x166   : > { %2235 = vmatpush1.bf16.msra.mxu1 %v1367_v23  ;;  %2195 = vmatprep.subr.bf16.mxu0 %v1232_v24  ;;  %v1423_v23 = vunpack.c.l.s8.bf16 %v679_v14  ;;  %v1288_v24 = vunpack.c.h.s8.bf16 %v608_v19 }
 0x167   : > { %2236 = vmatprep.subr.bf16.mxu1 %v1360_v25  ;;  %v1416_v25 = vunpack.c.h.s8.bf16 %v672_v20 }
 0x169   : > { %2196 = vmatpush1.bf16.msra.mxu0 %v1231_v28  ;;  %v5773_v28 = vrot.slane %v5767_v21, %v5677_v50 }
 0x16a   : > { %2237 = vmatpush1.bf16.msra.mxu1 %v1359_v29  ;;  %2197 = vmatprep.subr.bf16.mxu0 %v1224_v30  ;;  %v1287_v29 = vunpack.c.h.s8.bf16 %v607_v26  ;;  %v1415_v30 = vunpack.c.h.s8.bf16 %v671_v27 }
 0x16b   : > { %2238 = vmatprep.subr.bf16.mxu1 %v1352_v31  ;;  %v1280_v31 = vunpack.c.l.s8.bf16 %v608_v19  ;;  %v768_v19 = vld [vmem:[%s5609_s14 + $0xa08] sm:$0xff] }
 0x16d   : > { %2198 = vmatpush1.bf16.msra.mxu0 %v1223_v34  ;;  %v792_v34 = vld [vmem:[%s5609_s14 + $0xac8] sm:$0xff] }
 0x16e   : > { %2239 = vmatpush1.bf16.msra.mxu1 %v1351_v35  ;;  %2199 = vmatprep.subr.bf16.mxu0 %v1216_v36  ;;  %v2053_v35 = vcombine.high %v5773_v28, %v5773_v28  ;;  %v5781_v36 = vrot.slane %v5713_v41, %v5677_v50 }
 0x16f   : > { %2240 = vmatprep.subr.bf16.mxu1 %v1344_v37  ;;  %v1279_v37 = vunpack.c.l.s8.bf16 %v607_v26  ;;  %v767_v26 = vld [vmem:[%s5609_s14 + $0xa00] sm:$0xff] }
 0x170   : > { %v5790_v46 = vcombine.high %v5781_v36, %v5781_v36 }
 0x171   : > { %2200 = vmatpush1.bf16.msra.mxu0 %v1215_v42  ;;  %v1656_v42 = vunpack.c.h.s8.bf16 %v792_v34 }
 0x172   : > { %2241 = vmatpush1.bf16.msra.mxu1 %v1343_v43  ;;  %2201 = vmatprep.subr.bf16.mxu0 %v1336_v44  ;;  %v727_v43 = vld [vmem:[%s5609_s14 + $0x8c0] sm:$0xff] }
 0x173   : > { %2242 = vmatprep.subr.bf16.mxu1 %v1464_v45  ;;  %v791_v44 = vld [vmem:[%s5609_s14 + $0xac0] sm:$0xff]  ;;  %v5786_v45 = vrot.slane %v2053_v35, %v5677_v50  ;;  %v1527_v41 = vunpack.c.h.s8.bf16 %v727_v43  ;;  %v1519_v56 = vunpack.c.l.s8.bf16 %v727_v43  ;;  %v1599_v35 = vunpack.c.l.s8.bf16 %v767_v26 }
 0x174   : > { %v1655_v47 = vunpack.c.h.s8.bf16 %v791_v44 }
 0x175   : > { %2202 = vmatpush2.bf16.msra.mxu0 %v1335_v48  ;;  %v1520_v48 = vunpack.c.l.s8.bf16 %v728_v33  ;;  %v5796_v55 = vcombine.high %v5786_v45, %v5786_v45  ;;  %v824_v33 = vld [vmem:[%s5609_s14 + $0xbc8] sm:$0xff] }
 0x176   : > { %2243 = vmatpush2.bf16.msra.mxu1 %v1463_v52  ;;  %2203 = vmatprep.subr.bf16.mxu0 %v1328_v53  ;;  %v1648_v52 = vunpack.c.l.s8.bf16 %v792_v34  ;;  %v720_v53 = vld [vmem:[%s5609_s14 + $0x888] sm:$0xff] }
 0x177   : > { %2244 = vmatprep.subr.bf16.mxu1 %v1456_v54  ;;  %v784_v54 = vld [vmem:[%s5609_s14 + $0xa88] sm:$0xff] }
 0x179   : > { %2204 = vmatpush2.bf16.msra.mxu0 %v1327_v57  ;;  %v1647_v57 = vunpack.c.l.s8.bf16 %v791_v44 }
 0x17a   : > { %2245 = vmatpush2.bf16.msra.mxu1 %v1455_v51  ;;  %2205 = vmatprep.subr.bf16.mxu0 %v1320_v61  ;;  %v1512_v51 = vunpack.c.h.s8.bf16 %v720_v53  ;;  %v1640_v61 = vunpack.c.h.s8.bf16 %v784_v54 }
 0x17b   : > { %2246 = vmatprep.subr.bf16.mxu1 %v1448_v62  ;;  %v719_v62 = vld [vmem:[%s5609_s14 + $0x880] sm:$0xff] }
 0x17c   : > { %v1511_v0 = vunpack.c.h.s8.bf16 %v719_v62  ;;  %v1503_v8 = vunpack.c.l.s8.bf16 %v719_v62 }
 0x17d   : > { %2206 = vmatpush2.bf16.msra.mxu0 %v1319_v1  ;;  %v1639_v1 = vunpack.c.h.s8.bf16 %v783_v63 }
 0x17e   : > { %2247 = vmatpush2.bf16.msra.mxu1 %v1447_v4  ;;  %2207 = vmatprep.subr.bf16.mxu0 %v1312_v5  ;;  %v1504_v4 = vunpack.c.l.s8.bf16 %v720_v53  ;;  %v1632_v5 = vunpack.c.l.s8.bf16 %v784_v54 }
 0x17f   : > { %2248 = vmatprep.subr.bf16.mxu1 %v1440_v6  ;;  %v712_v6 = vld [vmem:[%s5609_s14 + $0x848] sm:$0xff] }
 0x181   : > { %2208 = vmatpush2.bf16.msra.mxu0 %v1311_v9  ;;  %v1631_v9 = vunpack.c.l.s8.bf16 %v783_v63 }
 0x182   : > { %2249 = vmatpush2.bf16.msra.mxu1 %v1439_v10  ;;  %2209 = vmatprep.subr.bf16.mxu0 %v1304_v11  ;;  %v1496_v10 = vunpack.c.h.s8.bf16 %v712_v6  ;;  %v1624_v11 = vunpack.c.h.s8.bf16 %v776_v7 }
 0x183   : > { %2250 = vmatprep.subr.bf16.mxu1 %v1432_v12  ;;  %v711_v12 = vld [vmem:[%s5609_s14 + $0x840] sm:$0xff] }
 0x184   : > { %v1495_v14 = vunpack.c.h.s8.bf16 %v711_v12  ;;  %v1487_v20 = vunpack.c.l.s8.bf16 %v711_v12 }
 0x185   : > { %2210 = vmatpush2.bf16.msra.mxu0 %v1303_v15  ;;  %v1623_v15 = vunpack.c.h.s8.bf16 %v775_v13 }
 0x186   : > { %2251 = vmatpush2.bf16.msra.mxu1 %v1431_v16  ;;  %2211 = vmatprep.subr.bf16.mxu0 %v1296_v17  ;;  %v1488_v16 = vunpack.c.l.s8.bf16 %v712_v6  ;;  %v1616_v17 = vunpack.c.l.s8.bf16 %v776_v7 }
 0x187   : > { %2252 = vmatprep.subr.bf16.mxu1 %v1424_v18  ;;  %v704_v18 = vld [vmem:[%s5609_s14 + $0x808] sm:$0xff] }
 0x189   : > { %2212 = vmatpush2.bf16.msra.mxu0 %v1295_v22  ;;  %v1615_v22 = vunpack.c.l.s8.bf16 %v775_v13 }
 0x18a   : > { %2253 = vmatpush2.bf16.msra.mxu1 %v1423_v23  ;;  %2213 = vmatprep.subr.bf16.mxu0 %v1288_v24  ;;  %v1480_v23 = vunpack.c.h.s8.bf16 %v704_v18  ;;  %v1608_v24 = vunpack.c.h.s8.bf16 %v768_v19 }
 0x18b   : > { %2254 = vmatprep.subr.bf16.mxu1 %v1416_v25  ;;  %v703_v25 = vld [vmem:[%s5609_s14 + $0x800] sm:$0xff] }
 0x18c   : > { %v1479_v27 = vunpack.c.h.s8.bf16 %v703_v25  ;;  %v1471_v34 = vunpack.c.l.s8.bf16 %v703_v25  ;;  %v799_v25 = vld [vmem:[%s5609_s14 + $0xb00] sm:$0xff] }
 0x18d   : > { %2214 = vmatpush2.bf16.msra.mxu0 %v1287_v29  ;;  %v1607_v29 = vunpack.c.h.s8.bf16 %v767_v26 }
 0x18e   : > { %2255 = vmatpush2.bf16.msra.mxu1 %v1415_v30  ;;  %2215 = vmatprep.subr.bf16.mxu0 %v1280_v31  ;;  %v1472_v30 = vunpack.c.l.s8.bf16 %v704_v18  ;;  %v1600_v31 = vunpack.c.l.s8.bf16 %v768_v19  ;;  %v2038_v18 = vcombine.high %v5767_v21, %v5767_v21 }
 0x18f   : > { %2256 = vmatprep.subr.bf16.mxu1 %v1408_v32  ;;  %v760_v32 = vld [vmem:[%s5609_s14 + $0x9c8] sm:$0xff] }
 0x190   : > { %v5831_v26 = vrot.slane %v2038_v18, %v5677_v50 }
 0x191   : > { %2216 = vmatpush2.bf16.msra.mxu0 %v1279_v37  ;;  %v1592_v37 = vunpack.c.h.s8.bf16 %v760_v32 }
 0x192   : > { %2257 = vmatpush2.bf16.msra.mxu1 %v1407_v38  ;;  %2267 = vmatprep.subr.bf16.mxu0 %v1528_v40  ;;  %v1720_v38 = vunpack.c.h.s8.bf16 %v824_v33  ;;  %v759_v40 = vld [vmem:[%s5609_s14 + $0x9c0] sm:$0xff] }
 0x193   : > { %2308 = vmatprep.subr.bf16.mxu1 %v1656_v42  ;;  %v823_v42 = vld [vmem:[%s5609_s14 + $0xbc0] sm:$0xff]  ;;  %v1591_v43 = vunpack.c.h.s8.bf16 %v759_v40  ;;  %v1583_v53 = vunpack.c.l.s8.bf16 %v759_v40 }
 0x194   : > { %2218 = vmatmul.mubr.bf16.vlgmr.msra.gmra.mxu0 %v5781_v36  ;;  %v1719_v44 = vunpack.c.h.s8.bf16 %v823_v42  ;;  %v1711_v54 = vunpack.c.l.s8.bf16 %v823_v42  ;;  %v855_v42 = vld [vmem:[%s5609_s14 + $0xcc0] sm:$0xff] }
 0x195   : > { %2259 = vmatmul.mubr.bf16.vlgmr.msra.gmra.mxu1 %v5790_v46  ;;  %2268 = vmatpush1.bf16.msra.mxu0 %v1527_v41  ;;  %v1584_v41 = vunpack.c.l.s8.bf16 %v760_v32  ;;  %v920_v32 = vld [vmem:[%s5609_s14 + $0xec8] sm:$0xff] }
 0x196   : > { %2309 = vmatpush1.bf16.msra.mxu1 %v1655_v47  ;;  %2269 = vmatprep.subr.bf16.mxu0 %v1520_v48  ;;  %v1712_v47 = vunpack.c.l.s8.bf16 %v824_v33  ;;  %v752_v48 = vld [vmem:[%s5609_s14 + $0x988] sm:$0xff]  ;;  %v2054_v33 = vcombine.high %v5831_v26, %v5831_v26  ;;  %v1912_v40 = vunpack.c.h.s8.bf16 %v920_v32 }
 0x197   : > { %2310 = vmatprep.subr.bf16.mxu1 %v1648_v52  ;;  %2299 = vmatprep.mubr.bf16.mxu0 %v5786_v45  ;;  %v816_v52 = vld [vmem:[%s5609_s14 + $0xb88] sm:$0xff] }
 0x198   : > { %2340 = vmatprep.mubr.bf16.mxu1 %v5796_v55 }
 0x199   : > { %2270 = vmatpush1.bf16.msra.mxu0 %v1519_v56  ;;  %v1576_v56 = vunpack.c.h.s8.bf16 %v752_v48 }
 0x19a   : > { %2311 = vmatpush1.bf16.msra.mxu1 %v1647_v57  ;;  %2271 = vmatprep.subr.bf16.mxu0 %v1512_v51  ;;  %v1704_v57 = vunpack.c.h.s8.bf16 %v816_v52  ;;  %v751_v51 = vld [vmem:[%s5609_s14 + $0x980] sm:$0xff] }
 0x19b   : > { %2312 = vmatprep.subr.bf16.mxu1 %v1640_v61  ;;  %v815_v61 = vld [vmem:[%s5609_s14 + $0xb80] sm:$0xff]  ;;  %v1575_v62 = vunpack.c.h.s8.bf16 %v751_v51  ;;  %v1567_v6 = vunpack.c.l.s8.bf16 %v751_v51 }
 0x19c   : > { %v1703_v63 = vunpack.c.h.s8.bf16 %v815_v61  ;;  %v1695_v7 = vunpack.c.l.s8.bf16 %v815_v61 }
 0x19d   : > { %2272 = vmatpush1.bf16.msra.mxu0 %v1511_v0  ;;  %v1568_v0 = vunpack.c.l.s8.bf16 %v752_v48 }
 0x19e   : > { %2313 = vmatpush1.bf16.msra.mxu1 %v1639_v1  ;;  %2273 = vmatprep.subr.bf16.mxu0 %v1504_v4  ;;  %v1696_v1 = vunpack.c.l.s8.bf16 %v816_v52  ;;  %v744_v4 = vld [vmem:[%s5609_s14 + $0x948] sm:$0xff]  ;;  %v1904_v52 = vunpack.c.l.s8.bf16 %v920_v32 }
 0x19f   : > { %2314 = vmatprep.subr.bf16.mxu1 %v1632_v5  ;;  %v808_v5 = vld [vmem:[%s5609_s14 + $0xb48] sm:$0xff] }
 0x1a1   : > { %2274 = vmatpush1.bf16.msra.mxu0 %v1503_v8  ;;  %v1560_v8 = vunpack.c.h.s8.bf16 %v744_v4 }
 0x1a2   : > { %2315 = vmatpush1.bf16.msra.mxu1 %v1631_v9  ;;  %2275 = vmatprep.subr.bf16.mxu0 %v1496_v10  ;;  %v1688_v9 = vunpack.c.h.s8.bf16 %v808_v5  ;;  %v743_v10 = vld [vmem:[%s5609_s14 + $0x940] sm:$0xff] }
 0x1a3   : > { %2316 = vmatprep.subr.bf16.mxu1 %v1624_v11  ;;  %v807_v11 = vld [vmem:[%s5609_s14 + $0xb40] sm:$0xff]  ;;  %v1559_v12 = vunpack.c.h.s8.bf16 %v743_v10  ;;  %v1551_v19 = vunpack.c.l.s8.bf16 %v743_v10 }
 0x1a4   : > { %v1687_v13 = vunpack.c.h.s8.bf16 %v807_v11 }
 0x1a5   : > { %2276 = vmatpush1.bf16.msra.mxu0 %v1495_v14  ;;  %v1552_v14 = vunpack.c.l.s8.bf16 %v744_v4 }
 0x1a6   : > { %2317 = vmatpush1.bf16.msra.mxu1 %v1623_v15  ;;  %2277 = vmatprep.subr.bf16.mxu0 %v1488_v16  ;;  %v1680_v15 = vunpack.c.l.s8.bf16 %v808_v5  ;;  %v736_v16 = vld [vmem:[%s5609_s14 + $0x908] sm:$0xff] }
 0x1a7   : > { %2318 = vmatprep.subr.bf16.mxu1 %v1616_v17  ;;  %v800_v17 = vld [vmem:[%s5609_s14 + $0xb08] sm:$0xff]  ;;  %v1536_v21 = vunpack.c.l.s8.bf16 %v736_v16 }
 0x1a9   : > { %2278 = vmatpush1.bf16.msra.mxu0 %v1487_v20  ;;  %v1679_v20 = vunpack.c.l.s8.bf16 %v807_v11 }
 0x1aa   : > { %2319 = vmatpush1.bf16.msra.mxu1 %v1615_v22  ;;  %2279 = vmatprep.subr.bf16.mxu0 %v1480_v23  ;;  %v1544_v22 = vunpack.c.h.s8.bf16 %v736_v16  ;;  %v1672_v23 = vunpack.c.h.s8.bf16 %v800_v17 }
 0x1ab   : > { %2320 = vmatprep.subr.bf16.mxu1 %v1608_v24  ;;  %v735_v24 = vld [vmem:[%s5609_s14 + $0x900] sm:$0xff] }
 0x1ad   : > { %2280 = vmatpush1.bf16.msra.mxu0 %v1479_v27  ;;  %v1543_v27 = vunpack.c.h.s8.bf16 %v735_v24 }
 0x1ae   : > { %2321 = vmatpush1.bf16.msra.mxu1 %v1607_v29  ;;  %2281 = vmatprep.subr.bf16.mxu0 %v1472_v30  ;;  %v1671_v29 = vunpack.c.h.s8.bf16 %v799_v25  ;;  %v1664_v30 = vunpack.c.l.s8.bf16 %v800_v17 }
 0x1af   : > { %2322 = vmatprep.subr.bf16.mxu1 %v1600_v31  ;;  %v856_v31 = vld [vmem:[%s5609_s14 + $0xcc8] sm:$0xff] }
 0x1b0   : > { %v1776_v48 = vunpack.c.l.s8.bf16 %v856_v31 }
 0x1b1   : > { %2282 = vmatpush1.bf16.msra.mxu0 %v1471_v34  ;;  %v5839_v34 = vrot.slane %v5773_v28, %v5677_v50  ;;  %v1783_v28 = vunpack.c.h.s8.bf16 %v855_v42 }
 0x1b2   : > { %2323 = vmatpush1.bf16.msra.mxu1 %v1599_v35  ;;  %2283 = vmatprep.subr.bf16.mxu0 %v1592_v37  ;;  %v1535_v35 = vunpack.c.l.s8.bf16 %v735_v24  ;;  %v1663_v37 = vunpack.c.l.s8.bf16 %v799_v25 }
 0x1b3   : > { %2324 = vmatprep.subr.bf16.mxu1 %v1720_v38  ;;  %v1784_v38 = vunpack.c.h.s8.bf16 %v856_v31 }
 0x1b5   : > { %2284 = vmatpush2.bf16.msra.mxu0 %v1591_v43  ;;  %v919_v43 = vld [vmem:[%s5609_s14 + $0xec0] sm:$0xff] }
 0x1b6   : > { %2325 = vmatpush2.bf16.msra.mxu1 %v1719_v44  ;;  %2285 = vmatprep.subr.bf16.mxu0 %v1584_v41  ;;  %v5844_v44 = vrot.slane %v2054_v33, %v5677_v50  ;;  %v5848_v41 = vcombine.high %v5839_v34, %v5839_v34  ;;  %v1903_v51 = vunpack.c.l.s8.bf16 %v919_v43  ;;  %v888_v33 = vld [vmem:[%s5609_s14 + $0xdc8] sm:$0xff] }
 0x1b7   : > { %2326 = vmatprep.subr.bf16.mxu1 %v1712_v47  ;;  %v1911_v47 = vunpack.c.h.s8.bf16 %v919_v43  ;;  %v887_v43 = vld [vmem:[%s5609_s14 + $0xdc0] sm:$0xff] }
 0x1b9   : > { %2286 = vmatpush2.bf16.msra.mxu0 %v1583_v53  ;;  %v848_v53 = vld [vmem:[%s5609_s14 + $0xc88] sm:$0xff] }
 0x1ba   : > { %2327 = vmatpush2.bf16.msra.mxu1 %v1711_v54  ;;  %2287 = vmatprep.subr.bf16.mxu0 %v1576_v56  ;;  %v912_v54 = vld [vmem:[%s5609_s14 + $0xe88] sm:$0xff]  ;;  %v5854_v56 = vcombine.high %v5844_v44, %v5844_v44  ;;  %v1768_v61 = vunpack.c.h.s8.bf16 %v848_v53  ;;  %v1760_v5 = vunpack.c.l.s8.bf16 %v848_v53 }
 0x1bb   : > { %2328 = vmatprep.subr.bf16.mxu1 %v1704_v57  ;;  %v1775_v57 = vunpack.c.l.s8.bf16 %v855_v42 }
 0x1bd   : > { %2288 = vmatpush2.bf16.msra.mxu0 %v1575_v62  ;;  %v1896_v62 = vunpack.c.h.s8.bf16 %v912_v54 }
 0x1be   : > { %2329 = vmatpush2.bf16.msra.mxu1 %v1703_v63  ;;  %2289 = vmatprep.subr.bf16.mxu0 %v1568_v0  ;;  %v847_v63 = vld [vmem:[%s5609_s14 + $0xc80] sm:$0xff] }
 0x1bf   : > { %2330 = vmatprep.subr.bf16.mxu1 %v1696_v1  ;;  %v911_v0 = vld [vmem:[%s5609_s14 + $0xe80] sm:$0xff]  ;;  %v1767_v1 = vunpack.c.h.s8.bf16 %v847_v63 }
 0x1c0   : > { %v1895_v4 = vunpack.c.h.s8.bf16 %v911_v0  ;;  %v1887_v10 = vunpack.c.l.s8.bf16 %v911_v0  ;;  %v879_v0 = vld [vmem:[%s5609_s14 + $0xd80] sm:$0xff] }
 0x1c1   : > { %2290 = vmatpush2.bf16.msra.mxu0 %v1567_v6  ;;  %v1888_v6 = vunpack.c.l.s8.bf16 %v912_v54  ;;  %v880_v54 = vld [vmem:[%s5609_s14 + $0xd88] sm:$0xff] }
 0x1c2   : > { %2331 = vmatpush2.bf16.msra.mxu1 %v1695_v7  ;;  %2291 = vmatprep.subr.bf16.mxu0 %v1560_v8  ;;  %v840_v7 = vld [vmem:[%s5609_s14 + $0xc48] sm:$0xff] }
 0x1c3   : > { %2332 = vmatprep.subr.bf16.mxu1 %v1688_v9  ;;  %v904_v8 = vld [vmem:[%s5609_s14 + $0xe48] sm:$0xff]  ;;  %v1759_v9 = vunpack.c.l.s8.bf16 %v847_v63  ;;  %v1752_v11 = vunpack.c.h.s8.bf16 %v840_v7  ;;  %v1744_v17 = vunpack.c.l.s8.bf16 %v840_v7 }
 0x1c4   : > { %v1872_v18 = vunpack.c.l.s8.bf16 %v904_v8 }
 0x1c5   : > { %2292 = vmatpush2.bf16.msra.mxu0 %v1559_v12  ;;  %v1880_v12 = vunpack.c.h.s8.bf16 %v904_v8  ;;  %v872_v8 = vld [vmem:[%s5609_s14 + $0xd48] sm:$0xff] }
 0x1c6   : > { %2333 = vmatpush2.bf16.msra.mxu1 %v1687_v13  ;;  %2293 = vmatprep.subr.bf16.mxu0 %v1552_v14  ;;  %v839_v13 = vld [vmem:[%s5609_s14 + $0xc40] sm:$0xff] }
 0x1c7   : > { %2334 = vmatprep.subr.bf16.mxu1 %v1680_v15  ;;  %v903_v14 = vld [vmem:[%s5609_s14 + $0xe40] sm:$0xff]  ;;  %v1751_v15 = vunpack.c.h.s8.bf16 %v839_v13 }
 0x1c8   : > { %v1879_v16 = vunpack.c.h.s8.bf16 %v903_v14 }
 0x1c9   : > { %2294 = vmatpush2.bf16.msra.mxu0 %v1551_v19  ;;  %v832_v19 = vld [vmem:[%s5609_s14 + $0xc08] sm:$0xff] }
 0x1ca   : > { %2335 = vmatpush2.bf16.msra.mxu1 %v1679_v20  ;;  %2295 = vmatprep.subr.bf16.mxu0 %v1544_v22  ;;  %v896_v20 = vld [vmem:[%s5609_s14 + $0xe08] sm:$0xff]  ;;  %v1743_v22 = vunpack.c.l.s8.bf16 %v839_v13  ;;  %v1736_v24 = vunpack.c.h.s8.bf16 %v832_v19  ;;  %v1728_v31 = vunpack.c.l.s8.bf16 %v832_v19 }
 0x1cb   : > { %2336 = vmatprep.subr.bf16.mxu1 %v1672_v23  ;;  %v1871_v23 = vunpack.c.l.s8.bf16 %v903_v14  ;;  %v1864_v25 = vunpack.c.h.s8.bf16 %v896_v20  ;;  %v1856_v32 = vunpack.c.l.s8.bf16 %v896_v20  ;;  %v871_v14 = vld [vmem:[%s5609_s14 + $0xd40] sm:$0xff]  ;;  %v864_v20 = vld [vmem:[%s5609_s14 + $0xd08] sm:$0xff] }
 0x1cd   : > { %2296 = vmatpush2.bf16.msra.mxu0 %v1543_v27  ;;  %v831_v27 = vld [vmem:[%s5609_s14 + $0xc00] sm:$0xff] }
 0x1ce   : > { %2337 = vmatpush2.bf16.msra.mxu1 %v1671_v29  ;;  %2297 = vmatprep.subr.bf16.mxu0 %v1536_v21  ;;  %v895_v29 = vld [vmem:[%s5609_s14 + $0xe00] sm:$0xff]  ;;  %v1735_v21 = vunpack.c.h.s8.bf16 %v831_v27 }
 0x1cf   : > { %2338 = vmatprep.subr.bf16.mxu1 %v1664_v30  ;;  %v1863_v30 = vunpack.c.h.s8.bf16 %v895_v29 }
 0x1d1   : > { %2298 = vmatpush2.bf16.msra.mxu0 %v1535_v35  ;;  %v952_v35 = vld [vmem:[%s5609_s14 + $0xfc8] sm:$0xff] }
 0x1d2   : > { %2339 = vmatpush2.bf16.msra.mxu1 %v1663_v37  ;;  %2349 = vmatprep.subr.bf16.mxu0 %v1784_v38  ;;  %v1727_v37 = vunpack.c.l.s8.bf16 %v831_v27  ;;  %v1855_v38 = vunpack.c.l.s8.bf16 %v895_v29  ;;  %v1976_v42 = vunpack.c.h.s8.bf16 %v952_v35  ;;  %v1968_v53 = vunpack.c.l.s8.bf16 %v952_v35  ;;  %v863_v29 = vld [vmem:[%s5609_s14 + $0xd00] sm:$0xff]  ;;  %v474_v35 = vld [vmem:[%s5609_s14 + $0xd8] sm:$0xff] }
 0x1d3   : > { %2390 = vmatprep.subr.bf16.mxu1 %v1912_v40  ;;  %v1848_v40 = vunpack.c.h.s8.bf16 %v888_v33 }
 0x1d4   : > { %2300 = vmatmul.mubr.bf16.vlgmr.msra.gmra.mxu0 %v5839_v34 }
 0x1d5   : > { %2341 = vmatmul.mubr.bf16.vlgmr.msra.gmra.mxu1 %v5848_v41  ;;  %2350 = vmatpush1.bf16.msra.mxu0 %v1783_v28  ;;  %v951_v28 = vld [vmem:[%s5609_s14 + $0xfc0] sm:$0xff] }
 0x1d6   : > { %2391 = vmatpush1.bf16.msra.mxu1 %v1911_v47  ;;  %2351 = vmatprep.subr.bf16.mxu0 %v1776_v48  ;;  %v1847_v47 = vunpack.c.h.s8.bf16 %v887_v43  ;;  %v1975_v48 = vunpack.c.h.s8.bf16 %v951_v28 }
 0x1d7   : > { %2392 = vmatprep.subr.bf16.mxu1 %v1904_v52  ;;  %2381 = vmatprep.mubr.bf16.mxu0 %v5844_v44  ;;  %v1840_v52 = vunpack.c.l.s8.bf16 %v888_v33 }
 0x1d8   : > { %2422 = vmatprep.mubr.bf16.mxu1 %v5854_v56 }
 0x1d9   : > { %2352 = vmatpush1.bf16.msra.mxu0 %v1775_v57  ;;  %v944_v57 = vld [vmem:[%s5609_s14 + $0xf88] sm:$0xff] }
 0x1da   : > { %2393 = vmatpush1.bf16.msra.mxu1 %v1903_v51  ;;  %2353 = vmatprep.subr.bf16.mxu0 %v1768_v61  ;;  %v1839_v51 = vunpack.c.l.s8.bf16 %v887_v43  ;;  %v1967_v61 = vunpack.c.l.s8.bf16 %v951_v28  ;;  %v1960_v63 = vunpack.c.h.s8.bf16 %v944_v57  ;;  %v1952_v7 = vunpack.c.l.s8.bf16 %v944_v57  ;;  %v466_v57 = vld [vmem:[%s5609_s14 + $0x98] sm:$0xff] }
 0x1db   : > { %2394 = vmatprep.subr.bf16.mxu1 %v1896_v62  ;;  %v1832_v62 = vunpack.c.h.s8.bf16 %v880_v54  ;;  %v1018_v43 = vunpack.c.h.s8.bf16 %v474_v35 }
 0x1dd   : > { %2354 = vmatpush1.bf16.msra.mxu0 %v1767_v1  ;;  %v943_v1 = vld [vmem:[%s5609_s14 + $0xf80] sm:$0xff] }
 0x1de   : > { %2395 = vmatpush1.bf16.msra.mxu1 %v1895_v4  ;;  %2355 = vmatprep.subr.bf16.mxu0 %v1760_v5  ;;  %v1831_v4 = vunpack.c.h.s8.bf16 %v879_v0  ;;  %v1959_v5 = vunpack.c.h.s8.bf16 %v943_v1 }
 0x1df   : > { %2396 = vmatprep.subr.bf16.mxu1 %v1888_v6  ;;  %v1824_v6 = vunpack.c.l.s8.bf16 %v880_v54 }
 0x1e1   : > { %2356 = vmatpush1.bf16.msra.mxu0 %v1759_v9  ;;  %v936_v9 = vld [vmem:[%s5609_s14 + $0xf48] sm:$0xff] }
 0x1e2   : > { %2397 = vmatpush1.bf16.msra.mxu1 %v1887_v10  ;;  %2357 = vmatprep.subr.bf16.mxu0 %v1752_v11  ;;  %v1823_v10 = vunpack.c.l.s8.bf16 %v879_v0  ;;  %v1951_v11 = vunpack.c.l.s8.bf16 %v943_v1  ;;  %v1944_v13 = vunpack.c.h.s8.bf16 %v936_v9  ;;  %v1936_v19 = vunpack.c.l.s8.bf16 %v936_v9  ;;  %v529_v9 = vld [vmem:[%s5609_s14 + $0x290] sm:$0xff] }
 0x1e3   : > { %2398 = vmatprep.subr.bf16.mxu1 %v1880_v12  ;;  %v1816_v12 = vunpack.c.h.s8.bf16 %v872_v8 }
 0x1e5   : > { %2358 = vmatpush1.bf16.msra.mxu0 %v1751_v15  ;;  %v935_v15 = vld [vmem:[%s5609_s14 + $0xf40] sm:$0xff] }
 0x1e6   : > { %2399 = vmatpush1.bf16.msra.mxu1 %v1879_v16  ;;  %2359 = vmatprep.subr.bf16.mxu0 %v1744_v17  ;;  %v1815_v16 = vunpack.c.h.s8.bf16 %v871_v14  ;;  %v1943_v17 = vunpack.c.h.s8.bf16 %v935_v15 }
 0x1e7   : > { %2400 = vmatprep.subr.bf16.mxu1 %v1872_v18  ;;  %v1808_v18 = vunpack.c.l.s8.bf16 %v872_v8  ;;  %v465_v8 = vld [vmem:[%s5609_s14 + $0x90] sm:$0xff] }
 0x1e9   : > { %2360 = vmatpush1.bf16.msra.mxu0 %v1743_v22  ;;  %v928_v22 = vld [vmem:[%s5609_s14 + $0xf08] sm:$0xff] }
 0x1ea   : > { %2401 = vmatpush1.bf16.msra.mxu1 %v1871_v23  ;;  %2361 = vmatprep.subr.bf16.mxu0 %v1736_v24  ;;  %v1807_v23 = vunpack.c.l.s8.bf16 %v871_v14  ;;  %v1935_v24 = vunpack.c.l.s8.bf16 %v935_v15  ;;  %v1928_v27 = vunpack.c.h.s8.bf16 %v928_v22  ;;  %v1920_v33 = vunpack.c.l.s8.bf16 %v928_v22 }
 0x1eb   : > { %2402 = vmatprep.subr.bf16.mxu1 %v1864_v25  ;;  %v1800_v25 = vunpack.c.h.s8.bf16 %v864_v20  ;;  %v1129_v14 = vunpack.c.h.s8.bf16 %v529_v9  ;;  %v993_v22 = vunpack.c.l.s8.bf16 %v465_v8 }
 0x1ed   : > { %2362 = vmatpush1.bf16.msra.mxu0 %v1735_v21  ;;  %v927_v21 = vld [vmem:[%s5609_s14 + $0xf00] sm:$0xff] }
 0x1ee   : > { %2403 = vmatpush1.bf16.msra.mxu1 %v1863_v30  ;;  %2363 = vmatprep.subr.bf16.mxu0 %v1728_v31  ;;  %v1799_v30 = vunpack.c.h.s8.bf16 %v863_v29  ;;  %v1927_v31 = vunpack.c.h.s8.bf16 %v927_v21 }
 0x1ef   : > { %2404 = vmatprep.subr.bf16.mxu1 %v1856_v32  ;;  %v1792_v32 = vunpack.c.l.s8.bf16 %v864_v20  ;;  %v522_v20 = vld [vmem:[%s5609_s14 + $0x258] sm:$0xff] }
 0x1f1   : > { %2364 = vmatpush1.bf16.msra.mxu0 %v1727_v37  ;;  %v538_v37 = vld [vmem:[%s5609_s14 + $0x2d8] sm:$0xff] }
 0x1f2   : > { %2405 = vmatpush1.bf16.msra.mxu1 %v1855_v38  ;;  %2365 = vmatprep.subr.bf16.mxu0 %v1848_v40  ;;  %v5890_v38 = vrot.slane %v5831_v26, %v5677_v50  ;;  %v1791_v40 = vunpack.c.l.s8.bf16 %v863_v29  ;;  %v1146_v28 = vunpack.c.h.s8.bf16 %v538_v37  ;;  %v1138_v54 = vunpack.c.l.s8.bf16 %v538_v37  ;;  %v521_v29 = vld [vmem:[%s5609_s14 + $0x250] sm:$0xff] }
 0x1f3   : > { %2406 = vmatprep.subr.bf16.mxu1 %v1976_v42  ;;  %v1919_v42 = vunpack.c.l.s8.bf16 %v927_v21 }
 0x1f5   : > { %2366 = vmatpush2.bf16.msra.mxu0 %v1847_v47  ;;  %v473_v47 = vld [vmem:[%s5609_s14 + $0xd0] sm:$0xff] }
 0x1f6   : > { %2407 = vmatpush2.bf16.msra.mxu1 %v1975_v48  ;;  %2367 = vmatprep.subr.bf16.mxu0 %v1840_v52  ;;  %v537_v48 = vld [vmem:[%s5609_s14 + $0x2d0] sm:$0xff]  ;;  %v5896_v52 = vcombine.high %v5890_v38, %v5890_v38  ;;  %v1017_v50 = vunpack.c.h.s8.bf16 %v473_v47  ;;  %v1009_v0 = vunpack.c.l.s8.bf16 %v473_v47 }
 0x1f7   : > { %2408 = vmatprep.subr.bf16.mxu1 %v1968_v53  ;;  %v1145_v26 = vunpack.c.h.s8.bf16 %v537_v48  ;;  %v1010_v53 = vunpack.c.l.s8.bf16 %v474_v35  ;;  %v1137_v1 = vunpack.c.l.s8.bf16 %v537_v48  ;;  %v514_v35 = vld [vmem:[%s5609_s14 + $0x218] sm:$0xff]  ;;  %v513_v47 = vld [vmem:[%s5609_s14 + $0x210] sm:$0xff] }
 0x1f9   : > { %2368 = vmatpush2.bf16.msra.mxu0 %v1839_v51  ;;  %v530_v51 = vld [vmem:[%s5609_s14 + $0x298] sm:$0xff] }
 0x1fa   : > { %2409 = vmatpush2.bf16.msra.mxu1 %v1967_v61  ;;  %2369 = vmatprep.subr.bf16.mxu0 %v1832_v62 }
 0x1fb   : > { %2410 = vmatprep.subr.bf16.mxu1 %v1960_v63 }
 0x1fd   : > { %2370 = vmatpush2.bf16.msra.mxu0 %v1831_v4 }
 0x1fe   : > { %2411 = vmatpush2.bf16.msra.mxu1 %v1959_v5  ;;  %2371 = vmatprep.subr.bf16.mxu0 %v1824_v6  ;;  %v1002_v6 = vunpack.c.h.s8.bf16 %v466_v57 }
 0x1ff   : > { %2412 = vmatprep.subr.bf16.mxu1 %v1952_v7  ;;  %v1130_v7 = vunpack.c.h.s8.bf16 %v530_v51 }
 0x201   : > { %2372 = vmatpush2.bf16.msra.mxu0 %v1823_v10 }
 0x202   : > { %2413 = vmatpush2.bf16.msra.mxu1 %v1951_v11  ;;  %2373 = vmatprep.subr.bf16.mxu0 %v1816_v12 }
 0x203   : > { %2414 = vmatprep.subr.bf16.mxu1 %v1944_v13  ;;  %v1001_v13 = vunpack.c.h.s8.bf16 %v465_v8 }
 0x205   : > { %2374 = vmatpush2.bf16.msra.mxu0 %v1815_v16 }
 0x206   : > { %2415 = vmatpush2.bf16.msra.mxu1 %v1943_v17  ;;  %2375 = vmatprep.subr.bf16.mxu0 %v1808_v18  ;;  %v994_v17 = vunpack.c.l.s8.bf16 %v466_v57  ;;  %v1122_v18 = vunpack.c.l.s8.bf16 %v530_v51  ;;  %v570_v57 = vld [vmem:[%s5609_s14 + $0x3d8] sm:$0xff] }
 0x207   : > { %2416 = vmatprep.subr.bf16.mxu1 %v1936_v19  ;;  %v458_v19 = vld [vmem:[%s5609_s14 + $0x58] sm:$0xff]  ;;  %v1202_v8 = vunpack.c.l.s8.bf16 %v570_v57 }
 0x209   : > { %2376 = vmatpush2.bf16.msra.mxu0 %v1807_v23  ;;  %v1121_v23 = vunpack.c.l.s8.bf16 %v529_v9  ;;  %v498_v9 = vld [vmem:[%s5609_s14 + $0x198] sm:$0xff] }
 0x20a   : > { %2417 = vmatpush2.bf16.msra.mxu1 %v1935_v24  ;;  %2377 = vmatprep.subr.bf16.mxu0 %v1800_v25  ;;  %v986_v24 = vunpack.c.h.s8.bf16 %v458_v19  ;;  %v1114_v25 = vunpack.c.h.s8.bf16 %v522_v20 }
 0x20b   : > { %2418 = vmatprep.subr.bf16.mxu1 %v1928_v27  ;;  %v457_v27 = vld [vmem:[%s5609_s14 + $0x50] sm:$0xff] }
 0x20c   : > { %v985_v21 = vunpack.c.h.s8.bf16 %v457_v27  ;;  %v977_v37 = vunpack.c.l.s8.bf16 %v457_v27 }
 0x20d   : > { %2378 = vmatpush2.bf16.msra.mxu0 %v1799_v30  ;;  %v1113_v30 = vunpack.c.h.s8.bf16 %v521_v29 }
 0x20e   : > { %2419 = vmatpush2.bf16.msra.mxu1 %v1927_v31  ;;  %2379 = vmatprep.subr.bf16.mxu0 %v1792_v32  ;;  %v978_v31 = vunpack.c.l.s8.bf16 %v458_v19  ;;  %v1106_v32 = vunpack.c.l.s8.bf16 %v522_v20  ;;  %v1058_v20 = vunpack.c.l.s8.bf16 %v498_v9 }
 0x20f   : > { %2420 = vmatprep.subr.bf16.mxu1 %v1920_v33  ;;  %v450_v33 = vld [vmem:[%s5609_s14 + $0x18] sm:$0xff] }
 0x211   : > { %2380 = vmatpush2.bf16.msra.mxu0 %v1791_v40  ;;  %v1105_v40 = vunpack.c.l.s8.bf16 %v521_v29 }
 0x212   : > { %2421 = vmatpush2.bf16.msra.mxu1 %v1919_v42  ;;  %2431 = vmatprep.subr.bf16.mxu0 %v1018_v43  ;;  %v970_v42 = vunpack.c.h.s8.bf16 %v450_v33  ;;  %v1098_v43 = vunpack.c.h.s8.bf16 %v514_v35 }
 0x213   : > { %2472 = vmatprep.subr.bf16.mxu1 %v1146_v28  ;;  %v449_v28 = vld [vmem:[%s5609_s14 + $0x10] sm:$0xff] }
 0x214   : > { %v2137_v61 = vpop.f32.mrf.mxu0  ;;  %2382 = vmatmul.mubr.bf16.vlgmr.msra.gmra.mxu0 %v5890_v38  ;;  %v969_v48 = vunpack.c.h.s8.bf16 %v449_v28  ;;  %v961_v51 = vunpack.c.l.s8.bf16 %v449_v28 }
 0x215   : > { %v2178_v62 = vpop.f32.mrf.mxu1  ;;  %2423 = vmatmul.mubr.bf16.vlgmr.msra.gmra.mxu1 %v5896_v52  ;;  %2432 = vmatpush1.bf16.msra.mxu0 %v1017_v50  ;;  %v1097_v50 = vunpack.c.h.s8.bf16 %v513_v47 }
 0x216   : > { %v5902_v63 = vadd.f32 %v2178_v62, %v2137_v61  ;;  %2473 = vmatpush1.bf16.msra.mxu1 %v1145_v26  ;;  %v2139_v4 = vpop.f32.mrf.mxu0  ;;  %2433 = vmatprep.subr.bf16.mxu0 %v1010_v53  ;;  %v962_v26 = vunpack.c.l.s8.bf16 %v450_v33  ;;  %v1090_v53 = vunpack.c.l.s8.bf16 %v514_v35  ;;  %v1089_v61 = vunpack.c.l.s8.bf16 %v513_v47 }
 0x217   : > { %v2180_v5 = vpop.f32.mrf.mxu1  ;;  %2474 = vmatprep.subr.bf16.mxu1 %v1138_v54  ;;  %2463 = vmatprep.mubr.bf16.mxu0 %v5688_v59  ;;  %v506_v54 = vld [vmem:[%s5609_s14 + $0x1d8] sm:$0xff] }
 0x218   : > { %v5906_v10 = vadd.f32 %v2180_v5, %v2139_v4  ;;  %2504 = vmatprep.mubr.bf16.mxu1 %v5694_v2  ;;  %v2141_v11 = vpop.f32.mrf.mxu0  ;;  %v1082_v62 = vunpack.c.h.s8.bf16 %v506_v54  ;;  %v569_v4 = vld [vmem:[%s5609_s14 + $0x3d0] sm:$0xff] }
 0x219   : > { %v2182_v12 = vpop.f32.mrf.mxu1  ;;  %2434 = vmatpush1.bf16.msra.mxu0 %v1009_v0  ;;  %v1210_v0 = vunpack.c.h.s8.bf16 %v570_v57  ;;  %v562_v11 = vld [vmem:[%s5609_s14 + $0x398] sm:$0xff] }
 0x21a   : > { %2475 = vmatpush1.bf16.msra.mxu1 %v1137_v1  ;;  %v2142_v15 = vpop.f32.mrf.mxu0  ;;  %2435 = vmatprep.subr.bf16.mxu0 %v1002_v6  ;;  %v505_v1 = vld [vmem:[%s5609_s14 + $0x1d0] sm:$0xff]  ;;  %v1209_v6 = vunpack.c.h.s8.bf16 %v569_v4 }
 0x21b   : > { %v2183_v16 = vpop.f32.mrf.mxu1  ;;  %2476 = vmatprep.subr.bf16.mxu1 %v1130_v7  ;;  %v1081_v5 = vunpack.c.h.s8.bf16 %v505_v1  ;;  %v1074_v7 = vunpack.c.l.s8.bf16 %v506_v54  ;;  %v1073_v12 = vunpack.c.l.s8.bf16 %v505_v1  ;;  %v1194_v15 = vunpack.c.h.s8.bf16 %v562_v11 }
 0x21c   : > { %v497_v16 = vld [vmem:[%s5609_s14 + $0x190] sm:$0xff] }
 0x21d   : > { %2436 = vmatpush1.bf16.msra.mxu0 %v1001_v13  ;;  %v1201_v13 = vunpack.c.l.s8.bf16 %v569_v4 }
 0x21e   : > { %2477 = vmatpush1.bf16.msra.mxu1 %v1129_v14  ;;  %2437 = vmatprep.subr.bf16.mxu0 %v994_v17  ;;  %v1066_v14 = vunpack.c.h.s8.bf16 %v498_v9  ;;  %v561_v17 = vld [vmem:[%s5609_s14 + $0x390] sm:$0xff] }
 0x21f   : > { %2478 = vmatprep.subr.bf16.mxu1 %v1122_v18  ;;  %v1065_v18 = vunpack.c.h.s8.bf16 %v497_v16  ;;  %v1193_v19 = vunpack.c.h.s8.bf16 %v561_v17  ;;  %v1185_v27 = vunpack.c.l.s8.bf16 %v561_v17 }
 0x221   : > { %2438 = vmatpush1.bf16.msra.mxu0 %v993_v22  ;;  %v1186_v22 = vunpack.c.l.s8.bf16 %v562_v11 }
 0x222   : > { %2479 = vmatpush1.bf16.msra.mxu1 %v1121_v23  ;;  %2439 = vmatprep.subr.bf16.mxu0 %v986_v24  ;;  %v490_v23 = vld [vmem:[%s5609_s14 + $0x158] sm:$0xff] }
 0x223   : > { %2480 = vmatprep.subr.bf16.mxu1 %v1114_v25  ;;  %v554_v24 = vld [vmem:[%s5609_s14 + $0x358] sm:$0xff]  ;;  %v1057_v25 = vunpack.c.l.s8.bf16 %v497_v16  ;;  %v1050_v29 = vunpack.c.h.s8.bf16 %v490_v23  ;;  %v1042_v35 = vunpack.c.l.s8.bf16 %v490_v23 }
 0x225   : > { %2440 = vmatpush1.bf16.msra.mxu0 %v985_v21  ;;  %v1178_v21 = vunpack.c.h.s8.bf16 %v554_v24 }
 0x226   : > { %2481 = vmatpush1.bf16.msra.mxu1 %v1113_v30  ;;  %2441 = vmatprep.subr.bf16.mxu0 %v978_v31  ;;  %v489_v30 = vld [vmem:[%s5609_s14 + $0x150] sm:$0xff] }
 0x227   : > { %2482 = vmatprep.subr.bf16.mxu1 %v1106_v32  ;;  %v553_v31 = vld [vmem:[%s5609_s14 + $0x350] sm:$0xff]  ;;  %v1049_v32 = vunpack.c.h.s8.bf16 %v489_v30 }
 0x228   : > { %v1177_v33 = vunpack.c.h.s8.bf16 %v553_v31  ;;  %v1169_v28 = vunpack.c.l.s8.bf16 %v553_v31 }
 0x229   : > { %2442 = vmatpush1.bf16.msra.mxu0 %v977_v37  ;;  %v1170_v37 = vunpack.c.l.s8.bf16 %v554_v24 }
 0x22a   : > { %2483 = vmatpush1.bf16.msra.mxu1 %v1105_v40  ;;  %2443 = vmatprep.subr.bf16.mxu0 %v970_v42  ;;  %v482_v40 = vld [vmem:[%s5609_s14 + $0x118] sm:$0xff] }
 0x22b   : > { %2484 = vmatprep.subr.bf16.mxu1 %v1098_v43  ;;  %v546_v42 = vld [vmem:[%s5609_s14 + $0x318] sm:$0xff]  ;;  %v1041_v43 = vunpack.c.l.s8.bf16 %v489_v30  ;;  %v1034_v47 = vunpack.c.h.s8.bf16 %v482_v40  ;;  %v1026_v57 = vunpack.c.l.s8.bf16 %v482_v40 }
 0x22d   : > { %2444 = vmatpush1.bf16.msra.mxu0 %v969_v48  ;;  %v1162_v48 = vunpack.c.h.s8.bf16 %v546_v42 }
 0x22e   : > { %2485 = vmatpush1.bf16.msra.mxu1 %v1097_v50  ;;  %2445 = vmatprep.subr.bf16.mxu0 %v962_v26  ;;  %v481_v50 = vld [vmem:[%s5609_s14 + $0x110] sm:$0xff] }
 0x22f   : > { %2486 = vmatprep.subr.bf16.mxu1 %v1090_v53  ;;  %v545_v26 = vld [vmem:[%s5609_s14 + $0x310] sm:$0xff]  ;;  %v1033_v53 = vunpack.c.h.s8.bf16 %v481_v50 }
 0x230   : > { %v1161_v54 = vunpack.c.h.s8.bf16 %v545_v26  ;;  %v1153_v1 = vunpack.c.l.s8.bf16 %v545_v26  ;;  %v585_v26 = vld [vmem:[%s5609_s14 + $0x450] sm:$0xff] }
 0x231   : > { %2446 = vmatpush1.bf16.msra.mxu0 %v961_v51  ;;  %v1154_v51 = vunpack.c.l.s8.bf16 %v546_v42  ;;  %v586_v42 = vld [vmem:[%s5609_s14 + $0x458] sm:$0xff] }
 0x232   : > { %2487 = vmatpush1.bf16.msra.mxu1 %v1089_v61  ;;  %2447 = vmatprep.subr.bf16.mxu0 %v1082_v62  ;;  %v602_v61 = vld [vmem:[%s5609_s14 + $0x4d8] sm:$0xff] }
 0x233   : > { %2488 = vmatprep.subr.bf16.mxu1 %v1210_v0  ;;  %v666_v62 = vld [vmem:[%s5609_s14 + $0x6d8] sm:$0xff]  ;;  %v1025_v0 = vunpack.c.l.s8.bf16 %v481_v50  ;;  %v1274_v4 = vunpack.c.h.s8.bf16 %v602_v61  ;;  %v1266_v11 = vunpack.c.l.s8.bf16 %v602_v61 }
 0x235   : > { %2448 = vmatpush2.bf16.msra.mxu0 %v1081_v5  ;;  %v1402_v5 = vunpack.c.h.s8.bf16 %v666_v62 }
 0x236   : > { %2489 = vmatpush2.bf16.msra.mxu1 %v1209_v6  ;;  %2449 = vmatprep.subr.bf16.mxu0 %v1074_v7  ;;  %v601_v6 = vld [vmem:[%s5609_s14 + $0x4d0] sm:$0xff] }
 0x237   : > { %2490 = vmatprep.subr.bf16.mxu1 %v1202_v8  ;;  %v665_v7 = vld [vmem:[%s5609_s14 + $0x6d0] sm:$0xff]  ;;  %v1273_v8 = vunpack.c.h.s8.bf16 %v601_v6 }
 0x238   : > { %v1401_v9 = vunpack.c.h.s8.bf16 %v665_v7 }
 0x239   : > { %2450 = vmatpush2.bf16.msra.mxu0 %v1073_v12  ;;  %v1394_v12 = vunpack.c.l.s8.bf16 %v666_v62  ;;  %v578_v62 = vld [vmem:[%s5609_s14 + $0x418] sm:$0xff] }
 0x23a   : > { %2491 = vmatpush2.bf16.msra.mxu1 %v1201_v13  ;;  %2451 = vmatprep.subr.bf16.mxu0 %v1066_v14  ;;  %v594_v13 = vld [vmem:[%s5609_s14 + $0x498] sm:$0xff] }
 0x23b   : > { %2492 = vmatprep.subr.bf16.mxu1 %v1194_v15  ;;  %v658_v14 = vld [vmem:[%s5609_s14 + $0x698] sm:$0xff]  ;;  %v1258_v23 = vunpack.c.h.s8.bf16 %v594_v13 }
 0x23c   : > { %v1386_v24 = vunpack.c.h.s8.bf16 %v658_v14  ;;  %v1378_v40 = vunpack.c.l.s8.bf16 %v658_v14  ;;  %v634_v14 = vld [vmem:[%s5609_s14 + $0x5d8] sm:$0xff] }
 0x23d   : > { %2452 = vmatpush2.bf16.msra.mxu0 %v1065_v18  ;;  %v1265_v18 = vunpack.c.l.s8.bf16 %v601_v6 }
 0x23e   : > { %2493 = vmatpush2.bf16.msra.mxu1 %v1193_v19  ;;  %2453 = vmatprep.subr.bf16.mxu0 %v1058_v20  ;;  %v1393_v19 = vunpack.c.l.s8.bf16 %v665_v7  ;;  %v577_v7 = vld [vmem:[%s5609_s14 + $0x410] sm:$0xff] }
 0x23f   : > { %2494 = vmatprep.subr.bf16.mxu1 %v1186_v22 }
 0x241   : > { %2454 = vmatpush2.bf16.msra.mxu0 %v1057_v25  ;;  %v593_v25 = vld [vmem:[%s5609_s14 + $0x490] sm:$0xff] }
 0x242   : > { %2495 = vmatpush2.bf16.msra.mxu1 %v1185_v27  ;;  %2455 = vmatprep.subr.bf16.mxu0 %v1050_v29  ;;  %v657_v27 = vld [vmem:[%s5609_s14 + $0x690] sm:$0xff] }
 0x243   : > { %2496 = vmatprep.subr.bf16.mxu1 %v1178_v21 }
 0x245   : > { %2456 = vmatpush2.bf16.msra.mxu0 %v1049_v32  ;;  %v1257_v32 = vunpack.c.h.s8.bf16 %v593_v25 }
 0x246   : > { %2497 = vmatpush2.bf16.msra.mxu1 %v1177_v33  ;;  %2457 = vmatprep.subr.bf16.mxu0 %v1042_v35  ;;  %v1385_v33 = vunpack.c.h.s8.bf16 %v657_v27 }
 0x247   : > { %2498 = vmatprep.subr.bf16.mxu1 %v1170_v37 }
 0x249   : > { %2458 = vmatpush2.bf16.msra.mxu0 %v1041_v43  ;;  %v650_v43 = vld [vmem:[%s5609_s14 + $0x658] sm:$0xff] }
 0x24a   : > { %2499 = vmatpush2.bf16.msra.mxu1 %v1169_v28  ;;  %2459 = vmatprep.subr.bf16.mxu0 %v1034_v47  ;;  %v1249_v28 = vunpack.c.l.s8.bf16 %v593_v25  ;;  %v1377_v47 = vunpack.c.l.s8.bf16 %v657_v27  ;;  %v1370_v50 = vunpack.c.h.s8.bf16 %v650_v43  ;;  %v1362_v61 = vunpack.c.l.s8.bf16 %v650_v43 }
 0x24b   : > { %2500 = vmatprep.subr.bf16.mxu1 %v1162_v48  ;;  %v1242_v48 = vunpack.c.h.s8.bf16 %v586_v42  ;;  %v1330_v25 = vunpack.c.l.s8.bf16 %v634_v14 }
 0x24d   : > { %2460 = vmatpush2.bf16.msra.mxu0 %v1033_v53  ;;  %v649_v53 = vld [vmem:[%s5609_s14 + $0x650] sm:$0xff] }
 0x24e   : > { %2501 = vmatpush2.bf16.msra.mxu1 %v1161_v54  ;;  %2461 = vmatprep.subr.bf16.mxu0 %v1026_v57  ;;  %v1241_v54 = vunpack.c.h.s8.bf16 %v585_v26  ;;  %v1369_v57 = vunpack.c.h.s8.bf16 %v649_v53 }
 0x24f   : > { %2502 = vmatprep.subr.bf16.mxu1 %v1154_v51  ;;  %v1234_v51 = vunpack.c.l.s8.bf16 %v586_v42 }
 0x251   : > { %2462 = vmatpush2.bf16.msra.mxu0 %v1025_v0  ;;  %v642_v0 = vld [vmem:[%s5609_s14 + $0x618] sm:$0xff] }
 0x252   : > { %2503 = vmatpush2.bf16.msra.mxu1 %v1153_v1  ;;  %2513 = vmatprep.subr.bf16.mxu0 %v1274_v4  ;;  %v1233_v1 = vunpack.c.l.s8.bf16 %v585_v26  ;;  %v1361_v4 = vunpack.c.l.s8.bf16 %v649_v53  ;;  %v1354_v6 = vunpack.c.h.s8.bf16 %v642_v0 }
 0x253   : > { %2554 = vmatprep.subr.bf16.mxu1 %v1402_v5  ;;  %v1226_v5 = vunpack.c.h.s8.bf16 %v578_v62 }
 0x254   : > { %v2219_v15 = vpop.f32.mrf.mxu0  ;;  %2464 = vmatmul.mubr.bf16.vlgmr.msra.gmra.mxu0 %v5721_v49 }
 0x255   : > { %v2260_v16 = vpop.f32.mrf.mxu1  ;;  %2505 = vmatmul.mubr.bf16.vlgmr.msra.gmra.mxu1 %v5730_v60  ;;  %v2220_v17 = vadd.f32 %v2219_v15, %v5902_v63  ;;  %2514 = vmatpush1.bf16.msra.mxu0 %v1273_v8  ;;  %v641_v8 = vld [vmem:[%s5609_s14 + $0x610] sm:$0xff]  ;;  %v698_v15 = vld [vmem:[%s5609_s14 + $0x7d8] sm:$0xff] }
 0x256   : > { %2555 = vmatpush1.bf16.msra.mxu1 %v1401_v9  ;;  %v2221_v20 = vpop.f32.mrf.mxu0  ;;  %2515 = vmatprep.subr.bf16.mxu0 %v1266_v11  ;;  %v1225_v9 = vunpack.c.h.s8.bf16 %v577_v7  ;;  %v1353_v11 = vunpack.c.h.s8.bf16 %v641_v8  ;;  %v1458_v27 = vunpack.c.l.s8.bf16 %v698_v15 }
 0x257   : > { %v2262_v22 = vpop.f32.mrf.mxu1  ;;  %2556 = vmatprep.subr.bf16.mxu1 %v1394_v12  ;;  %v5945_v29 = vadd.f32 %v2260_v16, %v2220_v17  ;;  %v2222_v21 = vadd.f32 %v2221_v20, %v5906_v10  ;;  %2545 = vmatprep.mubr.bf16.mxu0 %v5726_v58  ;;  %v1250_v10 = vunpack.c.l.s8.bf16 %v594_v13  ;;  %v1218_v12 = vunpack.c.l.s8.bf16 %v578_v62  ;;  %v633_v20 = vld [vmem:[%s5609_s14 + $0x5d0] sm:$0xff] }
 0x258   : > { %2586 = vmatprep.mubr.bf16.mxu1 %v5736_v3  ;;  %v2223_v63 = vpop.f32.mrf.mxu0  ;;  %v1346_v13 = vunpack.c.l.s8.bf16 %v642_v0  ;;  %v1217_v16 = vunpack.c.l.s8.bf16 %v577_v7  ;;  %v1345_v17 = vunpack.c.l.s8.bf16 %v641_v8 }
 0x259   : > { %v2264_v30 = vpop.f32.mrf.mxu1  ;;  %v5950_v31 = vadd.f32 %v2262_v22, %v2222_v21  ;;  %2516 = vmatpush1.bf16.msra.mxu0 %v1265_v18  ;;  %v1338_v18 = vunpack.c.h.s8.bf16 %v634_v14  ;;  %v697_v22 = vld [vmem:[%s5609_s14 + $0x7d0] sm:$0xff]  ;;  %v626_v21 = vld [vmem:[%s5609_s14 + $0x598] sm:$0xff] }
 0x25a   : > { %2557 = vmatpush1.bf16.msra.mxu1 %v1393_v19  ;;  %v2224_v35 = vpop.f32.mrf.mxu0  ;;  %2517 = vmatprep.subr.bf16.mxu0 %v1258_v23  ;;  %v1466_v19 = vunpack.c.h.s8.bf16 %v698_v15  ;;  %v1337_v23 = vunpack.c.h.s8.bf16 %v633_v20  ;;  %v690_v63 = vld [vmem:[%s5609_s14 + $0x798] sm:$0xff]  ;;  %v1329_v30 = vunpack.c.l.s8.bf16 %v633_v20  ;;  %v1314_v43 = vunpack.c.l.s8.bf16 %v626_v21 }
 0x25b   : > { %v2265_v37 = vpop.f32.mrf.mxu1  ;;  %2558 = vmatprep.subr.bf16.mxu1 %v1386_v24  ;;  %v1465_v24 = vunpack.c.h.s8.bf16 %v697_v22  ;;  %v1450_v35 = vunpack.c.h.s8.bf16 %v690_v63 }
 0x25c   : > { %v625_v37 = vld [vmem:[%s5609_s14 + $0x590] sm:$0xff] }
 0x25d   : > { %2518 = vmatpush1.bf16.msra.mxu0 %v1257_v32  ;;  %v1457_v32 = vunpack.c.l.s8.bf16 %v697_v22 }
 0x25e   : > { %2559 = vmatpush1.bf16.msra.mxu1 %v1385_v33  ;;  %2519 = vmatprep.subr.bf16.mxu0 %v1250_v10  ;;  %v1322_v33 = vunpack.c.h.s8.bf16 %v626_v21  ;;  %v689_v10 = vld [vmem:[%s5609_s14 + $0x790] sm:$0xff] }
 0x25f   : > { %2560 = vmatprep.subr.bf16.mxu1 %v1378_v40  ;;  %v1321_v40 = vunpack.c.h.s8.bf16 %v625_v37  ;;  %v1449_v42 = vunpack.c.h.s8.bf16 %v689_v10  ;;  %v1441_v26 = vunpack.c.l.s8.bf16 %v689_v10 }
 0x261   : > { %2520 = vmatpush1.bf16.msra.mxu0 %v1249_v28  ;;  %v1442_v28 = vunpack.c.l.s8.bf16 %v690_v63 }
 0x262   : > { %2561 = vmatpush1.bf16.msra.mxu1 %v1377_v47  ;;  %2521 = vmatprep.subr.bf16.mxu0 %v1242_v48  ;;  %v618_v47 = vld [vmem:[%s5609_s14 + $0x558] sm:$0xff] }
 0x263   : > { %2562 = vmatprep.subr.bf16.mxu1 %v1370_v50  ;;  %v682_v48 = vld [vmem:[%s5609_s14 + $0x758] sm:$0xff]  ;;  %v1313_v50 = vunpack.c.l.s8.bf16 %v625_v37  ;;  %v1306_v53 = vunpack.c.h.s8.bf16 %v618_v47  ;;  %v1298_v0 = vunpack.c.l.s8.bf16 %v618_v47 }
 0x265   : > { %2522 = vmatpush1.bf16.msra.mxu0 %v1241_v54  ;;  %v1434_v54 = vunpack.c.h.s8.bf16 %v682_v48 }
 0x266   : > { %2563 = vmatpush1.bf16.msra.mxu1 %v1369_v57  ;;  %2523 = vmatprep.subr.bf16.mxu0 %v1234_v51  ;;  %v617_v57 = vld [vmem:[%s5609_s14 + $0x550] sm:$0xff] }
 0x267   : > { %2564 = vmatprep.subr.bf16.mxu1 %v1362_v61  ;;  %v681_v51 = vld [vmem:[%s5609_s14 + $0x750] sm:$0xff]  ;;  %v1305_v61 = vunpack.c.h.s8.bf16 %v617_v57 }
 0x268   : > { %v1433_v62 = vunpack.c.h.s8.bf16 %v681_v51  ;;  %v1425_v7 = vunpack.c.l.s8.bf16 %v681_v51 }
 0x269   : > { %2524 = vmatpush1.bf16.msra.mxu0 %v1233_v1  ;;  %v1426_v1 = vunpack.c.l.s8.bf16 %v682_v48 }
 0x26a   : > { %2565 = vmatpush1.bf16.msra.mxu1 %v1361_v4  ;;  %2525 = vmatprep.subr.bf16.mxu0 %v1226_v5  ;;  %v610_v4 = vld [vmem:[%s5609_s14 + $0x518] sm:$0xff] }
 0x26b   : > { %2566 = vmatprep.subr.bf16.mxu1 %v1354_v6  ;;  %v674_v5 = vld [vmem:[%s5609_s14 + $0x718] sm:$0xff]  ;;  %v1297_v6 = vunpack.c.l.s8.bf16 %v617_v57  ;;  %v1290_v8 = vunpack.c.h.s8.bf16 %v610_v4  ;;  %v1282_v15 = vunpack.c.l.s8.bf16 %v610_v4 }
 0x26d   : > { %2526 = vmatpush1.bf16.msra.mxu0 %v1225_v9  ;;  %v1418_v9 = vunpack.c.h.s8.bf16 %v674_v5 }
 0x26e   : > { %2567 = vmatpush1.bf16.msra.mxu1 %v1353_v11  ;;  %2527 = vmatprep.subr.bf16.mxu0 %v1218_v12  ;;  %v609_v11 = vld [vmem:[%s5609_s14 + $0x510] sm:$0xff] }
 0x26f   : > { %2568 = vmatprep.subr.bf16.mxu1 %v1346_v13  ;;  %v673_v12 = vld [vmem:[%s5609_s14 + $0x710] sm:$0xff]  ;;  %v1289_v13 = vunpack.c.h.s8.bf16 %v609_v11 }
 0x270   : > { %v1417_v14 = vunpack.c.h.s8.bf16 %v673_v12  ;;  %v1409_v20 = vunpack.c.l.s8.bf16 %v673_v12  ;;  %v713_v12 = vld [vmem:[%s5609_s14 + $0x850] sm:$0xff] }
 0x271   : > { %2528 = vmatpush1.bf16.msra.mxu0 %v1217_v16  ;;  %v1410_v16 = vunpack.c.l.s8.bf16 %v674_v5  ;;  %v714_v5 = vld [vmem:[%s5609_s14 + $0x858] sm:$0xff] }
 0x272   : > { %2569 = vmatpush1.bf16.msra.mxu1 %v1345_v17  ;;  %2529 = vmatprep.subr.bf16.mxu0 %v1338_v18  ;;  %v730_v17 = vld [vmem:[%s5609_s14 + $0x8d8] sm:$0xff] }
 0x273   : > { %2570 = vmatprep.subr.bf16.mxu1 %v1466_v19  ;;  %v794_v18 = vld [vmem:[%s5609_s14 + $0xad8] sm:$0xff]  ;;  %v1281_v19 = vunpack.c.l.s8.bf16 %v609_v11  ;;  %v1530_v22 = vunpack.c.h.s8.bf16 %v730_v17  ;;  %v1522_v63 = vunpack.c.l.s8.bf16 %v730_v17 }
 0x275   : > { %2530 = vmatpush2.bf16.msra.mxu0 %v1337_v23  ;;  %v1658_v23 = vunpack.c.h.s8.bf16 %v794_v18 }
 0x276   : > { %2571 = vmatpush2.bf16.msra.mxu1 %v1465_v24  ;;  %2531 = vmatprep.subr.bf16.mxu0 %v1330_v25  ;;  %v729_v24 = vld [vmem:[%s5609_s14 + $0x8d0] sm:$0xff] }
 0x277   : > { %2572 = vmatprep.subr.bf16.mxu1 %v1458_v27  ;;  %v793_v25 = vld [vmem:[%s5609_s14 + $0xad0] sm:$0xff]  ;;  %v1529_v27 = vunpack.c.h.s8.bf16 %v729_v24 }
 0x278   : > { %v1657_v21 = vunpack.c.h.s8.bf16 %v793_v25 }
 0x279   : > { %2532 = vmatpush2.bf16.msra.mxu0 %v1329_v30  ;;  %v1650_v30 = vunpack.c.l.s8.bf16 %v794_v18  ;;  %v706_v18 = vld [vmem:[%s5609_s14 + $0x818] sm:$0xff] }
 0x27a   : > { %2573 = vmatpush2.bf16.msra.mxu1 %v1457_v32  ;;  %2533 = vmatprep.subr.bf16.mxu0 %v1322_v33  ;;  %v722_v32 = vld [vmem:[%s5609_s14 + $0x898] sm:$0xff] }
 0x27b   : > { %2574 = vmatprep.subr.bf16.mxu1 %v1450_v35  ;;  %v786_v33 = vld [vmem:[%s5609_s14 + $0xa98] sm:$0xff]  ;;  %v1514_v47 = vunpack.c.h.s8.bf16 %v722_v32 }
 0x27c   : > { %v1642_v48 = vunpack.c.h.s8.bf16 %v786_v33  ;;  %v1634_v4 = vunpack.c.l.s8.bf16 %v786_v33  ;;  %v762_v33 = vld [vmem:[%s5609_s14 + $0x9d8] sm:$0xff] }
 0x27d   : > { %2534 = vmatpush2.bf16.msra.mxu0 %v1321_v40  ;;  %v1521_v40 = vunpack.c.l.s8.bf16 %v729_v24 }
 0x27e   : > { %2575 = vmatpush2.bf16.msra.mxu1 %v1449_v42  ;;  %2535 = vmatprep.subr.bf16.mxu0 %v1314_v43  ;;  %v1649_v42 = vunpack.c.l.s8.bf16 %v793_v25  ;;  %v705_v25 = vld [vmem:[%s5609_s14 + $0x810] sm:$0xff] }
 0x27f   : > { %2576 = vmatprep.subr.bf16.mxu1 %v1442_v28 }
 0x281   : > { %2536 = vmatpush2.bf16.msra.mxu0 %v1313_v50  ;;  %v721_v50 = vld [vmem:[%s5609_s14 + $0x890] sm:$0xff] }
 0x282   : > { %2577 = vmatpush2.bf16.msra.mxu1 %v1441_v26  ;;  %2537 = vmatprep.subr.bf16.mxu0 %v1306_v53  ;;  %v785_v26 = vld [vmem:[%s5609_s14 + $0xa90] sm:$0xff] }
 0x283   : > { %2578 = vmatprep.subr.bf16.mxu1 %v1434_v54 }
 0x285   : > { %2538 = vmatpush2.bf16.msra.mxu0 %v1305_v61  ;;  %v1513_v61 = vunpack.c.h.s8.bf16 %v721_v50 }
 0x286   : > { %2579 = vmatpush2.bf16.msra.mxu1 %v1433_v62  ;;  %2539 = vmatprep.subr.bf16.mxu0 %v1298_v0  ;;  %v1641_v62 = vunpack.c.h.s8.bf16 %v785_v26 }
 0x287   : > { %2580 = vmatprep.subr.bf16.mxu1 %v1426_v1 }
 0x289   : > { %2540 = vmatpush2.bf16.msra.mxu0 %v1297_v6  ;;  %v778_v6 = vld [vmem:[%s5609_s14 + $0xa58] sm:$0xff] }
 0x28a   : > { %2581 = vmatpush2.bf16.msra.mxu1 %v1425_v7  ;;  %2541 = vmatprep.subr.bf16.mxu0 %v1290_v8  ;;  %v1505_v7 = vunpack.c.l.s8.bf16 %v721_v50  ;;  %v1633_v8 = vunpack.c.l.s8.bf16 %v785_v26  ;;  %v1626_v11 = vunpack.c.h.s8.bf16 %v778_v6  ;;  %v1618_v17 = vunpack.c.l.s8.bf16 %v778_v6 }
 0x28b   : > { %2582 = vmatprep.subr.bf16.mxu1 %v1418_v9  ;;  %v1498_v9 = vunpack.c.h.s8.bf16 %v714_v5  ;;  %v1586_v50 = vunpack.c.l.s8.bf16 %v762_v33 }
 0x28d   : > { %2542 = vmatpush2.bf16.msra.mxu0 %v1289_v13  ;;  %v777_v13 = vld [vmem:[%s5609_s14 + $0xa50] sm:$0xff] }
 0x28e   : > { %2583 = vmatpush2.bf16.msra.mxu1 %v1417_v14  ;;  %2543 = vmatprep.subr.bf16.mxu0 %v1282_v15  ;;  %v1497_v14 = vunpack.c.h.s8.bf16 %v713_v12  ;;  %v1625_v15 = vunpack.c.h.s8.bf16 %v777_v13 }
 0x28f   : > { %2584 = vmatprep.subr.bf16.mxu1 %v1410_v16  ;;  %v1490_v16 = vunpack.c.l.s8.bf16 %v714_v5 }
 0x291   : > { %2544 = vmatpush2.bf16.msra.mxu0 %v1281_v19  ;;  %v770_v19 = vld [vmem:[%s5609_s14 + $0xa18] sm:$0xff] }
 0x292   : > { %2585 = vmatpush2.bf16.msra.mxu1 %v1409_v20  ;;  %2595 = vmatprep.subr.bf16.mxu0 %v1530_v22  ;;  %v1489_v20 = vunpack.c.l.s8.bf16 %v713_v12  ;;  %v1617_v22 = vunpack.c.l.s8.bf16 %v777_v13  ;;  %v1610_v24 = vunpack.c.h.s8.bf16 %v770_v19 }
 0x293   : > { %2636 = vmatprep.subr.bf16.mxu1 %v1658_v23  ;;  %v1482_v23 = vunpack.c.h.s8.bf16 %v706_v18 }
 0x294   : > { %v2301_v35 = vpop.f32.mrf.mxu0  ;;  %2546 = vmatmul.mubr.bf16.vlgmr.msra.gmra.mxu0 %v5781_v36 }
 0x295   : > { %v2342_v37 = vpop.f32.mrf.mxu1  ;;  %2587 = vmatmul.mubr.bf16.vlgmr.msra.gmra.mxu1 %v5790_v46  ;;  %v2302_v10 = vadd.f32 %v2301_v35, %v5945_v29  ;;  %2596 = vmatpush1.bf16.msra.mxu0 %v1529_v27  ;;  %v769_v27 = vld [vmem:[%s5609_s14 + $0xa10] sm:$0xff]  ;;  %v826_v35 = vld [vmem:[%s5609_s14 + $0xbd8] sm:$0xff] }
 0x296   : > { %2637 = vmatpush1.bf16.msra.mxu1 %v1657_v21  ;;  %v2303_v43 = vpop.f32.mrf.mxu0  ;;  %2597 = vmatprep.subr.bf16.mxu0 %v1522_v63  ;;  %v1481_v21 = vunpack.c.h.s8.bf16 %v705_v25  ;;  %v1609_v63 = vunpack.c.h.s8.bf16 %v769_v27  ;;  %v1714_v26 = vunpack.c.l.s8.bf16 %v826_v35 }
 0x297   : > { %v2344_v28 = vpop.f32.mrf.mxu1  ;;  %2638 = vmatprep.subr.bf16.mxu1 %v1650_v30  ;;  %v5987_v53 = vadd.f32 %v2342_v37, %v2302_v10  ;;  %v2304_v54 = vadd.f32 %v2303_v43, %v5950_v31  ;;  %2627 = vmatprep.mubr.bf16.mxu0 %v5786_v45  ;;  %v1506_v31 = vunpack.c.l.s8.bf16 %v722_v32  ;;  %v1474_v30 = vunpack.c.l.s8.bf16 %v706_v18  ;;  %v761_v43 = vld [vmem:[%s5609_s14 + $0x9d0] sm:$0xff] }
 0x298   : > { %2668 = vmatprep.mubr.bf16.mxu1 %v5796_v55  ;;  %v2305_v29 = vpop.f32.mrf.mxu0  ;;  %v1602_v32 = vunpack.c.l.s8.bf16 %v770_v19  ;;  %v1473_v37 = vunpack.c.l.s8.bf16 %v705_v25  ;;  %v1601_v10 = vunpack.c.l.s8.bf16 %v769_v27 }
 0x299   : > { %v2346_v57 = vpop.f32.mrf.mxu1  ;;  %v5992_v51 = vadd.f32 %v2344_v28, %v2304_v54  ;;  %2598 = vmatpush1.bf16.msra.mxu0 %v1521_v40  ;;  %v1594_v40 = vunpack.c.h.s8.bf16 %v762_v33  ;;  %v825_v28 = vld [vmem:[%s5609_s14 + $0xbd0] sm:$0xff]  ;;  %v754_v54 = vld [vmem:[%s5609_s14 + $0x998] sm:$0xff] }
 0x29a   : > { %2639 = vmatpush1.bf16.msra.mxu1 %v1649_v42  ;;  %v2306_v0 = vpop.f32.mrf.mxu0  ;;  %2599 = vmatprep.subr.bf16.mxu0 %v1514_v47  ;;  %v1722_v42 = vunpack.c.h.s8.bf16 %v826_v35  ;;  %v1593_v47 = vunpack.c.h.s8.bf16 %v761_v43  ;;  %v818_v29 = vld [vmem:[%s5609_s14 + $0xb98] sm:$0xff]  ;;  %v1585_v57 = vunpack.c.l.s8.bf16 %v761_v43  ;;  %v1570_v6 = vunpack.c.l.s8.bf16 %v754_v54 }
 0x29b   : > { %v2347_v1 = vpop.f32.mrf.mxu1  ;;  %2640 = vmatprep.subr.bf16.mxu1 %v1642_v48  ;;  %v1721_v48 = vunpack.c.h.s8.bf16 %v825_v28  ;;  %v1706_v0 = vunpack.c.h.s8.bf16 %v818_v29 }
 0x29c   : > { %v753_v1 = vld [vmem:[%s5609_s14 + $0x990] sm:$0xff] }
 0x29d   : > { %2600 = vmatpush1.bf16.msra.mxu0 %v1513_v61  ;;  %v1713_v61 = vunpack.c.l.s8.bf16 %v825_v28 }
 0x29e   : > { %2641 = vmatpush1.bf16.msra.mxu1 %v1641_v62  ;;  %2601 = vmatprep.subr.bf16.mxu0 %v1506_v31  ;;  %v1578_v62 = vunpack.c.h.s8.bf16 %v754_v54  ;;  %v817_v31 = vld [vmem:[%s5609_s14 + $0xb90] sm:$0xff] }
 0x29f   : > { %2642 = vmatprep.subr.bf16.mxu1 %v1634_v4  ;;  %v1577_v4 = vunpack.c.h.s8.bf16 %v753_v1  ;;  %v1705_v5 = vunpack.c.h.s8.bf16 %v817_v31  ;;  %v1697_v12 = vunpack.c.l.s8.bf16 %v817_v31 }
 0x2a1   : > { %2602 = vmatpush1.bf16.msra.mxu0 %v1505_v7  ;;  %v1698_v7 = vunpack.c.l.s8.bf16 %v818_v29 }
 0x2a2   : > { %2643 = vmatpush1.bf16.msra.mxu1 %v1633_v8  ;;  %2603 = vmatprep.subr.bf16.mxu0 %v1498_v9  ;;  %v746_v8 = vld [vmem:[%s5609_s14 + $0x958] sm:$0xff] }
 0x2a3   : > { %2644 = vmatprep.subr.bf16.mxu1 %v1626_v11  ;;  %v810_v9 = vld [vmem:[%s5609_s14 + $0xb58] sm:$0xff]  ;;  %v1569_v11 = vunpack.c.l.s8.bf16 %v753_v1  ;;  %v1562_v13 = vunpack.c.h.s8.bf16 %v746_v8  ;;  %v1554_v19 = vunpack.c.l.s8.bf16 %v746_v8 }
 0x2a5   : > { %2604 = vmatpush1.bf16.msra.mxu0 %v1497_v14  ;;  %v1690_v14 = vunpack.c.h.s8.bf16 %v810_v9 }
 0x2a6   : > { %2645 = vmatpush1.bf16.msra.mxu1 %v1625_v15  ;;  %2605 = vmatprep.subr.bf16.mxu0 %v1490_v16  ;;  %v745_v15 = vld [vmem:[%s5609_s14 + $0x950] sm:$0xff] }
 0x2a7   : > { %2646 = vmatprep.subr.bf16.mxu1 %v1618_v17  ;;  %v809_v16 = vld [vmem:[%s5609_s14 + $0xb50] sm:$0xff]  ;;  %v1561_v17 = vunpack.c.h.s8.bf16 %v745_v15 }
 0x2a8   : > { %v1689_v18 = vunpack.c.h.s8.bf16 %v809_v16  ;;  %v1681_v25 = vunpack.c.l.s8.bf16 %v809_v16 }
 0x2a9   : > { %2606 = vmatpush1.bf16.msra.mxu0 %v1489_v20  ;;  %v1682_v20 = vunpack.c.l.s8.bf16 %v810_v9 }
 0x2aa   : > { %2647 = vmatpush1.bf16.msra.mxu1 %v1617_v22  ;;  %2607 = vmatprep.subr.bf16.mxu0 %v1482_v23  ;;  %v738_v22 = vld [vmem:[%s5609_s14 + $0x918] sm:$0xff] }
 0x2ab   : > { %2648 = vmatprep.subr.bf16.mxu1 %v1610_v24  ;;  %v802_v23 = vld [vmem:[%s5609_s14 + $0xb18] sm:$0xff]  ;;  %v1553_v24 = vunpack.c.l.s8.bf16 %v745_v15  ;;  %v1546_v27 = vunpack.c.h.s8.bf16 %v738_v22  ;;  %v1538_v35 = vunpack.c.l.s8.bf16 %v738_v22 }
 0x2ad   : > { %2608 = vmatpush1.bf16.msra.mxu0 %v1481_v21  ;;  %v1674_v21 = vunpack.c.h.s8.bf16 %v802_v23 }
 0x2ae   : > { %2649 = vmatpush1.bf16.msra.mxu1 %v1609_v63  ;;  %2609 = vmatprep.subr.bf16.mxu0 %v1474_v30  ;;  %v737_v63 = vld [vmem:[%s5609_s14 + $0x910] sm:$0xff] }
 0x2af   : > { %2650 = vmatprep.subr.bf16.mxu1 %v1602_v32  ;;  %v801_v30 = vld [vmem:[%s5609_s14 + $0xb10] sm:$0xff]  ;;  %v1545_v32 = vunpack.c.h.s8.bf16 %v737_v63 }
 0x2b0   : > { %v1673_v33 = vunpack.c.h.s8.bf16 %v801_v30  ;;  %v1665_v43 = vunpack.c.l.s8.bf16 %v801_v30 }
 0x2b1   : > { %2610 = vmatpush1.bf16.msra.mxu0 %v1473_v37  ;;  %v1666_v37 = vunpack.c.l.s8.bf16 %v802_v23 }
 0x2b2   : > { %2651 = vmatpush1.bf16.msra.mxu1 %v1601_v10  ;;  %2611 = vmatprep.subr.bf16.mxu0 %v1594_v40  ;;  %v858_v10 = vld [vmem:[%s5609_s14 + $0xcd8] sm:$0xff] }
 0x2b3   : > { %2652 = vmatprep.subr.bf16.mxu1 %v1722_v42  ;;  %v922_v40 = vld [vmem:[%s5609_s14 + $0xed8] sm:$0xff]  ;;  %v1537_v42 = vunpack.c.l.s8.bf16 %v737_v63  ;;  %v1786_v28 = vunpack.c.h.s8.bf16 %v858_v10  ;;  %v1778_v29 = vunpack.c.l.s8.bf16 %v858_v10 }
 0x2b5   : > { %2612 = vmatpush2.bf16.msra.mxu0 %v1593_v47  ;;  %v1914_v47 = vunpack.c.h.s8.bf16 %v922_v40 }
 0x2b6   : > { %2653 = vmatpush2.bf16.msra.mxu1 %v1721_v48  ;;  %2613 = vmatprep.subr.bf16.mxu0 %v1586_v50  ;;  %v857_v48 = vld [vmem:[%s5609_s14 + $0xcd0] sm:$0xff] }
 0x2b7   : > { %2654 = vmatprep.subr.bf16.mxu1 %v1714_v26  ;;  %v921_v50 = vld [vmem:[%s5609_s14 + $0xed0] sm:$0xff]  ;;  %v1785_v26 = vunpack.c.h.s8.bf16 %v857_v48 }
 0x2b8   : > { %v1913_v54 = vunpack.c.h.s8.bf16 %v921_v50 }
 0x2b9   : > { %2614 = vmatpush2.bf16.msra.mxu0 %v1585_v57  ;;  %v1906_v57 = vunpack.c.l.s8.bf16 %v922_v40 }
 0x2ba   : > { %2655 = vmatpush2.bf16.msra.mxu1 %v1713_v61  ;;  %2615 = vmatprep.subr.bf16.mxu0 %v1578_v62  ;;  %v850_v61 = vld [vmem:[%s5609_s14 + $0xc98] sm:$0xff] }
 0x2bb   : > { %2656 = vmatprep.subr.bf16.mxu1 %v1706_v0  ;;  %v914_v62 = vld [vmem:[%s5609_s14 + $0xe98] sm:$0xff]  ;;  %v1770_v8 = vunpack.c.h.s8.bf16 %v850_v61 }
 0x2bc   : > { %v1898_v9 = vunpack.c.h.s8.bf16 %v914_v62  ;;  %v1890_v22 = vunpack.c.l.s8.bf16 %v914_v62 }
 0x2bd   : > { %2616 = vmatpush2.bf16.msra.mxu0 %v1577_v4  ;;  %v1777_v4 = vunpack.c.l.s8.bf16 %v857_v48 }
 0x2be   : > { %2657 = vmatpush2.bf16.msra.mxu1 %v1705_v5  ;;  %2617 = vmatprep.subr.bf16.mxu0 %v1570_v6  ;;  %v1905_v5 = vunpack.c.l.s8.bf16 %v921_v50 }
 0x2bf   : > { %2658 = vmatprep.subr.bf16.mxu1 %v1698_v7 }
 0x2c1   : > { %2618 = vmatpush2.bf16.msra.mxu0 %v1569_v11  ;;  %v849_v11 = vld [vmem:[%s5609_s14 + $0xc90] sm:$0xff] }
 0x2c2   : > { %2659 = vmatpush2.bf16.msra.mxu1 %v1697_v12  ;;  %2619 = vmatprep.subr.bf16.mxu0 %v1562_v13  ;;  %v913_v12 = vld [vmem:[%s5609_s14 + $0xe90] sm:$0xff] }
 0x2c3   : > { %2660 = vmatprep.subr.bf16.mxu1 %v1690_v14 }
 0x2c5   : > { %2620 = vmatpush2.bf16.msra.mxu0 %v1561_v17  ;;  %v1769_v17 = vunpack.c.h.s8.bf16 %v849_v11 }
 0x2c6   : > { %2661 = vmatpush2.bf16.msra.mxu1 %v1689_v18  ;;  %2621 = vmatprep.subr.bf16.mxu0 %v1554_v19  ;;  %v1897_v18 = vunpack.c.h.s8.bf16 %v913_v12 }
 0x2c7   : > { %2662 = vmatprep.subr.bf16.mxu1 %v1682_v20 }
 0x2c9   : > { %2622 = vmatpush2.bf16.msra.mxu0 %v1553_v24  ;;  %v842_v24 = vld [vmem:[%s5609_s14 + $0xc58] sm:$0xff] }
 0x2ca   : > { %2663 = vmatpush2.bf16.msra.mxu1 %v1681_v25  ;;  %2623 = vmatprep.subr.bf16.mxu0 %v1546_v27  ;;  %v906_v25 = vld [vmem:[%s5609_s14 + $0xe58] sm:$0xff]  ;;  %v1761_v27 = vunpack.c.l.s8.bf16 %v849_v11  ;;  %v1754_v63 = vunpack.c.h.s8.bf16 %v842_v24  ;;  %v1746_v10 = vunpack.c.l.s8.bf16 %v842_v24 }
 0x2cb   : > { %2664 = vmatprep.subr.bf16.mxu1 %v1674_v21  ;;  %v1889_v21 = vunpack.c.l.s8.bf16 %v913_v12  ;;  %v1882_v30 = vunpack.c.h.s8.bf16 %v906_v25  ;;  %v1874_v40 = vunpack.c.l.s8.bf16 %v906_v25 }
 0x2cd   : > { %2624 = vmatpush2.bf16.msra.mxu0 %v1545_v32  ;;  %v841_v32 = vld [vmem:[%s5609_s14 + $0xc50] sm:$0xff] }
 0x2ce   : > { %2665 = vmatpush2.bf16.msra.mxu1 %v1673_v33  ;;  %2625 = vmatprep.subr.bf16.mxu0 %v1538_v35  ;;  %v905_v33 = vld [vmem:[%s5609_s14 + $0xe50] sm:$0xff]  ;;  %v1753_v35 = vunpack.c.h.s8.bf16 %v841_v32 }
 0x2cf   : > { %2666 = vmatprep.subr.bf16.mxu1 %v1666_v37  ;;  %v1881_v37 = vunpack.c.h.s8.bf16 %v905_v33 }
 0x2d1   : > { %2626 = vmatpush2.bf16.msra.mxu0 %v1537_v42  ;;  %v834_v42 = vld [vmem:[%s5609_s14 + $0xc18] sm:$0xff] }
 0x2d2   : > { %2667 = vmatpush2.bf16.msra.mxu1 %v1665_v43  ;;  %2677 = vmatprep.subr.bf16.mxu0 %v1786_v28  ;;  %v898_v43 = vld [vmem:[%s5609_s14 + $0xe18] sm:$0xff]  ;;  %v1745_v28 = vunpack.c.l.s8.bf16 %v841_v32  ;;  %v1738_v48 = vunpack.c.h.s8.bf16 %v834_v42 }
 0x2d3   : > { %2718 = vmatprep.subr.bf16.mxu1 %v1914_v47  ;;  %v1873_v47 = vunpack.c.l.s8.bf16 %v905_v33  ;;  %v1866_v50 = vunpack.c.h.s8.bf16 %v898_v43  ;;  %v1858_v62 = vunpack.c.l.s8.bf16 %v898_v43 }
 0x2d4   : > { %v2383_v0 = vpop.f32.mrf.mxu0  ;;  %2628 = vmatmul.mubr.bf16.vlgmr.msra.gmra.mxu0 %v5839_v34 }
 0x2d5   : > { %v2424_v1 = vpop.f32.mrf.mxu1  ;;  %2669 = vmatmul.mubr.bf16.vlgmr.msra.gmra.mxu1 %v5848_v41  ;;  %v2384_v31 = vadd.f32 %v2383_v0, %v5987_v53  ;;  %2678 = vmatpush1.bf16.msra.mxu0 %v1785_v26  ;;  %v833_v26 = vld [vmem:[%s5609_s14 + $0xc10] sm:$0xff]  ;;  %v890_v0 = vld [vmem:[%s5609_s14 + $0xdd8] sm:$0xff] }
 0x2d6   : > { %2719 = vmatpush1.bf16.msra.mxu1 %v1913_v54  ;;  %v2385_v6 = vpop.f32.mrf.mxu0  ;;  %2679 = vmatprep.subr.bf16.mxu0 %v1778_v29  ;;  %v897_v54 = vld [vmem:[%s5609_s14 + $0xe10] sm:$0xff]  ;;  %v1737_v29 = vunpack.c.h.s8.bf16 %v833_v26  ;;  %v1842_v12 = vunpack.c.l.s8.bf16 %v890_v0 }
 0x2d7   : > { %v2426_v7 = vpop.f32.mrf.mxu1  ;;  %2720 = vmatprep.subr.bf16.mxu1 %v1906_v57  ;;  %v6029_v13 = vadd.f32 %v2424_v1, %v2384_v31  ;;  %v2386_v14 = vadd.f32 %v2385_v6, %v5992_v51  ;;  %2709 = vmatprep.mubr.bf16.mxu0 %v5844_v44  ;;  %v1762_v51 = vunpack.c.l.s8.bf16 %v850_v61  ;;  %v1865_v57 = vunpack.c.h.s8.bf16 %v897_v54  ;;  %v954_v1 = vld [vmem:[%s5609_s14 + $0xfd8] sm:$0xff] }
 0x2d8   : > { %2750 = vmatprep.mubr.bf16.mxu1 %v5854_v56  ;;  %v2387_v53 = vpop.f32.mrf.mxu0  ;;  %v1730_v61 = vunpack.c.l.s8.bf16 %v834_v42  ;;  %v1729_v31 = vunpack.c.l.s8.bf16 %v833_v26  ;;  %v1978_v6 = vunpack.c.h.s8.bf16 %v954_v1 }
 0x2d9   : > { %v2428_v15 = vpop.f32.mrf.mxu1  ;;  %v6034_v16 = vadd.f32 %v2426_v7, %v2386_v14  ;;  %2680 = vmatpush1.bf16.msra.mxu0 %v1777_v4  ;;  %v1857_v4 = vunpack.c.l.s8.bf16 %v897_v54  ;;  %v889_v7 = vld [vmem:[%s5609_s14 + $0xdd0] sm:$0xff]  ;;  %v1970_v14 = vunpack.c.l.s8.bf16 %v954_v1  ;;  %v882_v53 = vld [vmem:[%s5609_s14 + $0xd98] sm:$0xff] }
 0x2da   : > { %2721 = vmatpush1.bf16.msra.mxu1 %v1905_v5  ;;  %v2388_v19 = vpop.f32.mrf.mxu0  ;;  %2681 = vmatprep.subr.bf16.mxu0 %v1770_v8  ;;  %v1850_v5 = vunpack.c.h.s8.bf16 %v890_v0  ;;  %v953_v8 = vld [vmem:[%s5609_s14 + $0xfd0] sm:$0xff]  ;;  %v946_v15 = vld [vmem:[%s5609_s14 + $0xf98] sm:$0xff] }
 0x2db   : > { %v2429_v20 = vpop.f32.mrf.mxu1  ;;  %2722 = vmatprep.subr.bf16.mxu1 %v1898_v9  ;;  %v3423_v23 = vcombine.low %v6029_v13, %v6034_v16  ;;  %v1849_v9 = vunpack.c.h.s8.bf16 %v889_v7  ;;  %v1977_v11 = vunpack.c.h.s8.bf16 %v953_v8  ;;  %v1834_v19 = vunpack.c.h.s8.bf16 %v882_v53 }
 0x2dc   : > { %v1962_v20 = vunpack.c.h.s8.bf16 %v946_v15 }
 0x2dd   : > { %2682 = vmatpush1.bf16.msra.mxu0 %v1769_v17  ;;  %v1841_v17 = vunpack.c.l.s8.bf16 %v889_v7 }
 0x2de   : > { %2723 = vmatpush1.bf16.msra.mxu1 %v1897_v18  ;;  %2683 = vmatprep.subr.bf16.mxu0 %v1762_v51  ;;  %v1969_v18 = vunpack.c.l.s8.bf16 %v953_v8  ;;  %v881_v51 = vld [vmem:[%s5609_s14 + $0xd90] sm:$0xff] }
 0x2df   : > { %2724 = vmatprep.subr.bf16.mxu1 %v1890_v22  ;;  %v945_v22 = vld [vmem:[%s5609_s14 + $0xf90] sm:$0xff]  ;;  %v1833_v24 = vunpack.c.h.s8.bf16 %v881_v51  ;;  %v1825_v32 = vunpack.c.l.s8.bf16 %v881_v51 }
 0x2e0   : > { %v1961_v25 = vunpack.c.h.s8.bf16 %v945_v22  ;;  %v1953_v33 = vunpack.c.l.s8.bf16 %v945_v22 }
 0x2e1   : > { %2684 = vmatpush1.bf16.msra.mxu0 %v1761_v27  ;;  %v1826_v27 = vunpack.c.l.s8.bf16 %v882_v53 }
 0x2e2   : > { %2725 = vmatpush1.bf16.msra.mxu1 %v1889_v21  ;;  %2685 = vmatprep.subr.bf16.mxu0 %v1754_v63  ;;  %v1954_v21 = vunpack.c.l.s8.bf16 %v946_v15  ;;  %v874_v63 = vld [vmem:[%s5609_s14 + $0xd58] sm:$0xff] }
 0x2e3   : > { %2726 = vmatprep.subr.bf16.mxu1 %v1882_v30  ;;  %v938_v30 = vld [vmem:[%s5609_s14 + $0xf58] sm:$0xff] }
 0x2e5   : > { %2686 = vmatpush1.bf16.msra.mxu0 %v1753_v35  ;;  %v1818_v35 = vunpack.c.h.s8.bf16 %v874_v63 }
 0x2e6   : > { %2727 = vmatpush1.bf16.msra.mxu1 %v1881_v37  ;;  %2687 = vmatprep.subr.bf16.mxu0 %v1746_v10  ;;  %v1946_v37 = vunpack.c.h.s8.bf16 %v938_v30  ;;  %v873_v10 = vld [vmem:[%s5609_s14 + $0xd50] sm:$0xff] }
 0x2e7   : > { %2728 = vmatprep.subr.bf16.mxu1 %v1874_v40  ;;  %v937_v40 = vld [vmem:[%s5609_s14 + $0xf50] sm:$0xff]  ;;  %v1817_v42 = vunpack.c.h.s8.bf16 %v873_v10  ;;  %v1809_v26 = vunpack.c.l.s8.bf16 %v873_v10 }
 0x2e8   : > { %v1945_v43 = vunpack.c.h.s8.bf16 %v937_v40  ;;  %v1937_v54 = vunpack.c.l.s8.bf16 %v937_v40 }
 0x2e9   : > { %2688 = vmatpush1.bf16.msra.mxu0 %v1745_v28  ;;  %v1810_v28 = vunpack.c.l.s8.bf16 %v874_v63 }
 0x2ea   : > { %2729 = vmatpush1.bf16.msra.mxu1 %v1873_v47  ;;  %2689 = vmatprep.subr.bf16.mxu0 %v1738_v48  ;;  %v1938_v47 = vunpack.c.l.s8.bf16 %v938_v30  ;;  %v866_v48 = vld [vmem:[%s5609_s14 + $0xd18] sm:$0xff] }
 0x2eb   : > { %2730 = vmatprep.subr.bf16.mxu1 %v1866_v50  ;;  %v930_v50 = vld [vmem:[%s5609_s14 + $0xf18] sm:$0xff] }
 0x2ed   : > { %2690 = vmatpush1.bf16.msra.mxu0 %v1737_v29  ;;  %v1802_v29 = vunpack.c.h.s8.bf16 %v866_v48 }
 0x2ee   : > { %2731 = vmatpush1.bf16.msra.mxu1 %v1865_v57  ;;  %2691 = vmatprep.subr.bf16.mxu0 %v1730_v61  ;;  %v1930_v57 = vunpack.c.h.s8.bf16 %v930_v50  ;;  %v865_v61 = vld [vmem:[%s5609_s14 + $0xd10] sm:$0xff] }
 0x2ef   : > { %2732 = vmatprep.subr.bf16.mxu1 %v1858_v62  ;;  %v929_v62 = vld [vmem:[%s5609_s14 + $0xf10] sm:$0xff]  ;;  %v1801_v0 = vunpack.c.h.s8.bf16 %v865_v61  ;;  %v1793_v7 = vunpack.c.l.s8.bf16 %v865_v61 }
 0x2f0   : > { %v1929_v1 = vunpack.c.h.s8.bf16 %v929_v62  ;;  %v1921_v8 = vunpack.c.l.s8.bf16 %v929_v62 }
 0x2f1   : > { %2692 = vmatpush1.bf16.msra.mxu0 %v1729_v31  ;;  %v1794_v31 = vunpack.c.l.s8.bf16 %v866_v48 }
 0x2f2   : > { %2733 = vmatpush1.bf16.msra.mxu1 %v1857_v4  ;;  %2693 = vmatprep.subr.bf16.mxu0 %v1850_v5  ;;  %v1922_v4 = vunpack.c.l.s8.bf16 %v930_v50  ;;  %v476_v5 = vld [vmem:[%s5609_s14 + $0xe8] sm:$0xff] }
 0x2f3   : > { %2734 = vmatprep.subr.bf16.mxu1 %v1978_v6  ;;  %v540_v6 = vld [vmem:[%s5609_s14 + $0x2e8] sm:$0xff] }
 0x2f5   : > { %2694 = vmatpush2.bf16.msra.mxu0 %v1849_v9  ;;  %v1020_v9 = vunpack.c.h.s8.bf16 %v476_v5 }
 0x2f6   : > { %2735 = vmatpush2.bf16.msra.mxu1 %v1977_v11  ;;  %2695 = vmatprep.subr.bf16.mxu0 %v1842_v12  ;;  %v1148_v11 = vunpack.c.h.s8.bf16 %v540_v6  ;;  %v475_v12 = vld [vmem:[%s5609_s14 + $0xe0] sm:$0xff] }
 0x2f7   : > { %2736 = vmatprep.subr.bf16.mxu1 %v1970_v14  ;;  %v539_v14 = vld [vmem:[%s5609_s14 + $0x2e0] sm:$0xff]  ;;  %v1019_v53 = vunpack.c.h.s8.bf16 %v475_v12 }
 0x2f8   : > { %v1147_v15 = vunpack.c.h.s8.bf16 %v539_v14 }
 0x2f9   : > { %2696 = vmatpush2.bf16.msra.mxu0 %v1841_v17  ;;  %v1012_v17 = vunpack.c.l.s8.bf16 %v476_v5 }
 0x2fa   : > { %2737 = vmatpush2.bf16.msra.mxu1 %v1969_v18  ;;  %2697 = vmatprep.subr.bf16.mxu0 %v1834_v19  ;;  %v1140_v18 = vunpack.c.l.s8.bf16 %v540_v6  ;;  %v468_v19 = vld [vmem:[%s5609_s14 + $0xa8] sm:$0xff] }
 0x2fb   : > { %2738 = vmatprep.subr.bf16.mxu1 %v1962_v20  ;;  %v532_v20 = vld [vmem:[%s5609_s14 + $0x2a8] sm:$0xff]  ;;  %v1004_v30 = vunpack.c.h.s8.bf16 %v468_v19  ;;  %v996_v48 = vunpack.c.l.s8.bf16 %v468_v19 }
 0x2fc   : > { %v1124_v50 = vunpack.c.l.s8.bf16 %v532_v20 }
 0x2fd   : > { %2698 = vmatpush2.bf16.msra.mxu0 %v1833_v24 }
 0x2fe   : > { %2739 = vmatpush2.bf16.msra.mxu1 %v1961_v25  ;;  %2699 = vmatprep.subr.bf16.mxu0 %v1826_v27  ;;  %v1011_v25 = vunpack.c.l.s8.bf16 %v475_v12  ;;  %v1139_v27 = vunpack.c.l.s8.bf16 %v539_v14 }
 0x2ff   : > { %2740 = vmatprep.subr.bf16.mxu1 %v1954_v21 }
 0x301   : > { %2700 = vmatpush2.bf16.msra.mxu0 %v1825_v32  ;;  %v1132_v32 = vunpack.c.h.s8.bf16 %v532_v20 }
 0x302   : > { %2741 = vmatpush2.bf16.msra.mxu1 %v1953_v33  ;;  %2701 = vmatprep.subr.bf16.mxu0 %v1818_v35  ;;  %v467_v33 = vld [vmem:[%s5609_s14 + $0xa0] sm:$0xff] }
 0x303   : > { %2742 = vmatprep.subr.bf16.mxu1 %v1946_v37  ;;  %v531_v35 = vld [vmem:[%s5609_s14 + $0x2a0] sm:$0xff] }
 0x305   : > { %2702 = vmatpush2.bf16.msra.mxu0 %v1817_v42  ;;  %v1003_v42 = vunpack.c.h.s8.bf16 %v467_v33 }
 0x306   : > { %2743 = vmatpush2.bf16.msra.mxu1 %v1945_v43  ;;  %2703 = vmatprep.subr.bf16.mxu0 %v1810_v28  ;;  %v1131_v43 = vunpack.c.h.s8.bf16 %v531_v35 }
 0x307   : > { %2744 = vmatprep.subr.bf16.mxu1 %v1938_v47 }
 0x309   : > { %2704 = vmatpush2.bf16.msra.mxu0 %v1809_v26  ;;  %v460_v26 = vld [vmem:[%s5609_s14 + $0x68] sm:$0xff] }
 0x30a   : > { %2745 = vmatpush2.bf16.msra.mxu1 %v1937_v54  ;;  %2705 = vmatprep.subr.bf16.mxu0 %v1802_v29  ;;  %v524_v54 = vld [vmem:[%s5609_s14 + $0x268] sm:$0xff]  ;;  %v995_v29 = vunpack.c.l.s8.bf16 %v467_v33  ;;  %v988_v61 = vunpack.c.h.s8.bf16 %v460_v26  ;;  %v980_v5 = vunpack.c.l.s8.bf16 %v460_v26  ;;  %v499_v26 = vld [vmem:[%s5609_s14 + $0x1a0] sm:$0xff] }
 0x30b   : > { %2746 = vmatprep.subr.bf16.mxu1 %v1930_v57  ;;  %v1123_v57 = vunpack.c.l.s8.bf16 %v531_v35  ;;  %v1116_v62 = vunpack.c.h.s8.bf16 %v524_v54  ;;  %v1108_v6 = vunpack.c.l.s8.bf16 %v524_v54  ;;  %v563_v54 = vld [vmem:[%s5609_s14 + $0x3a0] sm:$0xff] }
 0x30d   : > { %2706 = vmatpush2.bf16.msra.mxu0 %v1801_v0  ;;  %v459_v0 = vld [vmem:[%s5609_s14 + $0x60] sm:$0xff] }
 0x30e   : > { %2747 = vmatpush2.bf16.msra.mxu1 %v1929_v1  ;;  %2707 = vmatprep.subr.bf16.mxu0 %v1794_v31  ;;  %v523_v1 = vld [vmem:[%s5609_s14 + $0x260] sm:$0xff]  ;;  %v987_v31 = vunpack.c.h.s8.bf16 %v459_v0 }
 0x30f   : > { %2748 = vmatprep.subr.bf16.mxu1 %v1922_v4  ;;  %v1115_v4 = vunpack.c.h.s8.bf16 %v523_v1 }
 0x311   : > { %2708 = vmatpush2.bf16.msra.mxu0 %v1793_v7  ;;  %v452_v7 = vld [vmem:[%s5609_s14 + $0x28] sm:$0xff] }
 0x312   : > { %2749 = vmatpush2.bf16.msra.mxu1 %v1921_v8  ;;  %2759 = vmatprep.subr.bf16.mxu0 %v1020_v9  ;;  %v516_v8 = vld [vmem:[%s5609_s14 + $0x228] sm:$0xff]  ;;  %v979_v9 = vunpack.c.l.s8.bf16 %v459_v0  ;;  %v972_v12 = vunpack.c.h.s8.bf16 %v452_v7  ;;  %v964_v19 = vunpack.c.l.s8.bf16 %v452_v7  ;;  %v491_v7 = vld [vmem:[%s5609_s14 + $0x160] sm:$0xff] }
 0x313   : > { %2800 = vmatprep.subr.bf16.mxu1 %v1148_v11  ;;  %v1107_v11 = vunpack.c.l.s8.bf16 %v523_v1  ;;  %v1100_v14 = vunpack.c.h.s8.bf16 %v516_v8  ;;  %v1092_v20 = vunpack.c.l.s8.bf16 %v516_v8  ;;  %v492_v0 = vld [vmem:[%s5609_s14 + $0x168] sm:$0xff]  ;;  %v555_v8 = vld [vmem:[%s5609_s14 + $0x360] sm:$0xff] }
 0x314   : > { %v2465_v51 = vpop.f32.mrf.mxu0  ;;  %2710 = vmatmul.mubr.bf16.vlgmr.msra.gmra.mxu0 %v5890_v38  ;;  %v556_v1 = vld [vmem:[%s5609_s14 + $0x368] sm:$0xff] }
 0x315   : > { %v2506_v22 = vpop.f32.mrf.mxu1  ;;  %2751 = vmatmul.mubr.bf16.vlgmr.msra.gmra.mxu1 %v5896_v52  ;;  %2760 = vmatpush1.bf16.msra.mxu0 %v1019_v53  ;;  %v451_v53 = vld [vmem:[%s5609_s14 + $0x20] sm:$0xff] }
 0x316   : > { %v6070_v24 = vadd.f32 %v2506_v22, %v2465_v51  ;;  %2801 = vmatpush1.bf16.msra.mxu1 %v1147_v15  ;;  %v2467_v21 = vpop.f32.mrf.mxu0  ;;  %2761 = vmatprep.subr.bf16.mxu0 %v1012_v17  ;;  %v515_v15 = vld [vmem:[%s5609_s14 + $0x220] sm:$0xff]  ;;  %v971_v17 = vunpack.c.h.s8.bf16 %v451_v53  ;;  %v508_v51 = vld [vmem:[%s5609_s14 + $0x1e8] sm:$0xff] }
 0x317   : > { %v2508_v63 = vpop.f32.mrf.mxu1  ;;  %2802 = vmatprep.subr.bf16.mxu1 %v1140_v18  ;;  %2791 = vmatprep.mubr.bf16.mxu0 %v5688_v59  ;;  %v1099_v18 = vunpack.c.h.s8.bf16 %v515_v15  ;;  %v572_v22 = vld [vmem:[%s5609_s14 + $0x3e8] sm:$0xff] }
 0x318   : > { %v6074_v37 = vadd.f32 %v2508_v63, %v2467_v21  ;;  %2832 = vmatprep.mubr.bf16.mxu1 %v5694_v2  ;;  %v2469_v10 = vpop.f32.mrf.mxu0  ;;  %v1084_v21 = vunpack.c.h.s8.bf16 %v508_v51  ;;  %v1212_v63 = vunpack.c.h.s8.bf16 %v572_v22 }
 0x319   : > { %v2510_v40 = vpop.f32.mrf.mxu1  ;;  %2762 = vmatpush1.bf16.msra.mxu0 %v1011_v25  ;;  %v963_v25 = vunpack.c.l.s8.bf16 %v451_v53  ;;  %v1076_v10 = vunpack.c.l.s8.bf16 %v508_v51  ;;  %v484_v53 = vld [vmem:[%s5609_s14 + $0x128] sm:$0xff]  ;;  %v483_v51 = vld [vmem:[%s5609_s14 + $0x120] sm:$0xff] }
 0x31a   : > { %2803 = vmatpush1.bf16.msra.mxu1 %v1139_v27  ;;  %v2470_v28 = vpop.f32.mrf.mxu0  ;;  %2763 = vmatprep.subr.bf16.mxu0 %v1004_v30  ;;  %v1091_v27 = vunpack.c.l.s8.bf16 %v515_v15  ;;  %v507_v30 = vld [vmem:[%s5609_s14 + $0x1e0] sm:$0xff]  ;;  %v1204_v40 = vunpack.c.l.s8.bf16 %v572_v22  ;;  %v548_v15 = vld [vmem:[%s5609_s14 + $0x328] sm:$0xff] }
 0x31b   : > { %v2511_v47 = vpop.f32.mrf.mxu1  ;;  %2804 = vmatprep.subr.bf16.mxu1 %v1132_v32  ;;  %v571_v32 = vld [vmem:[%s5609_s14 + $0x3e0] sm:$0xff]  ;;  %v1083_v33 = vunpack.c.h.s8.bf16 %v507_v30  ;;  %v1075_v28 = vunpack.c.l.s8.bf16 %v507_v30  ;;  %v604_v30 = vld [vmem:[%s5609_s14 + $0x4e8] sm:$0xff] }
 0x31c   : > { %v1211_v35 = vunpack.c.h.s8.bf16 %v571_v32  ;;  %v1203_v47 = vunpack.c.l.s8.bf16 %v571_v32  ;;  %v547_v22 = vld [vmem:[%s5609_s14 + $0x320] sm:$0xff]  ;;  %v668_v32 = vld [vmem:[%s5609_s14 + $0x6e8] sm:$0xff] }
 0x31d   : > { %2764 = vmatpush1.bf16.msra.mxu0 %v1003_v42  ;;  %v500_v42 = vld [vmem:[%s5609_s14 + $0x1a8] sm:$0xff] }
 0x31e   : > { %2805 = vmatpush1.bf16.msra.mxu1 %v1131_v43  ;;  %2765 = vmatprep.subr.bf16.mxu0 %v996_v48  ;;  %v564_v43 = vld [vmem:[%s5609_s14 + $0x3a8] sm:$0xff]  ;;  %v1068_v48 = vunpack.c.h.s8.bf16 %v500_v42 }
 0x31f   : > { %2806 = vmatprep.subr.bf16.mxu1 %v1124_v50  ;;  %v1196_v50 = vunpack.c.h.s8.bf16 %v564_v43 }
 0x321   : > { %2766 = vmatpush1.bf16.msra.mxu0 %v995_v29  ;;  %v1067_v29 = vunpack.c.h.s8.bf16 %v499_v26 }
 0x322   : > { %2807 = vmatpush1.bf16.msra.mxu1 %v1123_v57  ;;  %2767 = vmatprep.subr.bf16.mxu0 %v988_v61  ;;  %v1195_v57 = vunpack.c.h.s8.bf16 %v563_v54  ;;  %v1060_v61 = vunpack.c.l.s8.bf16 %v500_v42  ;;  %v603_v42 = vld [vmem:[%s5609_s14 + $0x4e0] sm:$0xff] }
 0x323   : > { %2808 = vmatprep.subr.bf16.mxu1 %v1116_v62  ;;  %v1188_v62 = vunpack.c.l.s8.bf16 %v564_v43  ;;  %v667_v43 = vld [vmem:[%s5609_s14 + $0x6e0] sm:$0xff] }
 0x325   : > { %2768 = vmatpush1.bf16.msra.mxu0 %v987_v31  ;;  %v1059_v31 = vunpack.c.l.s8.bf16 %v499_v26  ;;  %v596_v26 = vld [vmem:[%s5609_s14 + $0x4a8] sm:$0xff] }
 0x326   : > { %2809 = vmatpush1.bf16.msra.mxu1 %v1115_v4  ;;  %2769 = vmatprep.subr.bf16.mxu0 %v980_v5  ;;  %v1187_v4 = vunpack.c.l.s8.bf16 %v563_v54  ;;  %v1052_v5 = vunpack.c.h.s8.bf16 %v492_v0  ;;  %v660_v54 = vld [vmem:[%s5609_s14 + $0x6a8] sm:$0xff] }
 0x327   : > { %2810 = vmatprep.subr.bf16.mxu1 %v1108_v6  ;;  %v1180_v6 = vunpack.c.h.s8.bf16 %v556_v1 }
 0x329   : > { %2770 = vmatpush1.bf16.msra.mxu0 %v979_v9  ;;  %v1051_v9 = vunpack.c.h.s8.bf16 %v491_v7 }
 0x32a   : > { %2811 = vmatpush1.bf16.msra.mxu1 %v1107_v11  ;;  %2771 = vmatprep.subr.bf16.mxu0 %v972_v12  ;;  %v1179_v11 = vunpack.c.h.s8.bf16 %v555_v8  ;;  %v1044_v12 = vunpack.c.l.s8.bf16 %v492_v0  ;;  %v1395_v0 = vunpack.c.l.s8.bf16 %v667_v43 }
 0x32b   : > { %2812 = vmatprep.subr.bf16.mxu1 %v1100_v14  ;;  %v1172_v14 = vunpack.c.l.s8.bf16 %v556_v1 }
 0x32d   : > { %2772 = vmatpush1.bf16.msra.mxu0 %v971_v17  ;;  %v1043_v17 = vunpack.c.l.s8.bf16 %v491_v7  ;;  %v659_v7 = vld [vmem:[%s5609_s14 + $0x6a0] sm:$0xff] }
 0x32e   : > { %2813 = vmatpush1.bf16.msra.mxu1 %v1099_v18  ;;  %2773 = vmatprep.subr.bf16.mxu0 %v964_v19  ;;  %v1171_v18 = vunpack.c.l.s8.bf16 %v555_v8  ;;  %v1036_v19 = vunpack.c.h.s8.bf16 %v484_v53 }
 0x32f   : > { %2814 = vmatprep.subr.bf16.mxu1 %v1092_v20  ;;  %v1164_v20 = vunpack.c.h.s8.bf16 %v548_v15 }
 0x331   : > { %2774 = vmatpush1.bf16.msra.mxu0 %v963_v25  ;;  %v1035_v25 = vunpack.c.h.s8.bf16 %v483_v51 }
 0x332   : > { %2815 = vmatpush1.bf16.msra.mxu1 %v1091_v27  ;;  %2775 = vmatprep.subr.bf16.mxu0 %v1084_v21  ;;  %v1163_v27 = vunpack.c.h.s8.bf16 %v547_v22  ;;  %v1028_v21 = vunpack.c.l.s8.bf16 %v484_v53  ;;  %v1387_v53 = vunpack.c.h.s8.bf16 %v659_v7 }
 0x333   : > { %2816 = vmatprep.subr.bf16.mxu1 %v1212_v63  ;;  %v1156_v63 = vunpack.c.l.s8.bf16 %v548_v15 }
 0x335   : > { %2776 = vmatpush2.bf16.msra.mxu0 %v1083_v33  ;;  %v1027_v33 = vunpack.c.l.s8.bf16 %v483_v51 }
 0x336   : > { %2817 = vmatpush2.bf16.msra.mxu1 %v1211_v35  ;;  %2777 = vmatprep.subr.bf16.mxu0 %v1076_v10  ;;  %v1155_v35 = vunpack.c.l.s8.bf16 %v547_v22  ;;  %v1276_v10 = vunpack.c.h.s8.bf16 %v604_v30  ;;  %v1379_v22 = vunpack.c.l.s8.bf16 %v659_v7 }
 0x337   : > { %2818 = vmatprep.subr.bf16.mxu1 %v1204_v40  ;;  %v1404_v40 = vunpack.c.h.s8.bf16 %v668_v32 }
 0x339   : > { %2778 = vmatpush2.bf16.msra.mxu0 %v1075_v28  ;;  %v1275_v28 = vunpack.c.h.s8.bf16 %v603_v42 }
 0x33a   : > { %2819 = vmatpush2.bf16.msra.mxu1 %v1203_v47  ;;  %2779 = vmatprep.subr.bf16.mxu0 %v1068_v48  ;;  %v1403_v47 = vunpack.c.h.s8.bf16 %v667_v43  ;;  %v1268_v48 = vunpack.c.l.s8.bf16 %v604_v30 }
 0x33b   : > { %2820 = vmatprep.subr.bf16.mxu1 %v1196_v50  ;;  %v1396_v50 = vunpack.c.l.s8.bf16 %v668_v32 }
 0x33d   : > { %2780 = vmatpush2.bf16.msra.mxu0 %v1067_v29 }
 0x33e   : > { %2821 = vmatpush2.bf16.msra.mxu1 %v1195_v57  ;;  %2781 = vmatprep.subr.bf16.mxu0 %v1060_v61 }
 0x33f   : > { %2822 = vmatprep.subr.bf16.mxu1 %v1188_v62  ;;  %v1267_v62 = vunpack.c.l.s8.bf16 %v603_v42 }
 0x341   : > { %2782 = vmatpush2.bf16.msra.mxu0 %v1059_v31 }
 0x342   : > { %2823 = vmatpush2.bf16.msra.mxu1 %v1187_v4  ;;  %2783 = vmatprep.subr.bf16.mxu0 %v1052_v5  ;;  %v1260_v4 = vunpack.c.h.s8.bf16 %v596_v26  ;;  %v1388_v5 = vunpack.c.h.s8.bf16 %v660_v54 }
 0x343   : > { %2824 = vmatprep.subr.bf16.mxu1 %v1180_v6  ;;  %v595_v6 = vld [vmem:[%s5609_s14 + $0x4a0] sm:$0xff] }
 0x344   : > { %v1251_v51 = vunpack.c.l.s8.bf16 %v595_v6 }
 0x345   : > { %2784 = vmatpush2.bf16.msra.mxu0 %v1051_v9 }
 0x346   : > { %2825 = vmatpush2.bf16.msra.mxu1 %v1179_v11  ;;  %2785 = vmatprep.subr.bf16.mxu0 %v1044_v12 }
 0x347   : > { %2826 = vmatprep.subr.bf16.mxu1 %v1172_v14  ;;  %v1259_v14 = vunpack.c.h.s8.bf16 %v595_v6  ;;  %v699_v6 = vld [vmem:[%s5609_s14 + $0x7e0] sm:$0xff] }
 0x349   : > { %2786 = vmatpush2.bf16.msra.mxu0 %v1043_v17 }
 0x34a   : > { %2827 = vmatpush2.bf16.msra.mxu1 %v1171_v18  ;;  %2787 = vmatprep.subr.bf16.mxu0 %v1036_v19  ;;  %v1380_v18 = vunpack.c.l.s8.bf16 %v660_v54  ;;  %v588_v19 = vld [vmem:[%s5609_s14 + $0x468] sm:$0xff] }
 0x34b   : > { %2828 = vmatprep.subr.bf16.mxu1 %v1164_v20  ;;  %v652_v20 = vld [vmem:[%s5609_s14 + $0x668] sm:$0xff] }
 0x34d   : > { %2788 = vmatpush2.bf16.msra.mxu0 %v1035_v25  ;;  %v1244_v25 = vunpack.c.h.s8.bf16 %v588_v19 }
 0x34e   : > { %2829 = vmatpush2.bf16.msra.mxu1 %v1163_v27  ;;  %2789 = vmatprep.subr.bf16.mxu0 %v1028_v21  ;;  %v1372_v27 = vunpack.c.h.s8.bf16 %v652_v20  ;;  %v587_v21 = vld [vmem:[%s5609_s14 + $0x460] sm:$0xff] }
 0x34f   : > { %2830 = vmatprep.subr.bf16.mxu1 %v1156_v63  ;;  %v651_v63 = vld [vmem:[%s5609_s14 + $0x660] sm:$0xff]  ;;  %v1243_v30 = vunpack.c.h.s8.bf16 %v587_v21  ;;  %v1235_v42 = vunpack.c.l.s8.bf16 %v587_v21  ;;  %v620_v21 = vld [vmem:[%s5609_s14 + $0x568] sm:$0xff] }
 0x350   : > { %v1371_v32 = vunpack.c.h.s8.bf16 %v651_v63  ;;  %v1363_v43 = vunpack.c.l.s8.bf16 %v651_v63  ;;  %v684_v63 = vld [vmem:[%s5609_s14 + $0x768] sm:$0xff] }
 0x351   : > { %2790 = vmatpush2.bf16.msra.mxu0 %v1027_v33  ;;  %v1236_v33 = vunpack.c.l.s8.bf16 %v588_v19  ;;  %v627_v19 = vld [vmem:[%s5609_s14 + $0x5a0] sm:$0xff] }
 0x352   : > { %2831 = vmatpush2.bf16.msra.mxu1 %v1155_v35  ;;  %2841 = vmatprep.subr.bf16.mxu0 %v1276_v10  ;;  %v1364_v35 = vunpack.c.l.s8.bf16 %v652_v20  ;;  %v580_v10 = vld [vmem:[%s5609_s14 + $0x428] sm:$0xff]  ;;  %v691_v20 = vld [vmem:[%s5609_s14 + $0x7a0] sm:$0xff] }
 0x353   : > { %2882 = vmatprep.subr.bf16.mxu1 %v1404_v40  ;;  %v644_v40 = vld [vmem:[%s5609_s14 + $0x628] sm:$0xff] }
 0x354   : > { %v2547_v29 = vpop.f32.mrf.mxu0  ;;  %2792 = vmatmul.mubr.bf16.vlgmr.msra.gmra.mxu0 %v5721_v49 }
 0x355   : > { %v2588_v57 = vpop.f32.mrf.mxu1  ;;  %2833 = vmatmul.mubr.bf16.vlgmr.msra.gmra.mxu1 %v5730_v60  ;;  %v2548_v61 = vadd.f32 %v2547_v29, %v6070_v24  ;;  %2842 = vmatpush1.bf16.msra.mxu0 %v1275_v28  ;;  %v1228_v28 = vunpack.c.h.s8.bf16 %v580_v10  ;;  %v1220_v29 = vunpack.c.l.s8.bf16 %v580_v10  ;;  %v619_v10 = vld [vmem:[%s5609_s14 + $0x560] sm:$0xff] }
 0x356   : > { %2883 = vmatpush1.bf16.msra.mxu1 %v1403_v47  ;;  %v2549_v1 = vpop.f32.mrf.mxu0  ;;  %2843 = vmatprep.subr.bf16.mxu0 %v1268_v48  ;;  %v1356_v47 = vunpack.c.h.s8.bf16 %v644_v40  ;;  %v579_v48 = vld [vmem:[%s5609_s14 + $0x420] sm:$0xff] }
 0x357   : > { %v2590_v31 = vpop.f32.mrf.mxu1  ;;  %2884 = vmatprep.subr.bf16.mxu1 %v1396_v50  ;;  %v6113_v8 = vadd.f32 %v2588_v57, %v2548_v61  ;;  %v2550_v9 = vadd.f32 %v2549_v1, %v6074_v37  ;;  %2873 = vmatprep.mubr.bf16.mxu0 %v5726_v58  ;;  %v1252_v37 = vunpack.c.l.s8.bf16 %v596_v26  ;;  %v643_v50 = vld [vmem:[%s5609_s14 + $0x620] sm:$0xff]  ;;  %v1227_v26 = vunpack.c.h.s8.bf16 %v579_v48  ;;  %v636_v61 = vld [vmem:[%s5609_s14 + $0x5e8] sm:$0xff] }
 0x358   : > { %2914 = vmatprep.mubr.bf16.mxu1 %v5736_v3  ;;  %v2551_v24 = vpop.f32.mrf.mxu0  ;;  %v1355_v54 = vunpack.c.h.s8.bf16 %v643_v50  ;;  %v1348_v57 = vunpack.c.l.s8.bf16 %v644_v40  ;;  %v1347_v1 = vunpack.c.l.s8.bf16 %v643_v50  ;;  %v683_v40 = vld [vmem:[%s5609_s14 + $0x760] sm:$0xff]  ;;  %v676_v50 = vld [vmem:[%s5609_s14 + $0x728] sm:$0xff] }
 0x359   : > { %v2592_v11 = vpop.f32.mrf.mxu1  ;;  %v6118_v12 = vadd.f32 %v2590_v31, %v2550_v9  ;;  %2844 = vmatpush1.bf16.msra.mxu0 %v1267_v62  ;;  %v700_v62 = vld [vmem:[%s5609_s14 + $0x7e8] sm:$0xff]  ;;  %v1340_v31 = vunpack.c.h.s8.bf16 %v636_v61  ;;  %v1467_v9 = vunpack.c.h.s8.bf16 %v699_v6  ;;  %v1332_v24 = vunpack.c.l.s8.bf16 %v636_v61  ;;  %v611_v61 = vld [vmem:[%s5609_s14 + $0x520] sm:$0xff] }
 0x35a   : > { %2885 = vmatpush1.bf16.msra.mxu1 %v1395_v0  ;;  %v2552_v15 = vpop.f32.mrf.mxu0  ;;  %2845 = vmatprep.subr.bf16.mxu0 %v1260_v4  ;;  %v1219_v0 = vunpack.c.l.s8.bf16 %v579_v48  ;;  %v1468_v4 = vunpack.c.h.s8.bf16 %v700_v62  ;;  %v1460_v11 = vunpack.c.l.s8.bf16 %v700_v62  ;;  %v612_v48 = vld [vmem:[%s5609_s14 + $0x528] sm:$0xff]  ;;  %v675_v62 = vld [vmem:[%s5609_s14 + $0x720] sm:$0xff] }
 0x35b   : > { %v2593_v17 = vpop.f32.mrf.mxu1  ;;  %2886 = vmatprep.subr.bf16.mxu1 %v1388_v5  ;;  %v635_v5 = vld [vmem:[%s5609_s14 + $0x5e0] sm:$0xff] }
 0x35c   : > { %v1339_v7 = vunpack.c.h.s8.bf16 %v635_v5  ;;  %v1331_v15 = vunpack.c.l.s8.bf16 %v635_v5  ;;  %v1459_v17 = vunpack.c.l.s8.bf16 %v699_v6  ;;  %v732_v5 = vld [vmem:[%s5609_s14 + $0x8e8] sm:$0xff] }
 0x35d   : > { %2846 = vmatpush1.bf16.msra.mxu0 %v1259_v14  ;;  %v628_v14 = vld [vmem:[%s5609_s14 + $0x5a8] sm:$0xff] }
 0x35e   : > { %2887 = vmatpush1.bf16.msra.mxu1 %v1387_v53  ;;  %2847 = vmatprep.subr.bf16.mxu0 %v1252_v37  ;;  %v692_v53 = vld [vmem:[%s5609_s14 + $0x7a8] sm:$0xff]  ;;  %v1324_v37 = vunpack.c.h.s8.bf16 %v628_v14 }
 0x35f   : > { %2888 = vmatprep.subr.bf16.mxu1 %v1380_v18  ;;  %v1452_v18 = vunpack.c.h.s8.bf16 %v692_v53  ;;  %v796_v6 = vld [vmem:[%s5609_s14 + $0xae8] sm:$0xff] }
 0x361   : > { %2848 = vmatpush1.bf16.msra.mxu0 %v1251_v51  ;;  %v1323_v51 = vunpack.c.h.s8.bf16 %v627_v19 }
 0x362   : > { %2889 = vmatpush1.bf16.msra.mxu1 %v1379_v22  ;;  %2849 = vmatprep.subr.bf16.mxu0 %v1244_v25  ;;  %v1451_v22 = vunpack.c.h.s8.bf16 %v691_v20  ;;  %v1316_v25 = vunpack.c.l.s8.bf16 %v628_v14  ;;  %v731_v14 = vld [vmem:[%s5609_s14 + $0x8e0] sm:$0xff] }
 0x363   : > { %2890 = vmatprep.subr.bf16.mxu1 %v1372_v27  ;;  %v1444_v27 = vunpack.c.l.s8.bf16 %v692_v53  ;;  %v795_v53 = vld [vmem:[%s5609_s14 + $0xae0] sm:$0xff] }
 0x365   : > { %2850 = vmatpush1.bf16.msra.mxu0 %v1243_v30  ;;  %v1315_v30 = vunpack.c.l.s8.bf16 %v627_v19  ;;  %v724_v19 = vld [vmem:[%s5609_s14 + $0x8a8] sm:$0xff] }
 0x366   : > { %2891 = vmatpush1.bf16.msra.mxu1 %v1371_v32  ;;  %2851 = vmatprep.subr.bf16.mxu0 %v1236_v33  ;;  %v1443_v32 = vunpack.c.l.s8.bf16 %v691_v20  ;;  %v1308_v33 = vunpack.c.h.s8.bf16 %v620_v21  ;;  %v788_v20 = vld [vmem:[%s5609_s14 + $0xaa8] sm:$0xff] }
 0x367   : > { %2892 = vmatprep.subr.bf16.mxu1 %v1364_v35  ;;  %v1436_v35 = vunpack.c.h.s8.bf16 %v684_v63 }
 0x369   : > { %2852 = vmatpush1.bf16.msra.mxu0 %v1235_v42  ;;  %v1307_v42 = vunpack.c.h.s8.bf16 %v619_v10 }
 0x36a   : > { %2893 = vmatpush1.bf16.msra.mxu1 %v1363_v43  ;;  %2853 = vmatprep.subr.bf16.mxu0 %v1228_v28  ;;  %v1435_v43 = vunpack.c.h.s8.bf16 %v683_v40  ;;  %v1300_v28 = vunpack.c.l.s8.bf16 %v620_v21  ;;  %v1651_v21 = vunpack.c.l.s8.bf16 %v795_v53 }
 0x36b   : > { %2894 = vmatprep.subr.bf16.mxu1 %v1356_v47  ;;  %v1428_v47 = vunpack.c.l.s8.bf16 %v684_v63 }
 0x36d   : > { %2854 = vmatpush1.bf16.msra.mxu0 %v1227_v26  ;;  %v1299_v26 = vunpack.c.l.s8.bf16 %v619_v10  ;;  %v787_v10 = vld [vmem:[%s5609_s14 + $0xaa0] sm:$0xff] }
 0x36e   : > { %2895 = vmatpush1.bf16.msra.mxu1 %v1355_v54  ;;  %2855 = vmatprep.subr.bf16.mxu0 %v1220_v29  ;;  %v1427_v54 = vunpack.c.l.s8.bf16 %v683_v40  ;;  %v1292_v29 = vunpack.c.h.s8.bf16 %v612_v48 }
 0x36f   : > { %2896 = vmatprep.subr.bf16.mxu1 %v1348_v57  ;;  %v1420_v57 = vunpack.c.h.s8.bf16 %v676_v50 }
 0x371   : > { %2856 = vmatpush1.bf16.msra.mxu0 %v1219_v0  ;;  %v1291_v0 = vunpack.c.h.s8.bf16 %v611_v61 }
 0x372   : > { %2897 = vmatpush1.bf16.msra.mxu1 %v1347_v1  ;;  %2857 = vmatprep.subr.bf16.mxu0 %v1340_v31  ;;  %v1419_v1 = vunpack.c.h.s8.bf16 %v675_v62  ;;  %v1284_v31 = vunpack.c.l.s8.bf16 %v612_v48 }
 0x373   : > { %2898 = vmatprep.subr.bf16.mxu1 %v1468_v4  ;;  %v1412_v4 = vunpack.c.l.s8.bf16 %v676_v50  ;;  %v1508_v50 = vunpack.c.l.s8.bf16 %v724_v19 }
 0x375   : > { %2858 = vmatpush2.bf16.msra.mxu0 %v1339_v7  ;;  %v1283_v7 = vunpack.c.l.s8.bf16 %v611_v61  ;;  %v1635_v61 = vunpack.c.l.s8.bf16 %v787_v10 }
 0x376   : > { %2899 = vmatpush2.bf16.msra.mxu1 %v1467_v9  ;;  %2859 = vmatprep.subr.bf16.mxu0 %v1332_v24  ;;  %v1411_v9 = vunpack.c.l.s8.bf16 %v675_v62  ;;  %v1532_v24 = vunpack.c.h.s8.bf16 %v732_v5 }
 0x377   : > { %2900 = vmatprep.subr.bf16.mxu1 %v1460_v11  ;;  %v1660_v11 = vunpack.c.h.s8.bf16 %v796_v6 }
 0x379   : > { %2860 = vmatpush2.bf16.msra.mxu0 %v1331_v15  ;;  %v1531_v15 = vunpack.c.h.s8.bf16 %v731_v14 }
 0x37a   : > { %2901 = vmatpush2.bf16.msra.mxu1 %v1459_v17  ;;  %2861 = vmatprep.subr.bf16.mxu0 %v1324_v37  ;;  %v1659_v17 = vunpack.c.h.s8.bf16 %v795_v53  ;;  %v1524_v37 = vunpack.c.l.s8.bf16 %v732_v5 }
 0x37b   : > { %2902 = vmatprep.subr.bf16.mxu1 %v1452_v18  ;;  %v1652_v18 = vunpack.c.l.s8.bf16 %v796_v6 }
 0x37d   : > { %2862 = vmatpush2.bf16.msra.mxu0 %v1323_v51 }
 0x37e   : > { %2903 = vmatpush2.bf16.msra.mxu1 %v1451_v22  ;;  %2863 = vmatprep.subr.bf16.mxu0 %v1316_v25 }
 0x37f   : > { %2904 = vmatprep.subr.bf16.mxu1 %v1444_v27  ;;  %v1523_v27 = vunpack.c.l.s8.bf16 %v731_v14 }
 0x381   : > { %2864 = vmatpush2.bf16.msra.mxu0 %v1315_v30 }
 0x382   : > { %2905 = vmatpush2.bf16.msra.mxu1 %v1443_v32  ;;  %2865 = vmatprep.subr.bf16.mxu0 %v1308_v33  ;;  %v1516_v32 = vunpack.c.h.s8.bf16 %v724_v19  ;;  %v1644_v33 = vunpack.c.h.s8.bf16 %v788_v20 }
 0x383   : > { %2906 = vmatprep.subr.bf16.mxu1 %v1436_v35  ;;  %v723_v35 = vld [vmem:[%s5609_s14 + $0x8a0] sm:$0xff] }
 0x385   : > { %2866 = vmatpush2.bf16.msra.mxu0 %v1307_v42 }
 0x386   : > { %2907 = vmatpush2.bf16.msra.mxu1 %v1435_v43  ;;  %2867 = vmatprep.subr.bf16.mxu0 %v1300_v28  ;;  %v1515_v43 = vunpack.c.h.s8.bf16 %v723_v35  ;;  %v1643_v28 = vunpack.c.h.s8.bf16 %v787_v10  ;;  %v827_v10 = vld [vmem:[%s5609_s14 + $0xbe0] sm:$0xff] }
 0x387   : > { %2908 = vmatprep.subr.bf16.mxu1 %v1428_v47 }
 0x389   : > { %2868 = vmatpush2.bf16.msra.mxu0 %v1299_v26  ;;  %v1636_v26 = vunpack.c.l.s8.bf16 %v788_v20 }
 0x38a   : > { %2909 = vmatpush2.bf16.msra.mxu1 %v1427_v54  ;;  %2869 = vmatprep.subr.bf16.mxu0 %v1292_v29  ;;  %v716_v54 = vld [vmem:[%s5609_s14 + $0x868] sm:$0xff] }
 0x38b   : > { %2910 = vmatprep.subr.bf16.mxu1 %v1420_v57  ;;  %v780_v29 = vld [vmem:[%s5609_s14 + $0xa68] sm:$0xff]  ;;  %v1507_v57 = vunpack.c.l.s8.bf16 %v723_v35  ;;  %v1500_v62 = vunpack.c.h.s8.bf16 %v716_v54  ;;  %v1492_v6 = vunpack.c.l.s8.bf16 %v716_v54  ;;  %v763_v35 = vld [vmem:[%s5609_s14 + $0x9e0] sm:$0xff] }
 0x38d   : > { %2870 = vmatpush2.bf16.msra.mxu0 %v1291_v0  ;;  %v1628_v0 = vunpack.c.h.s8.bf16 %v780_v29 }
 0x38e   : > { %2911 = vmatpush2.bf16.msra.mxu1 %v1419_v1  ;;  %2871 = vmatprep.subr.bf16.mxu0 %v1284_v31  ;;  %v715_v1 = vld [vmem:[%s5609_s14 + $0x860] sm:$0xff] }
 0x38f   : > { %2912 = vmatprep.subr.bf16.mxu1 %v1412_v4  ;;  %v779_v31 = vld [vmem:[%s5609_s14 + $0xa60] sm:$0xff]  ;;  %v1499_v4 = vunpack.c.h.s8.bf16 %v715_v1 }
 0x390   : > { %v1627_v5 = vunpack.c.h.s8.bf16 %v779_v31  ;;  %v1619_v14 = vunpack.c.l.s8.bf16 %v779_v31 }
 0x391   : > { %2872 = vmatpush2.bf16.msra.mxu0 %v1283_v7  ;;  %v1620_v7 = vunpack.c.l.s8.bf16 %v780_v29 }
 0x392   : > { %2913 = vmatpush2.bf16.msra.mxu1 %v1411_v9  ;;  %2923 = vmatprep.subr.bf16.mxu0 %v1532_v24  ;;  %v708_v9 = vld [vmem:[%s5609_s14 + $0x828] sm:$0xff] }
 0x393   : > { %2964 = vmatprep.subr.bf16.mxu1 %v1660_v11  ;;  %v772_v24 = vld [vmem:[%s5609_s14 + $0xa28] sm:$0xff]  ;;  %v1491_v11 = vunpack.c.l.s8.bf16 %v715_v1  ;;  %v1484_v53 = vunpack.c.h.s8.bf16 %v708_v9  ;;  %v1476_v20 = vunpack.c.l.s8.bf16 %v708_v9 }
 0x394   : > { %v2629_v51 = vpop.f32.mrf.mxu0  ;;  %2874 = vmatmul.mubr.bf16.vlgmr.msra.gmra.mxu0 %v5781_v36 }
 0x395   : > { %v2670_v22 = vpop.f32.mrf.mxu1  ;;  %2915 = vmatmul.mubr.bf16.vlgmr.msra.gmra.mxu1 %v5790_v46  ;;  %v2630_v25 = vadd.f32 %v2629_v51, %v6113_v8  ;;  %2924 = vmatpush1.bf16.msra.mxu0 %v1531_v15  ;;  %v1612_v15 = vunpack.c.h.s8.bf16 %v772_v24  ;;  %v1604_v51 = vunpack.c.l.s8.bf16 %v772_v24 }
 0x396   : > { %2965 = vmatpush1.bf16.msra.mxu1 %v1659_v17  ;;  %v6153_v63 = vpop.f32.mrf.mxu0  ;;  %2925 = vmatprep.subr.bf16.mxu0 %v1524_v37  ;;  %v707_v17 = vld [vmem:[%s5609_s14 + $0x820] sm:$0xff] }
 0x397   : > { %v6155_v30 = vpop.f32.mrf.mxu1  ;;  %2966 = vmatprep.subr.bf16.mxu1 %v1652_v18  ;;  %v6159_v40 = vadd.f32 %v2670_v22, %v2630_v25  ;;  %2955 = vmatprep.mubr.bf16.mxu0 %v5786_v45  ;;  %v771_v37 = vld [vmem:[%s5609_s14 + $0xa20] sm:$0xff]  ;;  %v1483_v18 = vunpack.c.h.s8.bf16 %v707_v17  ;;  %v764_v22 = vld [vmem:[%s5609_s14 + $0x9e8] sm:$0xff] }
 0x398   : > { %2996 = vmatprep.mubr.bf16.mxu1 %v5796_v55  ;;  %v2633_v8 = vpop.f32.mrf.mxu0  ;;  %v1611_v19 = vunpack.c.h.s8.bf16 %v771_v37  ;;  %v828_v25 = vld [vmem:[%s5609_s14 + $0xbe8] sm:$0xff] }
 0x399   : > { %v2674_v42 = vpop.f32.mrf.mxu1  ;;  %2926 = vmatpush1.bf16.msra.mxu0 %v1523_v27  ;;  %v1475_v27 = vunpack.c.l.s8.bf16 %v707_v17  ;;  %v1595_v8 = vunpack.c.h.s8.bf16 %v763_v35 }
 0x39a   : > { %2967 = vmatpush1.bf16.msra.mxu1 %v1651_v21  ;;  %v2634_v47 = vpop.f32.mrf.mxu0  ;;  %2927 = vmatprep.subr.bf16.mxu0 %v1516_v32  ;;  %v1603_v21 = vunpack.c.l.s8.bf16 %v771_v37  ;;  %v1596_v32 = vunpack.c.h.s8.bf16 %v764_v22  ;;  %v1723_v42 = vunpack.c.h.s8.bf16 %v827_v10 }
 0x39b   : > { %v2675_v48 = vpop.f32.mrf.mxu1  ;;  %2968 = vmatprep.subr.bf16.mxu1 %v1644_v33  ;;  %v1724_v33 = vunpack.c.h.s8.bf16 %v828_v25  ;;  %v756_v47 = vld [vmem:[%s5609_s14 + $0x9a8] sm:$0xff] }
 0x39c   : > { %v820_v48 = vld [vmem:[%s5609_s14 + $0xba8] sm:$0xff]  ;;  %v1580_v54 = vunpack.c.h.s8.bf16 %v756_v47  ;;  %v1572_v1 = vunpack.c.l.s8.bf16 %v756_v47 }
 0x39d   : > { %2928 = vmatpush1.bf16.msra.mxu0 %v1515_v43  ;;  %v1588_v43 = vunpack.c.l.s8.bf16 %v764_v22  ;;  %v1708_v29 = vunpack.c.h.s8.bf16 %v820_v48  ;;  %v1700_v31 = vunpack.c.l.s8.bf16 %v820_v48 }
 0x39e   : > { %2969 = vmatpush1.bf16.msra.mxu1 %v1643_v28  ;;  %2929 = vmatprep.subr.bf16.mxu0 %v1508_v50  ;;  %v1716_v28 = vunpack.c.l.s8.bf16 %v828_v25  ;;  %v1587_v50 = vunpack.c.l.s8.bf16 %v763_v35 }
 0x39f   : > { %2970 = vmatprep.subr.bf16.mxu1 %v1636_v26  ;;  %v1715_v26 = vunpack.c.l.s8.bf16 %v827_v10 }
 0x3a1   : > { %2930 = vmatpush1.bf16.msra.mxu0 %v1507_v57  ;;  %v755_v57 = vld [vmem:[%s5609_s14 + $0x9a0] sm:$0xff] }
 0x3a2   : > { %2971 = vmatpush1.bf16.msra.mxu1 %v1635_v61  ;;  %2931 = vmatprep.subr.bf16.mxu0 %v1500_v62  ;;  %v819_v61 = vld [vmem:[%s5609_s14 + $0xba0] sm:$0xff]  ;;  %v1579_v62 = vunpack.c.h.s8.bf16 %v755_v57 }
 0x3a3   : > { %2972 = vmatprep.subr.bf16.mxu1 %v1628_v0  ;;  %v1707_v0 = vunpack.c.h.s8.bf16 %v819_v61 }
 0x3a5   : > { %2932 = vmatpush1.bf16.msra.mxu0 %v1499_v4  ;;  %v748_v4 = vld [vmem:[%s5609_s14 + $0x968] sm:$0xff] }
 0x3a6   : > { %2973 = vmatpush1.bf16.msra.mxu1 %v1627_v5  ;;  %2933 = vmatprep.subr.bf16.mxu0 %v1492_v6  ;;  %v812_v5 = vld [vmem:[%s5609_s14 + $0xb68] sm:$0xff]  ;;  %v1571_v6 = vunpack.c.l.s8.bf16 %v755_v57  ;;  %v1564_v9 = vunpack.c.h.s8.bf16 %v748_v4  ;;  %v1556_v17 = vunpack.c.l.s8.bf16 %v748_v4  ;;  %v2632_v57 = vadd.f32 %v6153_v63, %v6118_v12 }
 0x3a7   : > { %2974 = vmatprep.subr.bf16.mxu1 %v1620_v7  ;;  %v1699_v7 = vunpack.c.l.s8.bf16 %v819_v61  ;;  %v1692_v24 = vunpack.c.h.s8.bf16 %v812_v5  ;;  %v1684_v37 = vunpack.c.l.s8.bf16 %v812_v5  ;;  %v916_v4 = vld [vmem:[%s5609_s14 + $0xea8] sm:$0xff] }
 0x3a8   : > { %v2673_v12 = vadd.f32 %v6155_v30, %v2632_v57 }
 0x3a9   : > { %2934 = vmatpush1.bf16.msra.mxu0 %v1491_v11  ;;  %v747_v11 = vld [vmem:[%s5609_s14 + $0x960] sm:$0xff] }
 0x3aa   : > { %2975 = vmatpush1.bf16.msra.mxu1 %v1619_v14  ;;  %2935 = vmatprep.subr.bf16.mxu0 %v1484_v53  ;;  %v811_v14 = vld [vmem:[%s5609_s14 + $0xb60] sm:$0xff]  ;;  %v1563_v53 = vunpack.c.h.s8.bf16 %v747_v11 }
 0x3ab   : > { %2976 = vmatprep.subr.bf16.mxu1 %v1612_v15  ;;  %v1691_v15 = vunpack.c.h.s8.bf16 %v811_v14 }
 0x3ad   : > { %2936 = vmatpush1.bf16.msra.mxu0 %v1483_v18  ;;  %v740_v18 = vld [vmem:[%s5609_s14 + $0x928] sm:$0xff] }
 0x3ae   : > { %2977 = vmatpush1.bf16.msra.mxu1 %v1611_v19  ;;  %2937 = vmatprep.subr.bf16.mxu0 %v1476_v20  ;;  %v804_v19 = vld [vmem:[%s5609_s14 + $0xb28] sm:$0xff]  ;;  %v1555_v20 = vunpack.c.l.s8.bf16 %v747_v11  ;;  %v1548_v22 = vunpack.c.h.s8.bf16 %v740_v18  ;;  %v1540_v35 = vunpack.c.l.s8.bf16 %v740_v18 }
 0x3af   : > { %2978 = vmatprep.subr.bf16.mxu1 %v1604_v51  ;;  %v1683_v51 = vunpack.c.l.s8.bf16 %v811_v14  ;;  %v1676_v25 = vunpack.c.h.s8.bf16 %v804_v19  ;;  %v1668_v10 = vunpack.c.l.s8.bf16 %v804_v19 }
 0x3b1   : > { %2938 = vmatpush1.bf16.msra.mxu0 %v1475_v27  ;;  %v739_v27 = vld [vmem:[%s5609_s14 + $0x920] sm:$0xff] }
 0x3b2   : > { %2979 = vmatpush1.bf16.msra.mxu1 %v1603_v21  ;;  %2939 = vmatprep.subr.bf16.mxu0 %v1596_v32  ;;  %v803_v21 = vld [vmem:[%s5609_s14 + $0xb20] sm:$0xff]  ;;  %v1547_v32 = vunpack.c.h.s8.bf16 %v739_v27 }
 0x3b3   : > { %2980 = vmatprep.subr.bf16.mxu1 %v1724_v33  ;;  %v1675_v33 = vunpack.c.h.s8.bf16 %v803_v21 }
 0x3b5   : > { %2940 = vmatpush2.bf16.msra.mxu0 %v1595_v8  ;;  %v860_v8 = vld [vmem:[%s5609_s14 + $0xce8] sm:$0xff] }
 0x3b6   : > { %2981 = vmatpush2.bf16.msra.mxu1 %v1723_v42  ;;  %2941 = vmatprep.subr.bf16.mxu0 %v1588_v43  ;;  %v924_v42 = vld [vmem:[%s5609_s14 + $0xee8] sm:$0xff]  ;;  %v1539_v43 = vunpack.c.l.s8.bf16 %v739_v27  ;;  %v1788_v47 = vunpack.c.h.s8.bf16 %v860_v8 }
 0x3b7   : > { %2982 = vmatprep.subr.bf16.mxu1 %v1716_v28  ;;  %v1667_v28 = vunpack.c.l.s8.bf16 %v803_v21  ;;  %v1916_v48 = vunpack.c.h.s8.bf16 %v924_v42 }
 0x3b9   : > { %2942 = vmatpush2.bf16.msra.mxu0 %v1587_v50  ;;  %v859_v50 = vld [vmem:[%s5609_s14 + $0xce0] sm:$0xff] }
 0x3ba   : > { %2983 = vmatpush2.bf16.msra.mxu1 %v1715_v26  ;;  %2943 = vmatprep.subr.bf16.mxu0 %v1580_v54  ;;  %v923_v26 = vld [vmem:[%s5609_s14 + $0xee0] sm:$0xff]  ;;  %v5176_v54 = vmov 1983009808   ;;  %v1787_v61 = vunpack.c.h.s8.bf16 %v859_v50 }
 0x3bb   : > { %2984 = vmatprep.subr.bf16.mxu1 %v1708_v29  ;;  %v3426_v29 = vunpack.c.l.s4 %v5176_v54  ;;  %v843_v54 = vld [vmem:[%s5609_s14 + $0xc60] sm:$0xff] }
 0x3bc   : > { %v1755_v13 = vunpack.c.h.s8.bf16 %v843_v54 }
 0x3bd   : > { %2944 = vmatpush2.bf16.msra.mxu0 %v1579_v62  ;;  %v1915_v62 = vunpack.c.h.s8.bf16 %v923_v26  ;;  %v3427_v5 = vunpack.c.0.s8 %v3426_v29  ;;  %v907_v29 = vld [vmem:[%s5609_s14 + $0xe60] sm:$0xff] }
 0x3be   : > { %2985 = vmatpush2.bf16.msra.mxu1 %v1707_v0  ;;  %2945 = vmatprep.subr.bf16.mxu0 %v1572_v1  ;;  %v1780_v0 = vunpack.c.l.s8.bf16 %v860_v8  ;;  %v1908_v1 = vunpack.c.l.s8.bf16 %v924_v42  ;;  %v908_v8 = vld [vmem:[%s5609_s14 + $0xe68] sm:$0xff]  ;;  %v1883_v16 = vunpack.c.h.s8.bf16 %v907_v29 }
 0x3bf   : > { %2986 = vmatprep.subr.bf16.mxu1 %v1700_v31  ;;  %v852_v31 = vld [vmem:[%s5609_s14 + $0xca8] sm:$0xff]  ;;  %v6204_v30 = vsub.s32 %v3427_v5, %v5667_v39 }
 0x3c1   : > { %2946 = vmatpush2.bf16.msra.mxu0 %v1571_v6  ;;  %v3431_v42 = vrot.slane %v3423_v23, %v6204_v30 }
 0x3c2   : > { %2987 = vmatpush2.bf16.msra.mxu1 %v1699_v7  ;;  %2947 = vmatprep.subr.bf16.mxu0 %v1564_v9  ;;  %v1779_v9 = vunpack.c.l.s8.bf16 %v859_v50 }
 0x3c3   : > { %2988 = vmatprep.subr.bf16.mxu1 %v1692_v24  ;;  %v1907_v24 = vunpack.c.l.s8.bf16 %v923_v26  ;;  %v1884_v26 = vunpack.c.h.s8.bf16 %v908_v8 }
 0x3c5   : > { %2948 = vmatpush2.bf16.msra.mxu0 %v1563_v53  ;;  %v1772_v53 = vunpack.c.h.s8.bf16 %v852_v31 }
 0x3c6   : > { %2989 = vmatpush2.bf16.msra.mxu1 %v1691_v15  ;;  %2949 = vmatprep.subr.bf16.mxu0 %v1556_v17  ;;  %v1900_v15 = vunpack.c.h.s8.bf16 %v916_v4  ;;  %v851_v17 = vld [vmem:[%s5609_s14 + $0xca0] sm:$0xff] }
 0x3c7   : > { %2990 = vmatprep.subr.bf16.mxu1 %v1684_v37  ;;  %v915_v37 = vld [vmem:[%s5609_s14 + $0xea0] sm:$0xff] }
 0x3c9   : > { %2950 = vmatpush2.bf16.msra.mxu0 %v1555_v20 }
 0x3ca   : > { %2991 = vmatpush2.bf16.msra.mxu1 %v1683_v51  ;;  %2951 = vmatprep.subr.bf16.mxu0 %v1548_v22  ;;  %v1771_v22 = vunpack.c.h.s8.bf16 %v851_v17 }
 0x3cb   : > { %2992 = vmatprep.subr.bf16.mxu1 %v1676_v25  ;;  %v1899_v25 = vunpack.c.h.s8.bf16 %v915_v37 }
 0x3cd   : > { %2952 = vmatpush2.bf16.msra.mxu0 %v1547_v32  ;;  %v1764_v32 = vunpack.c.l.s8.bf16 %v852_v31  ;;  %v1747_v31 = vunpack.c.l.s8.bf16 %v843_v54 }
 0x3ce   : > { %2993 = vmatpush2.bf16.msra.mxu1 %v1675_v33  ;;  %2953 = vmatprep.subr.bf16.mxu0 %v1540_v35  ;;  %v1892_v33 = vunpack.c.l.s8.bf16 %v916_v4  ;;  %v1875_v4 = vunpack.c.l.s8.bf16 %v907_v29 }
 0x3cf   : > { %2994 = vmatprep.subr.bf16.mxu1 %v1668_v10  ;;  %v844_v10 = vld [vmem:[%s5609_s14 + $0xc68] sm:$0xff] }
 0x3d0   : > { %v1756_v50 = vunpack.c.h.s8.bf16 %v844_v10  ;;  %v1748_v23 = vunpack.c.l.s8.bf16 %v844_v10 }
 0x3d1   : > { %2954 = vmatpush2.bf16.msra.mxu0 %v1539_v43 }
 0x3d2   : > { %2995 = vmatpush2.bf16.msra.mxu1 %v1667_v28  ;;  %3005 = vmatprep.subr.bf16.mxu0 %v1788_v47  ;;  %v1763_v28 = vunpack.c.l.s8.bf16 %v851_v17  ;;  %v1891_v47 = vunpack.c.l.s8.bf16 %v915_v37 }
 0x3d3   : > { %3046 = vmatprep.subr.bf16.mxu1 %v1916_v48  ;;  %v1983_v48 = vld [vmem:[#allocation2] sm:$0xff] }
 0x3d4   : > { %v2711_v6 = vpop.f32.mrf.mxu0  ;;  %2956 = vmatmul.mubr.bf16.vlgmr.msra.gmra.mxu0 %v5839_v34 }
 0x3d5   : > { %v2752_v7 = vpop.f32.mrf.mxu1  ;;  %2997 = vmatmul.mubr.bf16.vlgmr.msra.gmra.mxu1 %v5848_v41  ;;  %v2712_v63 = vadd.f32 %v2711_v6, %v6159_v40  ;;  %3006 = vmatpush1.bf16.msra.mxu0 %v1787_v61 }
 0x3d6   : > { %3047 = vmatpush1.bf16.msra.mxu1 %v1915_v62  ;;  %v2713_v11 = vpop.f32.mrf.mxu0  ;;  %3007 = vmatprep.subr.bf16.mxu0 %v1780_v0  ;;  %v1876_v62 = vunpack.c.l.s8.bf16 %v908_v8  ;;  %v836_v0 = vld [vmem:[%s5609_s14 + $0xc28] sm:$0xff]  ;;  %v883_v8 = vld [vmem:[%s5609_s14 + $0xda0] sm:$0xff] }
 0x3d7   : > { %v2754_v14 = vpop.f32.mrf.mxu1  ;;  %3048 = vmatprep.subr.bf16.mxu1 %v1908_v1  ;;  %v2714_v18 = vadd.f32 %v2713_v11, %v2673_v12  ;;  %3037 = vmatprep.mubr.bf16.mxu0 %v5844_v44  ;;  %v2753_v20 = vadd.f32 %v2752_v7, %v2712_v63  ;;  %v900_v1 = vld [vmem:[%s5609_s14 + $0xe28] sm:$0xff]  ;;  %v1740_v5 = vunpack.c.h.s8.bf16 %v836_v0  ;;  %v835_v7 = vld [vmem:[%s5609_s14 + $0xc20] sm:$0xff]  ;;  %v1827_v54 = vunpack.c.l.s8.bf16 %v883_v8 }
 0x3d8   : > { %3078 = vmatprep.mubr.bf16.mxu1 %v5854_v56  ;;  %v2715_v40 = vpop.f32.mrf.mxu0  ;;  %v1868_v6 = vunpack.c.h.s8.bf16 %v900_v1  ;;  %v899_v12 = vld [vmem:[%s5609_s14 + $0xe20] sm:$0xff]  ;;  %v1739_v63 = vunpack.c.h.s8.bf16 %v835_v7  ;;  %v1860_v11 = vunpack.c.l.s8.bf16 %v900_v1 }
 0x3d9   : > { %v2756_v19 = vpop.f32.mrf.mxu1  ;;  %v2755_v51 = vadd.f32 %v2754_v14, %v2714_v18  ;;  %3008 = vmatpush1.bf16.msra.mxu0 %v1779_v9  ;;  %v1867_v9 = vunpack.c.h.s8.bf16 %v899_v12  ;;  %v892_v14 = vld [vmem:[%s5609_s14 + $0xde8] sm:$0xff]  ;;  %v1859_v17 = vunpack.c.l.s8.bf16 %v899_v12  ;;  %v891_v40 = vld [vmem:[%s5609_s14 + $0xde0] sm:$0xff] }
 0x3da   : > { %3049 = vmatpush1.bf16.msra.mxu1 %v1907_v24  ;;  %v2716_v27 = vpop.f32.mrf.mxu0  ;;  %3009 = vmatprep.subr.bf16.mxu0 %v1772_v53  ;;  %v1732_v24 = vunpack.c.l.s8.bf16 %v836_v0  ;;  %v956_v53 = vld [vmem:[%s5609_s14 + $0xfe8] sm:$0xff]  ;;  %v1852_v37 = vunpack.c.h.s8.bf16 %v892_v14  ;;  %v955_v19 = vld [vmem:[%s5609_s14 + $0xfe0] sm:$0xff] }
 0x3db   : > { %v2757_v21 = vpop.f32.mrf.mxu1  ;;  %3050 = vmatprep.subr.bf16.mxu1 %v1900_v15  ;;  %v3424_v35 = vcombine.low %v2753_v20, %v2755_v51  ;;  %v1731_v15 = vunpack.c.l.s8.bf16 %v835_v7  ;;  %v1980_v18 = vunpack.c.h.s8.bf16 %v956_v53  ;;  %v1851_v20 = vunpack.c.h.s8.bf16 %v891_v40  ;;  %v884_v27 = vld [vmem:[%s5609_s14 + $0xda8] sm:$0xff] }
 0x3dc   : > { %v1979_v51 = vunpack.c.h.s8.bf16 %v955_v19  ;;  %v948_v21 = vld [vmem:[%s5609_s14 + $0xfa8] sm:$0xff] }
 0x3dd   : > { %v3438_v43 = vrot.slane %v3424_v35, %v6204_v30  ;;  %3010 = vmatpush1.bf16.msra.mxu0 %v1771_v22  ;;  %v1844_v22 = vunpack.c.l.s8.bf16 %v892_v14  ;;  %v1836_v35 = vunpack.c.h.s8.bf16 %v884_v27  ;;  %v1964_v10 = vunpack.c.h.s8.bf16 %v948_v21 }
 0x3de   : > { %3051 = vmatpush1.bf16.msra.mxu1 %v1899_v25  ;;  %3011 = vmatprep.subr.bf16.mxu0 %v1764_v32  ;;  %v1972_v25 = vunpack.c.l.s8.bf16 %v956_v53  ;;  %v1843_v32 = vunpack.c.l.s8.bf16 %v891_v40 }
 0x3df   : > { %3052 = vmatprep.subr.bf16.mxu1 %v1892_v33  ;;  %v3439_v57 = vcombine.low %v3431_v42, %v3438_v43  ;;  %v1971_v33 = vunpack.c.l.s8.bf16 %v955_v19  ;;  %v947_v42 = vld [vmem:[%s5609_s14 + $0xfa0] sm:$0xff]  ;;  %v1835_v43 = vunpack.c.h.s8.bf16 %v883_v8 }
 0x3e0   : > { %v1955_v29 = vunpack.c.l.s8.bf16 %v947_v42 }
 0x3e1   : > { %v3459_v61 = vadd.f32 %v3439_v57, %v1983_v48  ;;  %3012 = vmatpush1.bf16.msra.mxu0 %v1763_v28  ;;  %v1963_v28 = vunpack.c.h.s8.bf16 %v947_v42  ;;  %v1956_v48 = vunpack.c.l.s8.bf16 %v948_v21 }
 0x3e2   : > { %3053 = vmatpush1.bf16.msra.mxu1 %v1891_v47  ;;  %3013 = vmatprep.subr.bf16.mxu0 %v1756_v50  ;;  %v1828_v47 = vunpack.c.l.s8.bf16 %v884_v27  ;;  %v876_v50 = vld [vmem:[%s5609_s14 + $0xd68] sm:$0xff] }
 0x3e3   : > { %3054 = vmatprep.subr.bf16.mxu1 %v1884_v26  ;;  %3461 = vst [vmem:[#allocation2] sm:$0xff] %v3459_v61  ;;  %v940_v26 = vld [vmem:[%s5609_s14 + $0xf68] sm:$0xff]  ;;  %v1820_v57 = vunpack.c.h.s8.bf16 %v876_v50  ;;  %v1812_v0 = vunpack.c.l.s8.bf16 %v876_v50 }
 0x3e4   : > { %v1948_v61 = vunpack.c.h.s8.bf16 %v940_v26  ;;  %v1940_v1 = vunpack.c.l.s8.bf16 %v940_v26  ;;  %v469_v26 = vld [vmem:[%s5609_s14 + $0xb0] sm:$0xff] }
 0x3e5   : > { %3014 = vmatpush1.bf16.msra.mxu0 %v1755_v13  ;;  %v875_v13 = vld [vmem:[%s5609_s14 + $0xd60] sm:$0xff] }
 0x3e6   : > { %3055 = vmatpush1.bf16.msra.mxu1 %v1883_v16  ;;  %3015 = vmatprep.subr.bf16.mxu0 %v1748_v23  ;;  %v939_v16 = vld [vmem:[%s5609_s14 + $0xf60] sm:$0xff]  ;;  %v1819_v23 = vunpack.c.h.s8.bf16 %v875_v13 }
 0x3e7   : > { %3056 = vmatprep.subr.bf16.mxu1 %v1876_v62  ;;  %v1947_v62 = vunpack.c.h.s8.bf16 %v939_v16 }
 0x3e9   : > { %3016 = vmatpush1.bf16.msra.mxu0 %v1747_v31  ;;  %v868_v31 = vld [vmem:[%s5609_s14 + $0xd28] sm:$0xff] }
 0x3ea   : > { %3057 = vmatpush1.bf16.msra.mxu1 %v1875_v4  ;;  %3017 = vmatprep.subr.bf16.mxu0 %v1740_v5  ;;  %v932_v4 = vld [vmem:[%s5609_s14 + $0xf28] sm:$0xff]  ;;  %v1811_v5 = vunpack.c.l.s8.bf16 %v875_v13  ;;  %v1804_v7 = vunpack.c.h.s8.bf16 %v868_v31  ;;  %v1796_v14 = vunpack.c.l.s8.bf16 %v868_v31  ;;  %v1005_v13 = vunpack.c.h.s8.bf16 %v469_v26  ;;  %v462_v31 = vld [vmem:[%s5609_s14 + $0x78] sm:$0xff] }
 0x3eb   : > { %3058 = vmatprep.subr.bf16.mxu1 %v1868_v6  ;;  %v1939_v6 = vunpack.c.l.s8.bf16 %v939_v16  ;;  %v1932_v12 = vunpack.c.h.s8.bf16 %v932_v4  ;;  %v1924_v53 = vunpack.c.l.s8.bf16 %v932_v4  ;;  %v526_v4 = vld [vmem:[%s5609_s14 + $0x278] sm:$0xff] }
 0x3ed   : > { %3018 = vmatpush1.bf16.msra.mxu0 %v1739_v63  ;;  %v867_v63 = vld [vmem:[%s5609_s14 + $0xd20] sm:$0xff] }
 0x3ee   : > { %3059 = vmatpush1.bf16.msra.mxu1 %v1867_v9  ;;  %3019 = vmatprep.subr.bf16.mxu0 %v1732_v24  ;;  %v931_v9 = vld [vmem:[%s5609_s14 + $0xf20] sm:$0xff]  ;;  %v1803_v24 = vunpack.c.h.s8.bf16 %v867_v63 }
 0x3ef   : > { %3060 = vmatprep.subr.bf16.mxu1 %v1860_v11  ;;  %v1931_v11 = vunpack.c.h.s8.bf16 %v931_v9 }
 0x3f1   : > { %3020 = vmatpush1.bf16.msra.mxu0 %v1731_v15  ;;  %v478_v15 = vld [vmem:[%s5609_s14 + $0xf8] sm:$0xff] }
 0x3f2   : > { %3061 = vmatpush1.bf16.msra.mxu1 %v1859_v17  ;;  %3021 = vmatprep.subr.bf16.mxu0 %v1852_v37  ;;  %v542_v17 = vld [vmem:[%s5609_s14 + $0x2f8] sm:$0xff]  ;;  %v1795_v37 = vunpack.c.l.s8.bf16 %v867_v63  ;;  %v1022_v40 = vunpack.c.h.s8.bf16 %v478_v15  ;;  %v1014_v27 = vunpack.c.l.s8.bf16 %v478_v15 }
 0x3f3   : > { %3062 = vmatprep.subr.bf16.mxu1 %v1980_v18  ;;  %v1923_v18 = vunpack.c.l.s8.bf16 %v931_v9  ;;  %v1150_v19 = vunpack.c.h.s8.bf16 %v542_v17  ;;  %v1142_v21 = vunpack.c.l.s8.bf16 %v542_v17 }
 0x3f5   : > { %3022 = vmatpush2.bf16.msra.mxu0 %v1851_v20  ;;  %v477_v20 = vld [vmem:[%s5609_s14 + $0xf0] sm:$0xff] }
 0x3f6   : > { %3063 = vmatpush2.bf16.msra.mxu1 %v1979_v51  ;;  %3023 = vmatprep.subr.bf16.mxu0 %v1844_v22  ;;  %v541_v51 = vld [vmem:[%s5609_s14 + $0x2f0] sm:$0xff]  ;;  %v1021_v22 = vunpack.c.h.s8.bf16 %v477_v20  ;;  %v1013_v42 = vunpack.c.l.s8.bf16 %v477_v20 }
 0x3f7   : > { %3064 = vmatprep.subr.bf16.mxu1 %v1972_v25  ;;  %v1149_v25 = vunpack.c.h.s8.bf16 %v541_v51 }
 0x3f9   : > { %3024 = vmatpush2.bf16.msra.mxu0 %v1843_v32  ;;  %v470_v32 = vld [vmem:[%s5609_s14 + $0xb8] sm:$0xff] }
 0x3fa   : > { %3065 = vmatpush2.bf16.msra.mxu1 %v1971_v33  ;;  %3025 = vmatprep.subr.bf16.mxu0 %v1836_v35  ;;  %v534_v33 = vld [vmem:[%s5609_s14 + $0x2b8] sm:$0xff] }
 0x3fb   : > { %3066 = vmatprep.subr.bf16.mxu1 %v1964_v10  ;;  %v1134_v50 = vunpack.c.h.s8.bf16 %v534_v33 }
 0x3fd   : > { %3026 = vmatpush2.bf16.msra.mxu0 %v1835_v43  ;;  %v1141_v43 = vunpack.c.l.s8.bf16 %v541_v51 }
 0x3fe   : > { %3067 = vmatpush2.bf16.msra.mxu1 %v1963_v28  ;;  %3027 = vmatprep.subr.bf16.mxu0 %v1828_v47 }
 0x3ff   : > { %3068 = vmatprep.subr.bf16.mxu1 %v1956_v48  ;;  %v1006_v48 = vunpack.c.h.s8.bf16 %v470_v32 }
 0x401   : > { %3028 = vmatpush2.bf16.msra.mxu0 %v1827_v54  ;;  %v533_v54 = vld [vmem:[%s5609_s14 + $0x2b0] sm:$0xff] }
 0x402   : > { %3069 = vmatpush2.bf16.msra.mxu1 %v1955_v29  ;;  %3029 = vmatprep.subr.bf16.mxu0 %v1820_v57  ;;  %v1133_v16 = vunpack.c.h.s8.bf16 %v533_v54 }
 0x403   : > { %3070 = vmatprep.subr.bf16.mxu1 %v1948_v61 }
 0x405   : > { %3030 = vmatpush2.bf16.msra.mxu0 %v1819_v23 }
 0x406   : > { %3071 = vmatpush2.bf16.msra.mxu1 %v1947_v62  ;;  %3031 = vmatprep.subr.bf16.mxu0 %v1812_v0  ;;  %v998_v0 = vunpack.c.l.s8.bf16 %v470_v32 }
 0x407   : > { %3072 = vmatprep.subr.bf16.mxu1 %v1940_v1  ;;  %v1126_v1 = vunpack.c.l.s8.bf16 %v534_v33 }
 0x409   : > { %3032 = vmatpush2.bf16.msra.mxu0 %v1811_v5  ;;  %v990_v5 = vunpack.c.h.s8.bf16 %v462_v31 }
 0x40a   : > { %3073 = vmatpush2.bf16.msra.mxu1 %v1939_v6  ;;  %3033 = vmatprep.subr.bf16.mxu0 %v1804_v7  ;;  %v1118_v6 = vunpack.c.h.s8.bf16 %v526_v4  ;;  %v461_v7 = vld [vmem:[%s5609_s14 + $0x70] sm:$0xff] }
 0x40b   : > { %3074 = vmatprep.subr.bf16.mxu1 %v1932_v12  ;;  %v525_v12 = vld [vmem:[%s5609_s14 + $0x270] sm:$0xff]  ;;  %v989_v63 = vunpack.c.h.s8.bf16 %v461_v7  ;;  %v981_v15 = vunpack.c.l.s8.bf16 %v461_v7 }
 0x40c   : > { %v1117_v9 = vunpack.c.h.s8.bf16 %v525_v12  ;;  %v1109_v17 = vunpack.c.l.s8.bf16 %v525_v12 }
 0x40d   : > { %3034 = vmatpush2.bf16.msra.mxu0 %v1803_v24  ;;  %v982_v24 = vunpack.c.l.s8.bf16 %v462_v31 }
 0x40e   : > { %3075 = vmatpush2.bf16.msra.mxu1 %v1931_v11  ;;  %3035 = vmatprep.subr.bf16.mxu0 %v1796_v14  ;;  %v1110_v11 = vunpack.c.l.s8.bf16 %v526_v4  ;;  %v454_v14 = vld [vmem:[%s5609_s14 + $0x38] sm:$0xff] }
 0x40f   : > { %3076 = vmatprep.subr.bf16.mxu1 %v1924_v53  ;;  %v518_v53 = vld [vmem:[%s5609_s14 + $0x238] sm:$0xff] }
 0x411   : > { %3036 = vmatpush2.bf16.msra.mxu0 %v1795_v37  ;;  %v974_v37 = vunpack.c.h.s8.bf16 %v454_v14 }
 0x412   : > { %3077 = vmatpush2.bf16.msra.mxu1 %v1923_v18  ;;  %3087 = vmatprep.subr.bf16.mxu0 %v1022_v40  ;;  %v1102_v18 = vunpack.c.h.s8.bf16 %v518_v53  ;;  %v453_v40 = vld [vmem:[%s5609_s14 + $0x30] sm:$0xff] }
 0x413   : > { %3128 = vmatprep.subr.bf16.mxu1 %v1150_v19  ;;  %v517_v19 = vld [vmem:[%s5609_s14 + $0x230] sm:$0xff]  ;;  %v973_v20 = vunpack.c.h.s8.bf16 %v453_v40  ;;  %v965_v32 = vunpack.c.l.s8.bf16 %v453_v40 }
 0x414   : > { %v2793_v35 = vpop.f32.mrf.mxu0  ;;  %3038 = vmatmul.mubr.bf16.vlgmr.msra.gmra.mxu0 %v5890_v38  ;;  %v1101_v51 = vunpack.c.h.s8.bf16 %v517_v19  ;;  %v1093_v33 = vunpack.c.l.s8.bf16 %v517_v19 }
 0x415   : > { %v2834_v10 = vpop.f32.mrf.mxu1  ;;  %3079 = vmatmul.mubr.bf16.vlgmr.msra.gmra.mxu1 %v5896_v52  ;;  %3088 = vmatpush1.bf16.msra.mxu0 %v1021_v22  ;;  %v966_v22 = vunpack.c.l.s8.bf16 %v454_v14 }
 0x416   : > { %v6243_v8 = vadd.f32 %v2834_v10, %v2793_v35  ;;  %3129 = vmatpush1.bf16.msra.mxu1 %v1149_v25  ;;  %v2795_v28 = vpop.f32.mrf.mxu0  ;;  %3089 = vmatprep.subr.bf16.mxu0 %v1014_v27  ;;  %v1094_v25 = vunpack.c.l.s8.bf16 %v518_v53  ;;  %v510_v27 = vld [vmem:[%s5609_s14 + $0x1f8] sm:$0xff] }
 0x417   : > { %v2836_v47 = vpop.f32.mrf.mxu1  ;;  %3130 = vmatprep.subr.bf16.mxu1 %v1142_v21  ;;  %3119 = vmatprep.mubr.bf16.mxu0 %v5688_v59  ;;  %v997_v59 = vunpack.c.l.s8.bf16 %v469_v26  ;;  %v574_v21 = vld [vmem:[%s5609_s14 + $0x3f8] sm:$0xff]  ;;  %v1086_v35 = vunpack.c.h.s8.bf16 %v510_v27 }
 0x418   : > { %v6247_v29 = vadd.f32 %v2836_v47, %v2795_v28  ;;  %3160 = vmatprep.mubr.bf16.mxu1 %v5694_v2  ;;  %v2797_v57 = vpop.f32.mrf.mxu0  ;;  %v1125_v2 = vunpack.c.l.s8.bf16 %v533_v54  ;;  %v1214_v10 = vunpack.c.h.s8.bf16 %v574_v21  ;;  %v502_v26 = vld [vmem:[%s5609_s14 + $0x1b8] sm:$0xff] }
 0x419   : > { %v2838_v61 = vpop.f32.mrf.mxu1  ;;  %3090 = vmatpush1.bf16.msra.mxu0 %v1013_v42  ;;  %v509_v42 = vld [vmem:[%s5609_s14 + $0x1f0] sm:$0xff]  ;;  %v566_v54 = vld [vmem:[%s5609_s14 + $0x3b8] sm:$0xff]  ;;  %v1062_v31 = vunpack.c.l.s8.bf16 %v502_v26 }
 0x41a   : > { %3131 = vmatpush1.bf16.msra.mxu1 %v1141_v43  ;;  %v2798_v23 = vpop.f32.mrf.mxu0  ;;  %3091 = vmatprep.subr.bf16.mxu0 %v1006_v48  ;;  %v573_v43 = vld [vmem:[%s5609_s14 + $0x3f0] sm:$0xff]  ;;  %v1085_v28 = vunpack.c.h.s8.bf16 %v509_v42  ;;  %v1078_v48 = vunpack.c.l.s8.bf16 %v510_v27  ;;  %v1077_v57 = vunpack.c.l.s8.bf16 %v509_v42  ;;  %v1190_v4 = vunpack.c.l.s8.bf16 %v566_v54 }
 0x41b   : > { %v2839_v62 = vpop.f32.mrf.mxu1  ;;  %3132 = vmatprep.subr.bf16.mxu1 %v1134_v50  ;;  %v1213_v47 = vunpack.c.h.s8.bf16 %v573_v43  ;;  %v1206_v50 = vunpack.c.l.s8.bf16 %v574_v21  ;;  %v1205_v61 = vunpack.c.l.s8.bf16 %v573_v43  ;;  %v501_v23 = vld [vmem:[%s5609_s14 + $0x1b0] sm:$0xff] }
 0x41c   : > { %v565_v62 = vld [vmem:[%s5609_s14 + $0x3b0] sm:$0xff] }
 0x41d   : > { %3092 = vmatpush1.bf16.msra.mxu0 %v1005_v13  ;;  %v1070_v13 = vunpack.c.h.s8.bf16 %v502_v26 }
 0x41e   : > { %3133 = vmatpush1.bf16.msra.mxu1 %v1133_v16  ;;  %3093 = vmatprep.subr.bf16.mxu0 %v998_v0  ;;  %v1198_v16 = vunpack.c.h.s8.bf16 %v566_v54  ;;  %v1069_v0 = vunpack.c.h.s8.bf16 %v501_v23 }
 0x41f   : > { %3134 = vmatprep.subr.bf16.mxu1 %v1126_v1  ;;  %v1197_v1 = vunpack.c.h.s8.bf16 %v565_v62 }
 0x421   : > { %3094 = vmatpush1.bf16.msra.mxu0 %v997_v59  ;;  %v494_v59 = vld [vmem:[%s5609_s14 + $0x178] sm:$0xff] }
 0x422   : > { %3135 = vmatpush1.bf16.msra.mxu1 %v1125_v2  ;;  %3095 = vmatprep.subr.bf16.mxu0 %v990_v5  ;;  %v558_v2 = vld [vmem:[%s5609_s14 + $0x378] sm:$0xff]  ;;  %v1061_v5 = vunpack.c.l.s8.bf16 %v501_v23  ;;  %v1054_v7 = vunpack.c.h.s8.bf16 %v494_v59  ;;  %v1046_v14 = vunpack.c.l.s8.bf16 %v494_v59 }
 0x423   : > { %3136 = vmatprep.subr.bf16.mxu1 %v1118_v6  ;;  %v1189_v6 = vunpack.c.l.s8.bf16 %v565_v62  ;;  %v1182_v12 = vunpack.c.h.s8.bf16 %v558_v2  ;;  %v1174_v53 = vunpack.c.l.s8.bf16 %v558_v2  ;;  %v597_v2 = vld [vmem:[%s5609_s14 + $0x4b0] sm:$0xff] }
 0x425   : > { %3096 = vmatpush1.bf16.msra.mxu0 %v989_v63  ;;  %v493_v63 = vld [vmem:[%s5609_s14 + $0x170] sm:$0xff] }
 0x426   : > { %3137 = vmatpush1.bf16.msra.mxu1 %v1117_v9  ;;  %3097 = vmatprep.subr.bf16.mxu0 %v982_v24  ;;  %v557_v9 = vld [vmem:[%s5609_s14 + $0x370] sm:$0xff]  ;;  %v1053_v24 = vunpack.c.h.s8.bf16 %v493_v63 }
 0x427   : > { %3138 = vmatprep.subr.bf16.mxu1 %v1110_v11  ;;  %v1181_v11 = vunpack.c.h.s8.bf16 %v557_v9 }
 0x429   : > { %3098 = vmatpush1.bf16.msra.mxu0 %v981_v15  ;;  %v486_v15 = vld [vmem:[%s5609_s14 + $0x138] sm:$0xff] }
 0x42a   : > { %3139 = vmatpush1.bf16.msra.mxu1 %v1109_v17  ;;  %3099 = vmatprep.subr.bf16.mxu0 %v974_v37  ;;  %v550_v17 = vld [vmem:[%s5609_s14 + $0x338] sm:$0xff]  ;;  %v1045_v37 = vunpack.c.l.s8.bf16 %v493_v63  ;;  %v1038_v40 = vunpack.c.h.s8.bf16 %v486_v15  ;;  %v1030_v27 = vunpack.c.l.s8.bf16 %v486_v15 }
 0x42b   : > { %3140 = vmatprep.subr.bf16.mxu1 %v1102_v18  ;;  %v1173_v18 = vunpack.c.l.s8.bf16 %v557_v9  ;;  %v1166_v19 = vunpack.c.h.s8.bf16 %v550_v17  ;;  %v1158_v21 = vunpack.c.l.s8.bf16 %v550_v17 }
 0x42d   : > { %3100 = vmatpush1.bf16.msra.mxu0 %v973_v20  ;;  %v485_v20 = vld [vmem:[%s5609_s14 + $0x130] sm:$0xff] }
 0x42e   : > { %3141 = vmatpush1.bf16.msra.mxu1 %v1101_v51  ;;  %3101 = vmatprep.subr.bf16.mxu0 %v966_v22  ;;  %v549_v51 = vld [vmem:[%s5609_s14 + $0x330] sm:$0xff]  ;;  %v1037_v22 = vunpack.c.h.s8.bf16 %v485_v20 }
 0x42f   : > { %3142 = vmatprep.subr.bf16.mxu1 %v1094_v25  ;;  %v1165_v25 = vunpack.c.h.s8.bf16 %v549_v51 }
 0x431   : > { %3102 = vmatpush1.bf16.msra.mxu0 %v965_v32  ;;  %v606_v32 = vld [vmem:[%s5609_s14 + $0x4f8] sm:$0xff] }
 0x432   : > { %3143 = vmatpush1.bf16.msra.mxu1 %v1093_v33  ;;  %3103 = vmatprep.subr.bf16.mxu0 %v1086_v35  ;;  %v670_v33 = vld [vmem:[%s5609_s14 + $0x6f8] sm:$0xff]  ;;  %v1029_v35 = vunpack.c.l.s8.bf16 %v485_v20  ;;  %v1278_v42 = vunpack.c.h.s8.bf16 %v606_v32  ;;  %v1270_v26 = vunpack.c.l.s8.bf16 %v606_v32 }
 0x433   : > { %3144 = vmatprep.subr.bf16.mxu1 %v1214_v10  ;;  %v1157_v10 = vunpack.c.l.s8.bf16 %v549_v51  ;;  %v1406_v43 = vunpack.c.h.s8.bf16 %v670_v33  ;;  %v1398_v54 = vunpack.c.l.s8.bf16 %v670_v33 }
 0x435   : > { %3104 = vmatpush2.bf16.msra.mxu0 %v1085_v28  ;;  %v605_v28 = vld [vmem:[%s5609_s14 + $0x4f0] sm:$0xff] }
 0x436   : > { %3145 = vmatpush2.bf16.msra.mxu1 %v1213_v47  ;;  %3105 = vmatprep.subr.bf16.mxu0 %v1078_v48  ;;  %v669_v47 = vld [vmem:[%s5609_s14 + $0x6f0] sm:$0xff]  ;;  %v1277_v48 = vunpack.c.h.s8.bf16 %v605_v28  ;;  %v1269_v62 = vunpack.c.l.s8.bf16 %v605_v28 }
 0x437   : > { %3146 = vmatprep.subr.bf16.mxu1 %v1206_v50  ;;  %v1405_v50 = vunpack.c.h.s8.bf16 %v669_v47 }
 0x439   : > { %3106 = vmatpush2.bf16.msra.mxu0 %v1077_v57  ;;  %v598_v57 = vld [vmem:[%s5609_s14 + $0x4b8] sm:$0xff] }
 0x43a   : > { %3147 = vmatpush2.bf16.msra.mxu1 %v1205_v61  ;;  %3107 = vmatprep.subr.bf16.mxu0 %v1070_v13  ;;  %v662_v61 = vld [vmem:[%s5609_s14 + $0x6b8] sm:$0xff] }
 0x43b   : > { %3148 = vmatprep.subr.bf16.mxu1 %v1198_v16  ;;  %v1390_v59 = vunpack.c.h.s8.bf16 %v662_v61 }
 0x43d   : > { %3108 = vmatpush2.bf16.msra.mxu0 %v1069_v0  ;;  %v1397_v0 = vunpack.c.l.s8.bf16 %v669_v47 }
 0x43e   : > { %3149 = vmatpush2.bf16.msra.mxu1 %v1197_v1  ;;  %3109 = vmatprep.subr.bf16.mxu0 %v1062_v31 }
 0x43f   : > { %3150 = vmatprep.subr.bf16.mxu1 %v1190_v4  ;;  %v1262_v4 = vunpack.c.h.s8.bf16 %v598_v57 }
 0x441   : > { %3110 = vmatpush2.bf16.msra.mxu0 %v1061_v5  ;;  %v661_v5 = vld [vmem:[%s5609_s14 + $0x6b0] sm:$0xff] }
 0x442   : > { %3151 = vmatpush2.bf16.msra.mxu1 %v1189_v6  ;;  %3111 = vmatprep.subr.bf16.mxu0 %v1054_v7  ;;  %v1389_v63 = vunpack.c.h.s8.bf16 %v661_v5 }
 0x443   : > { %3152 = vmatprep.subr.bf16.mxu1 %v1182_v12  ;;  %v1261_v12 = vunpack.c.h.s8.bf16 %v597_v2 }
 0x445   : > { %3112 = vmatpush2.bf16.msra.mxu0 %v1053_v24 }
 0x446   : > { %3153 = vmatpush2.bf16.msra.mxu1 %v1181_v11  ;;  %3113 = vmatprep.subr.bf16.mxu0 %v1046_v14  ;;  %v1382_v11 = vunpack.c.l.s8.bf16 %v662_v61  ;;  %v654_v14 = vld [vmem:[%s5609_s14 + $0x678] sm:$0xff] }
 0x447   : > { %3154 = vmatprep.subr.bf16.mxu1 %v1174_v53  ;;  %v1381_v53 = vunpack.c.l.s8.bf16 %v661_v5  ;;  %v1374_v17 = vunpack.c.h.s8.bf16 %v654_v14  ;;  %v1366_v51 = vunpack.c.l.s8.bf16 %v654_v14 }
 0x449   : > { %3114 = vmatpush2.bf16.msra.mxu0 %v1045_v37  ;;  %v589_v37 = vld [vmem:[%s5609_s14 + $0x470] sm:$0xff] }
 0x44a   : > { %3155 = vmatpush2.bf16.msra.mxu1 %v1173_v18  ;;  %3115 = vmatprep.subr.bf16.mxu0 %v1038_v40  ;;  %v653_v18 = vld [vmem:[%s5609_s14 + $0x670] sm:$0xff]  ;;  %v1245_v40 = vunpack.c.h.s8.bf16 %v589_v37 }
 0x44b   : > { %3156 = vmatprep.subr.bf16.mxu1 %v1166_v19  ;;  %v1373_v19 = vunpack.c.h.s8.bf16 %v653_v18 }
 0x44d   : > { %3116 = vmatpush2.bf16.msra.mxu0 %v1037_v22  ;;  %v582_v22 = vld [vmem:[%s5609_s14 + $0x438] sm:$0xff] }
 0x44e   : > { %3157 = vmatpush2.bf16.msra.mxu1 %v1165_v25  ;;  %3117 = vmatprep.subr.bf16.mxu0 %v1030_v27  ;;  %v646_v25 = vld [vmem:[%s5609_s14 + $0x638] sm:$0xff]  ;;  %v1237_v27 = vunpack.c.l.s8.bf16 %v589_v37  ;;  %v1230_v32 = vunpack.c.h.s8.bf16 %v582_v22  ;;  %v1222_v28 = vunpack.c.l.s8.bf16 %v582_v22 }
 0x44f   : > { %3158 = vmatprep.subr.bf16.mxu1 %v1158_v21  ;;  %v1365_v21 = vunpack.c.l.s8.bf16 %v653_v18  ;;  %v1358_v33 = vunpack.c.h.s8.bf16 %v646_v25  ;;  %v1350_v47 = vunpack.c.l.s8.bf16 %v646_v25 }
 0x451   : > { %3118 = vmatpush2.bf16.msra.mxu0 %v1029_v35  ;;  %v581_v35 = vld [vmem:[%s5609_s14 + $0x430] sm:$0xff] }
 0x452   : > { %3159 = vmatpush2.bf16.msra.mxu1 %v1157_v10  ;;  %3169 = vmatprep.subr.bf16.mxu0 %v1278_v42  ;;  %v645_v10 = vld [vmem:[%s5609_s14 + $0x630] sm:$0xff]  ;;  %v1229_v42 = vunpack.c.h.s8.bf16 %v581_v35 }
 0x453   : > { %3210 = vmatprep.subr.bf16.mxu1 %v1406_v43  ;;  %v1357_v43 = vunpack.c.h.s8.bf16 %v645_v10 }
 0x454   : > { %v2875_v13 = vpop.f32.mrf.mxu0  ;;  %3120 = vmatmul.mubr.bf16.vlgmr.msra.gmra.mxu0 %v5721_v49 }
 0x455   : > { %v2916_v16 = vpop.f32.mrf.mxu1  ;;  %3161 = vmatmul.mubr.bf16.vlgmr.msra.gmra.mxu1 %v5730_v60  ;;  %v2876_v23 = vadd.f32 %v2875_v13, %v6243_v8  ;;  %3170 = vmatpush1.bf16.msra.mxu0 %v1277_v48  ;;  %v638_v48 = vld [vmem:[%s5609_s14 + $0x5f8] sm:$0xff]  ;;  %v637_v13 = vld [vmem:[%s5609_s14 + $0x5f0] sm:$0xff] }
 0x456   : > { %3211 = vmatpush1.bf16.msra.mxu1 %v1405_v50  ;;  %v2877_v1 = vpop.f32.mrf.mxu0  ;;  %3171 = vmatprep.subr.bf16.mxu0 %v1270_v26  ;;  %v702_v50 = vld [vmem:[%s5609_s14 + $0x7f8] sm:$0xff]  ;;  %v1221_v26 = vunpack.c.l.s8.bf16 %v581_v35 }
 0x457   : > { %v2918_v31 = vpop.f32.mrf.mxu1  ;;  %3212 = vmatprep.subr.bf16.mxu1 %v1398_v54  ;;  %v6286_v6 = vadd.f32 %v2916_v16, %v2876_v23  ;;  %v2878_v49 = vadd.f32 %v2877_v1, %v6247_v29  ;;  %3201 = vmatprep.mubr.bf16.mxu0 %v5726_v58  ;;  %v1254_v29 = vunpack.c.l.s8.bf16 %v598_v57  ;;  %v590_v58 = vld [vmem:[%s5609_s14 + $0x478] sm:$0xff]  ;;  %v1349_v54 = vunpack.c.l.s8.bf16 %v645_v10  ;;  %v701_v16 = vld [vmem:[%s5609_s14 + $0x7f0] sm:$0xff] }
 0x458   : > { %3242 = vmatprep.mubr.bf16.mxu1 %v5736_v3  ;;  %v2879_v60 = vpop.f32.mrf.mxu0  ;;  %v1253_v3 = vunpack.c.l.s8.bf16 %v597_v2  ;;  %v1246_v15 = vunpack.c.h.s8.bf16 %v590_v58  ;;  %v1238_v20 = vunpack.c.l.s8.bf16 %v590_v58  ;;  %v1342_v57 = vunpack.c.h.s8.bf16 %v638_v48 }
 0x459   : > { %v2920_v8 = vpop.f32.mrf.mxu1  ;;  %v6291_v7 = vadd.f32 %v2918_v31, %v2878_v49  ;;  %3172 = vmatpush1.bf16.msra.mxu0 %v1269_v62  ;;  %v1470_v61 = vunpack.c.h.s8.bf16 %v702_v50  ;;  %v1341_v23 = vunpack.c.h.s8.bf16 %v637_v13  ;;  %v1469_v62 = vunpack.c.h.s8.bf16 %v701_v16  ;;  %v630_v31 = vld [vmem:[%s5609_s14 + $0x5b8] sm:$0xff]  ;;  %v629_v60 = vld [vmem:[%s5609_s14 + $0x5b0] sm:$0xff] }
 0x45a   : > { %3213 = vmatpush1.bf16.msra.mxu1 %v1397_v0  ;;  %v2880_v9 = vpop.f32.mrf.mxu0  ;;  %3173 = vmatprep.subr.bf16.mxu0 %v1262_v4  ;;  %v1334_v0 = vunpack.c.l.s8.bf16 %v638_v48  ;;  %v1462_v1 = vunpack.c.l.s8.bf16 %v702_v50  ;;  %v694_v4 = vld [vmem:[%s5609_s14 + $0x7b8] sm:$0xff]  ;;  %v1461_v2 = vunpack.c.l.s8.bf16 %v701_v16  ;;  %v1326_v5 = vunpack.c.h.s8.bf16 %v630_v31  ;;  %v693_v8 = vld [vmem:[%s5609_s14 + $0x7b0] sm:$0xff] }
 0x45b   : > { %v2921_v24 = vpop.f32.mrf.mxu1  ;;  %3214 = vmatprep.subr.bf16.mxu1 %v1390_v59  ;;  %v1333_v59 = vunpack.c.l.s8.bf16 %v637_v13  ;;  %v1454_v49 = vunpack.c.h.s8.bf16 %v694_v4  ;;  %v1318_v9 = vunpack.c.l.s8.bf16 %v630_v31  ;;  %v1317_v58 = vunpack.c.l.s8.bf16 %v629_v60 }
 0x45c   : > { %v1446_v24 = vunpack.c.l.s8.bf16 %v694_v4  ;;  %v1445_v14 = vunpack.c.l.s8.bf16 %v693_v8 }
 0x45d   : > { %3174 = vmatpush1.bf16.msra.mxu0 %v1261_v12  ;;  %v1325_v12 = vunpack.c.h.s8.bf16 %v629_v60 }
 0x45e   : > { %3215 = vmatpush1.bf16.msra.mxu1 %v1389_v63  ;;  %3175 = vmatprep.subr.bf16.mxu0 %v1254_v29  ;;  %v1453_v63 = vunpack.c.h.s8.bf16 %v693_v8  ;;  %v622_v29 = vld [vmem:[%s5609_s14 + $0x578] sm:$0xff] }
 0x45f   : > { %3216 = vmatprep.subr.bf16.mxu1 %v1382_v11  ;;  %v686_v11 = vld [vmem:[%s5609_s14 + $0x778] sm:$0xff] }
 0x461   : > { %3176 = vmatpush1.bf16.msra.mxu0 %v1253_v3  ;;  %v1310_v3 = vunpack.c.h.s8.bf16 %v622_v29 }
 0x462   : > { %3217 = vmatpush1.bf16.msra.mxu1 %v1381_v53  ;;  %3177 = vmatprep.subr.bf16.mxu0 %v1246_v15  ;;  %v1438_v53 = vunpack.c.h.s8.bf16 %v686_v11  ;;  %v621_v15 = vld [vmem:[%s5609_s14 + $0x570] sm:$0xff] }
 0x463   : > { %3218 = vmatprep.subr.bf16.mxu1 %v1374_v17  ;;  %v685_v17 = vld [vmem:[%s5609_s14 + $0x770] sm:$0xff]  ;;  %v1309_v37 = vunpack.c.h.s8.bf16 %v621_v15  ;;  %v1301_v22 = vunpack.c.l.s8.bf16 %v621_v15  ;;  %v782_v15 = vld [vmem:[%s5609_s14 + $0xa78] sm:$0xff] }
 0x464   : > { %v1437_v18 = vunpack.c.h.s8.bf16 %v685_v17  ;;  %v1429_v25 = vunpack.c.l.s8.bf16 %v685_v17 }
 0x465   : > { %3178 = vmatpush1.bf16.msra.mxu0 %v1245_v40  ;;  %v1302_v40 = vunpack.c.l.s8.bf16 %v622_v29 }
 0x466   : > { %3219 = vmatpush1.bf16.msra.mxu1 %v1373_v19  ;;  %3179 = vmatprep.subr.bf16.mxu0 %v1238_v20  ;;  %v1430_v19 = vunpack.c.l.s8.bf16 %v686_v11  ;;  %v614_v20 = vld [vmem:[%s5609_s14 + $0x538] sm:$0xff] }
 0x467   : > { %3220 = vmatprep.subr.bf16.mxu1 %v1366_v51  ;;  %v678_v51 = vld [vmem:[%s5609_s14 + $0x738] sm:$0xff] }
 0x469   : > { %3180 = vmatpush1.bf16.msra.mxu0 %v1237_v27  ;;  %v1294_v27 = vunpack.c.h.s8.bf16 %v614_v20 }
 0x46a   : > { %3221 = vmatpush1.bf16.msra.mxu1 %v1365_v21  ;;  %3181 = vmatprep.subr.bf16.mxu0 %v1230_v32  ;;  %v1422_v21 = vunpack.c.h.s8.bf16 %v678_v51  ;;  %v613_v32 = vld [vmem:[%s5609_s14 + $0x530] sm:$0xff] }
 0x46b   : > { %3222 = vmatprep.subr.bf16.mxu1 %v1358_v33  ;;  %v677_v33 = vld [vmem:[%s5609_s14 + $0x730] sm:$0xff]  ;;  %v1293_v35 = vunpack.c.h.s8.bf16 %v613_v32  ;;  %v1285_v48 = vunpack.c.l.s8.bf16 %v613_v32 }
 0x46c   : > { %v1421_v10 = vunpack.c.h.s8.bf16 %v677_v33  ;;  %v1413_v50 = vunpack.c.l.s8.bf16 %v677_v33 }
 0x46d   : > { %3182 = vmatpush1.bf16.msra.mxu0 %v1229_v42  ;;  %v1286_v42 = vunpack.c.l.s8.bf16 %v614_v20 }
 0x46e   : > { %3223 = vmatpush1.bf16.msra.mxu1 %v1357_v43  ;;  %3183 = vmatprep.subr.bf16.mxu0 %v1222_v28  ;;  %v1414_v43 = vunpack.c.l.s8.bf16 %v678_v51  ;;  %v734_v28 = vld [vmem:[%s5609_s14 + $0x8f8] sm:$0xff] }
 0x46f   : > { %3224 = vmatprep.subr.bf16.mxu1 %v1350_v47  ;;  %v798_v47 = vld [vmem:[%s5609_s14 + $0xaf8] sm:$0xff] }
 0x471   : > { %3184 = vmatpush1.bf16.msra.mxu0 %v1221_v26  ;;  %v1534_v26 = vunpack.c.h.s8.bf16 %v734_v28 }
 0x472   : > { %3225 = vmatpush1.bf16.msra.mxu1 %v1349_v54  ;;  %3185 = vmatprep.subr.bf16.mxu0 %v1342_v57  ;;  %v1662_v54 = vunpack.c.h.s8.bf16 %v798_v47  ;;  %v733_v57 = vld [vmem:[%s5609_s14 + $0x8f0] sm:$0xff] }
 0x473   : > { %3226 = vmatprep.subr.bf16.mxu1 %v1470_v61  ;;  %v797_v61 = vld [vmem:[%s5609_s14 + $0xaf0] sm:$0xff]  ;;  %v1533_v13 = vunpack.c.h.s8.bf16 %v733_v57 }
 0x474   : > { %v1661_v16 = vunpack.c.h.s8.bf16 %v797_v61 }
 0x475   : > { %3186 = vmatpush2.bf16.msra.mxu0 %v1341_v23  ;;  %v1526_v23 = vunpack.c.l.s8.bf16 %v734_v28 }
 0x476   : > { %3227 = vmatpush2.bf16.msra.mxu1 %v1469_v62  ;;  %3187 = vmatprep.subr.bf16.mxu0 %v1334_v0  ;;  %v1654_v62 = vunpack.c.l.s8.bf16 %v798_v47  ;;  %v726_v0 = vld [vmem:[%s5609_s14 + $0x8b8] sm:$0xff] }
 0x477   : > { %3228 = vmatprep.subr.bf16.mxu1 %v1462_v1  ;;  %v790_v1 = vld [vmem:[%s5609_s14 + $0xab8] sm:$0xff]  ;;  %v1518_v8 = vunpack.c.h.s8.bf16 %v726_v0 }
 0x479   : > { %3188 = vmatpush2.bf16.msra.mxu0 %v1333_v59 }
 0x47a   : > { %3229 = vmatpush2.bf16.msra.mxu1 %v1461_v2  ;;  %3189 = vmatprep.subr.bf16.mxu0 %v1326_v5  ;;  %v1525_v2 = vunpack.c.l.s8.bf16 %v733_v57  ;;  %v1653_v5 = vunpack.c.l.s8.bf16 %v797_v61 }
 0x47b   : > { %3230 = vmatprep.subr.bf16.mxu1 %v1454_v49 }
 0x47d   : > { %3190 = vmatpush2.bf16.msra.mxu0 %v1325_v12  ;;  %v1646_v12 = vunpack.c.h.s8.bf16 %v790_v1 }
 0x47e   : > { %3231 = vmatpush2.bf16.msra.mxu1 %v1453_v63  ;;  %3191 = vmatprep.subr.bf16.mxu0 %v1318_v9  ;;  %v725_v63 = vld [vmem:[%s5609_s14 + $0x8b0] sm:$0xff] }
 0x47f   : > { %3232 = vmatprep.subr.bf16.mxu1 %v1446_v24  ;;  %v789_v9 = vld [vmem:[%s5609_s14 + $0xab0] sm:$0xff]  ;;  %v1517_v11 = vunpack.c.h.s8.bf16 %v725_v63 }
 0x480   : > { %v1637_v17 = vunpack.c.l.s8.bf16 %v789_v9 }
 0x481   : > { %3192 = vmatpush2.bf16.msra.mxu0 %v1317_v58  ;;  %v1645_v58 = vunpack.c.h.s8.bf16 %v789_v9 }
 0x482   : > { %3233 = vmatpush2.bf16.msra.mxu1 %v1445_v14  ;;  %3193 = vmatprep.subr.bf16.mxu0 %v1310_v3 }
 0x483   : > { %3234 = vmatprep.subr.bf16.mxu1 %v1438_v53  ;;  %v1638_v53 = vunpack.c.l.s8.bf16 %v790_v1 }
 0x485   : > { %3194 = vmatpush2.bf16.msra.mxu0 %v1309_v37 }
 0x486   : > { %3235 = vmatpush2.bf16.msra.mxu1 %v1437_v18  ;;  %3195 = vmatprep.subr.bf16.mxu0 %v1302_v40  ;;  %v1630_v18 = vunpack.c.h.s8.bf16 %v782_v15  ;;  %v717_v40 = vld [vmem:[%s5609_s14 + $0x870] sm:$0xff] }
 0x487   : > { %3236 = vmatprep.subr.bf16.mxu1 %v1430_v19  ;;  %v781_v19 = vld [vmem:[%s5609_s14 + $0xa70] sm:$0xff]  ;;  %v1501_v20 = vunpack.c.h.s8.bf16 %v717_v40  ;;  %v1493_v32 = vunpack.c.l.s8.bf16 %v717_v40  ;;  %v742_v40 = vld [vmem:[%s5609_s14 + $0x938] sm:$0xff] }
 0x488   : > { %v1629_v51 = vunpack.c.h.s8.bf16 %v781_v19  ;;  %v1621_v33 = vunpack.c.l.s8.bf16 %v781_v19  ;;  %v806_v19 = vld [vmem:[%s5609_s14 + $0xb38] sm:$0xff] }
 0x489   : > { %3196 = vmatpush2.bf16.msra.mxu0 %v1301_v22 }
 0x48a   : > { %3237 = vmatpush2.bf16.msra.mxu1 %v1429_v25  ;;  %3197 = vmatprep.subr.bf16.mxu0 %v1294_v27  ;;  %v1622_v25 = vunpack.c.l.s8.bf16 %v782_v15  ;;  %v710_v27 = vld [vmem:[%s5609_s14 + $0x838] sm:$0xff]  ;;  %v813_v15 = vld [vmem:[%s5609_s14 + $0xb70] sm:$0xff] }
 0x48b   : > { %3238 = vmatprep.subr.bf16.mxu1 %v1422_v21  ;;  %v774_v21 = vld [vmem:[%s5609_s14 + $0xa38] sm:$0xff] }
 0x48d   : > { %3198 = vmatpush2.bf16.msra.mxu0 %v1293_v35  ;;  %v1486_v35 = vunpack.c.h.s8.bf16 %v710_v27 }
 0x48e   : > { %3239 = vmatpush2.bf16.msra.mxu1 %v1421_v10  ;;  %3199 = vmatprep.subr.bf16.mxu0 %v1286_v42  ;;  %v1614_v10 = vunpack.c.h.s8.bf16 %v774_v21  ;;  %v709_v42 = vld [vmem:[%s5609_s14 + $0x830] sm:$0xff] }
 0x48f   : > { %3240 = vmatprep.subr.bf16.mxu1 %v1414_v43  ;;  %v773_v43 = vld [vmem:[%s5609_s14 + $0xa30] sm:$0xff]  ;;  %v1485_v28 = vunpack.c.h.s8.bf16 %v709_v42  ;;  %v1477_v57 = vunpack.c.l.s8.bf16 %v709_v42  ;;  %v862_v42 = vld [vmem:[%s5609_s14 + $0xcf8] sm:$0xff] }
 0x490   : > { %v1613_v47 = vunpack.c.h.s8.bf16 %v773_v43  ;;  %v1605_v61 = vunpack.c.l.s8.bf16 %v773_v43  ;;  %v926_v43 = vld [vmem:[%s5609_s14 + $0xef8] sm:$0xff] }
 0x491   : > { %3200 = vmatpush2.bf16.msra.mxu0 %v1285_v48  ;;  %v1478_v48 = vunpack.c.l.s8.bf16 %v710_v27  ;;  %v741_v27 = vld [vmem:[%s5609_s14 + $0x930] sm:$0xff] }
 0x492   : > { %3241 = vmatpush2.bf16.msra.mxu1 %v1413_v50  ;;  %3251 = vmatprep.subr.bf16.mxu0 %v1534_v26  ;;  %v1606_v50 = vunpack.c.l.s8.bf16 %v774_v21  ;;  %v766_v26 = vld [vmem:[%s5609_s14 + $0x9f8] sm:$0xff]  ;;  %v805_v21 = vld [vmem:[%s5609_s14 + $0xb30] sm:$0xff] }
 0x493   : > { %3292 = vmatprep.subr.bf16.mxu1 %v1662_v54  ;;  %v830_v54 = vld [vmem:[%s5609_s14 + $0xbf8] sm:$0xff] }
 0x494   : > { %v2957_v31 = vpop.f32.mrf.mxu0  ;;  %3202 = vmatmul.mubr.bf16.vlgmr.msra.gmra.mxu0 %v5781_v36 }
 0x495   : > { %v2998_v4 = vpop.f32.mrf.mxu1  ;;  %3243 = vmatmul.mubr.bf16.vlgmr.msra.gmra.mxu1 %v5790_v46  ;;  %v2958_v59 = vadd.f32 %v2957_v31, %v6286_v6  ;;  %3252 = vmatpush1.bf16.msra.mxu0 %v1533_v13  ;;  %v1598_v13 = vunpack.c.h.s8.bf16 %v766_v26  ;;  %v1590_v31 = vunpack.c.l.s8.bf16 %v766_v26  ;;  %v861_v26 = vld [vmem:[%s5609_s14 + $0xcf0] sm:$0xff] }
 0x496   : > { %3293 = vmatpush1.bf16.msra.mxu1 %v1661_v16  ;;  %v2959_v49 = vpop.f32.mrf.mxu0  ;;  %3253 = vmatprep.subr.bf16.mxu0 %v1526_v23  ;;  %v1726_v16 = vunpack.c.h.s8.bf16 %v830_v54  ;;  %v765_v23 = vld [vmem:[%s5609_s14 + $0x9f0] sm:$0xff] }
 0x497   : > { %v3000_v60 = vpop.f32.mrf.mxu1  ;;  %3294 = vmatprep.subr.bf16.mxu1 %v1654_v62  ;;  %v6328_v24 = vadd.f32 %v2998_v4, %v2958_v59  ;;  %v2960_v36 = vadd.f32 %v2959_v49, %v6291_v7  ;;  %3283 = vmatprep.mubr.bf16.mxu0 %v5786_v45  ;;  %v1510_v7 = vunpack.c.l.s8.bf16 %v726_v0  ;;  %v718_v45 = vld [vmem:[%s5609_s14 + $0x878] sm:$0xff]  ;;  %v829_v62 = vld [vmem:[%s5609_s14 + $0xbf0] sm:$0xff]  ;;  %v1597_v0 = vunpack.c.h.s8.bf16 %v765_v23 }
 0x498   : > { %3324 = vmatprep.mubr.bf16.mxu1 %v5796_v55  ;;  %v2961_v46 = vpop.f32.mrf.mxu0  ;;  %v1509_v55 = vunpack.c.l.s8.bf16 %v725_v63  ;;  %v1502_v37 = vunpack.c.h.s8.bf16 %v718_v45  ;;  %v1494_v22 = vunpack.c.l.s8.bf16 %v718_v45  ;;  %v1725_v1 = vunpack.c.h.s8.bf16 %v829_v62  ;;  %v758_v59 = vld [vmem:[%s5609_s14 + $0x9b8] sm:$0xff]  ;;  %v821_v63 = vld [vmem:[%s5609_s14 + $0xbb0] sm:$0xff] }
 0x499   : > { %v3002_v6 = vpop.f32.mrf.mxu1  ;;  %v6333_v29 = vadd.f32 %v3000_v60, %v2960_v36  ;;  %3254 = vmatpush1.bf16.msra.mxu0 %v1525_v2  ;;  %v1718_v4 = vunpack.c.l.s8.bf16 %v830_v54  ;;  %v822_v2 = vld [vmem:[%s5609_s14 + $0xbb8] sm:$0xff]  ;;  %v1717_v49 = vunpack.c.l.s8.bf16 %v829_v62  ;;  %v1582_v60 = vunpack.c.h.s8.bf16 %v758_v59  ;;  %v749_v45 = vld [vmem:[%s5609_s14 + $0x970] sm:$0xff] }
 0x49a   : > { %3295 = vmatpush1.bf16.msra.mxu1 %v1653_v5  ;;  %v2962_v14 = vpop.f32.mrf.mxu0  ;;  %3255 = vmatprep.subr.bf16.mxu0 %v1518_v8  ;;  %v1589_v5 = vunpack.c.l.s8.bf16 %v765_v23  ;;  %v1710_v8 = vunpack.c.h.s8.bf16 %v822_v2  ;;  %v1709_v36 = vunpack.c.h.s8.bf16 %v821_v63  ;;  %v1574_v46 = vunpack.c.l.s8.bf16 %v758_v59  ;;  %v925_v54 = vld [vmem:[%s5609_s14 + $0xef0] sm:$0xff]  ;;  %v854_v23 = vld [vmem:[%s5609_s14 + $0xcb8] sm:$0xff] }
 0x49b   : > { %v3003_v3 = vpop.f32.mrf.mxu1  ;;  %3296 = vmatprep.subr.bf16.mxu1 %v1646_v12  ;;  %v757_v12 = vld [vmem:[%s5609_s14 + $0x9b0] sm:$0xff]  ;;  %v1702_v6 = vunpack.c.l.s8.bf16 %v822_v2  ;;  %v918_v62 = vld [vmem:[%s5609_s14 + $0xeb8] sm:$0xff]  ;;  %v1909_v59 = vunpack.c.l.s8.bf16 %v925_v54 }
 0x49c   : > { %v1581_v9 = vunpack.c.h.s8.bf16 %v757_v12  ;;  %v1573_v14 = vunpack.c.l.s8.bf16 %v757_v12  ;;  %v1701_v3 = vunpack.c.l.s8.bf16 %v821_v63  ;;  %v917_v12 = vld [vmem:[%s5609_s14 + $0xeb0] sm:$0xff] }
 0x49d   : > { %3256 = vmatpush1.bf16.msra.mxu0 %v1517_v11  ;;  %v750_v11 = vld [vmem:[%s5609_s14 + $0x978] sm:$0xff] }
 0x49e   : > { %3297 = vmatpush1.bf16.msra.mxu1 %v1645_v58  ;;  %3257 = vmatprep.subr.bf16.mxu0 %v1510_v7  ;;  %v814_v58 = vld [vmem:[%s5609_s14 + $0xb78] sm:$0xff]  ;;  %v1566_v7 = vunpack.c.h.s8.bf16 %v750_v11 }
 0x49f   : > { %3298 = vmatprep.subr.bf16.mxu1 %v1638_v53  ;;  %v1694_v53 = vunpack.c.h.s8.bf16 %v814_v58 }
 0x4a1   : > { %3258 = vmatpush1.bf16.msra.mxu0 %v1509_v55  ;;  %v1565_v55 = vunpack.c.h.s8.bf16 %v749_v45 }
 0x4a2   : > { %3299 = vmatpush1.bf16.msra.mxu1 %v1637_v17  ;;  %3259 = vmatprep.subr.bf16.mxu0 %v1502_v37  ;;  %v1693_v17 = vunpack.c.h.s8.bf16 %v813_v15  ;;  %v1558_v37 = vunpack.c.l.s8.bf16 %v750_v11 }
 0x4a3   : > { %3300 = vmatprep.subr.bf16.mxu1 %v1630_v18  ;;  %v1686_v18 = vunpack.c.l.s8.bf16 %v814_v58  ;;  %v846_v58 = vld [vmem:[%s5609_s14 + $0xc78] sm:$0xff] }
 0x4a5   : > { %3260 = vmatpush1.bf16.msra.mxu0 %v1501_v20  ;;  %v1557_v20 = vunpack.c.l.s8.bf16 %v749_v45 }
 0x4a6   : > { %3301 = vmatpush1.bf16.msra.mxu1 %v1629_v51  ;;  %3261 = vmatprep.subr.bf16.mxu0 %v1494_v22  ;;  %v1685_v51 = vunpack.c.l.s8.bf16 %v813_v15  ;;  %v1550_v22 = vunpack.c.h.s8.bf16 %v742_v40  ;;  %v845_v15 = vld [vmem:[%s5609_s14 + $0xc70] sm:$0xff] }
 0x4a7   : > { %3302 = vmatprep.subr.bf16.mxu1 %v1622_v25  ;;  %v1678_v25 = vunpack.c.h.s8.bf16 %v806_v19 }
 0x4a9   : > { %3262 = vmatpush1.bf16.msra.mxu0 %v1493_v32  ;;  %v1549_v32 = vunpack.c.h.s8.bf16 %v741_v27 }
 0x4aa   : > { %3303 = vmatpush1.bf16.msra.mxu1 %v1621_v33  ;;  %3263 = vmatprep.subr.bf16.mxu0 %v1486_v35  ;;  %v1677_v33 = vunpack.c.h.s8.bf16 %v805_v21  ;;  %v1542_v35 = vunpack.c.l.s8.bf16 %v742_v40 }
 0x4ab   : > { %3304 = vmatprep.subr.bf16.mxu1 %v1614_v10  ;;  %v1670_v10 = vunpack.c.l.s8.bf16 %v806_v19  ;;  %v838_v19 = vld [vmem:[%s5609_s14 + $0xc38] sm:$0xff] }
 0x4ad   : > { %3264 = vmatpush1.bf16.msra.mxu0 %v1485_v28  ;;  %v1541_v28 = vunpack.c.l.s8.bf16 %v741_v27 }
 0x4ae   : > { %3305 = vmatpush1.bf16.msra.mxu1 %v1613_v47  ;;  %3265 = vmatprep.subr.bf16.mxu0 %v1478_v48  ;;  %v1669_v47 = vunpack.c.l.s8.bf16 %v805_v21  ;;  %v1790_v48 = vunpack.c.h.s8.bf16 %v862_v42  ;;  %v837_v21 = vld [vmem:[%s5609_s14 + $0xc30] sm:$0xff] }
 0x4af   : > { %3306 = vmatprep.subr.bf16.mxu1 %v1606_v50  ;;  %v1918_v50 = vunpack.c.h.s8.bf16 %v926_v43 }
 0x4b1   : > { %3266 = vmatpush1.bf16.msra.mxu0 %v1477_v57  ;;  %v1789_v57 = vunpack.c.h.s8.bf16 %v861_v26 }
 0x4b2   : > { %3307 = vmatpush1.bf16.msra.mxu1 %v1605_v61  ;;  %3267 = vmatprep.subr.bf16.mxu0 %v1598_v13  ;;  %v1917_v61 = vunpack.c.h.s8.bf16 %v925_v54  ;;  %v1782_v13 = vunpack.c.l.s8.bf16 %v862_v42  ;;  %v893_v54 = vld [vmem:[%s5609_s14 + $0xdf0] sm:$0xff] }
 0x4b3   : > { %3308 = vmatprep.subr.bf16.mxu1 %v1726_v16  ;;  %v1910_v16 = vunpack.c.l.s8.bf16 %v926_v43  ;;  %v894_v43 = vld [vmem:[%s5609_s14 + $0xdf8] sm:$0xff] }
 0x4b5   : > { %3268 = vmatpush2.bf16.msra.mxu0 %v1597_v0 }
 0x4b6   : > { %3309 = vmatpush2.bf16.msra.mxu1 %v1725_v1  ;;  %3269 = vmatprep.subr.bf16.mxu0 %v1590_v31 }
 0x4b7   : > { %3310 = vmatprep.subr.bf16.mxu1 %v1718_v4  ;;  %v1781_v4 = vunpack.c.l.s8.bf16 %v861_v26 }
 0x4b9   : > { %3270 = vmatpush2.bf16.msra.mxu0 %v1589_v5 }
 0x4ba   : > { %3311 = vmatpush2.bf16.msra.mxu1 %v1717_v49  ;;  %3271 = vmatprep.subr.bf16.mxu0 %v1582_v60  ;;  %v1774_v49 = vunpack.c.h.s8.bf16 %v854_v23  ;;  %v1902_v60 = vunpack.c.h.s8.bf16 %v918_v62 }
 0x4bb   : > { %3312 = vmatprep.subr.bf16.mxu1 %v1710_v8  ;;  %v853_v8 = vld [vmem:[%s5609_s14 + $0xcb0] sm:$0xff] }
 0x4bd   : > { %3272 = vmatpush2.bf16.msra.mxu0 %v1581_v9 }
 0x4be   : > { %3313 = vmatpush2.bf16.msra.mxu1 %v1709_v36  ;;  %3273 = vmatprep.subr.bf16.mxu0 %v1574_v46  ;;  %v1773_v36 = vunpack.c.h.s8.bf16 %v853_v8  ;;  %v1901_v46 = vunpack.c.h.s8.bf16 %v917_v12 }
 0x4bf   : > { %3314 = vmatprep.subr.bf16.mxu1 %v1702_v6 }
 0x4c1   : > { %3274 = vmatpush2.bf16.msra.mxu0 %v1573_v14  ;;  %v910_v14 = vld [vmem:[%s5609_s14 + $0xe78] sm:$0xff] }
 0x4c2   : > { %3315 = vmatpush2.bf16.msra.mxu1 %v1701_v3  ;;  %3275 = vmatprep.subr.bf16.mxu0 %v1566_v7  ;;  %v1765_v3 = vunpack.c.l.s8.bf16 %v853_v8  ;;  %v1893_v7 = vunpack.c.l.s8.bf16 %v917_v12  ;;  %v1886_v45 = vunpack.c.h.s8.bf16 %v910_v14  ;;  %v1878_v40 = vunpack.c.l.s8.bf16 %v910_v14 }
 0x4c3   : > { %3316 = vmatprep.subr.bf16.mxu1 %v1694_v53  ;;  %v1758_v53 = vunpack.c.h.s8.bf16 %v846_v58 }
 0x4c5   : > { %3276 = vmatpush2.bf16.msra.mxu0 %v1565_v55  ;;  %v909_v55 = vld [vmem:[%s5609_s14 + $0xe70] sm:$0xff] }
 0x4c6   : > { %3317 = vmatpush2.bf16.msra.mxu1 %v1693_v17  ;;  %3277 = vmatprep.subr.bf16.mxu0 %v1558_v37  ;;  %v1757_v17 = vunpack.c.h.s8.bf16 %v845_v15  ;;  %v1885_v37 = vunpack.c.h.s8.bf16 %v909_v55 }
 0x4c7   : > { %3318 = vmatprep.subr.bf16.mxu1 %v1686_v18  ;;  %v1750_v18 = vunpack.c.l.s8.bf16 %v846_v58 }
 0x4c9   : > { %3278 = vmatpush2.bf16.msra.mxu0 %v1557_v20  ;;  %v902_v20 = vld [vmem:[%s5609_s14 + $0xe38] sm:$0xff] }
 0x4ca   : > { %3319 = vmatpush2.bf16.msra.mxu1 %v1685_v51  ;;  %3279 = vmatprep.subr.bf16.mxu0 %v1550_v22  ;;  %v1749_v51 = vunpack.c.l.s8.bf16 %v845_v15  ;;  %v1877_v22 = vunpack.c.l.s8.bf16 %v909_v55  ;;  %v1870_v27 = vunpack.c.h.s8.bf16 %v902_v20  ;;  %v1862_v42 = vunpack.c.l.s8.bf16 %v902_v20 }
 0x4cb   : > { %3320 = vmatprep.subr.bf16.mxu1 %v1678_v25  ;;  %v1742_v25 = vunpack.c.h.s8.bf16 %v838_v19 }
 0x4cd   : > { %3280 = vmatpush2.bf16.msra.mxu0 %v1549_v32  ;;  %v901_v32 = vld [vmem:[%s5609_s14 + $0xe30] sm:$0xff] }
 0x4ce   : > { %3321 = vmatpush2.bf16.msra.mxu1 %v1677_v33  ;;  %3281 = vmatprep.subr.bf16.mxu0 %v1542_v35  ;;  %v1741_v33 = vunpack.c.h.s8.bf16 %v837_v21  ;;  %v1869_v35 = vunpack.c.h.s8.bf16 %v901_v32 }
 0x4cf   : > { %3322 = vmatprep.subr.bf16.mxu1 %v1670_v10  ;;  %v1734_v10 = vunpack.c.l.s8.bf16 %v838_v19 }
 0x4d1   : > { %3282 = vmatpush2.bf16.msra.mxu0 %v1541_v28  ;;  %v958_v28 = vld [vmem:[%s5609_s14 + $0xff8] sm:$0xff] }
 0x4d2   : > { %3323 = vmatpush2.bf16.msra.mxu1 %v1669_v47  ;;  %3333 = vmatprep.subr.bf16.mxu0 %v1790_v48  ;;  %v1733_v47 = vunpack.c.l.s8.bf16 %v837_v21  ;;  %v1861_v48 = vunpack.c.l.s8.bf16 %v901_v32  ;;  %v1982_v26 = vunpack.c.h.s8.bf16 %v958_v28 }
 0x4d3   : > { %3374 = vmatprep.subr.bf16.mxu1 %v1918_v50  ;;  %v1854_v50 = vunpack.c.h.s8.bf16 %v894_v43 }
 0x4d4   : > { %v3039_v0 = vpop.f32.mrf.mxu0  ;;  %3284 = vmatmul.mubr.bf16.vlgmr.msra.gmra.mxu0 %v5839_v34 }
 0x4d5   : > { %v3080_v1 = vpop.f32.mrf.mxu1  ;;  %3325 = vmatmul.mubr.bf16.vlgmr.msra.gmra.mxu1 %v5848_v41  ;;  %v3040_v31 = vadd.f32 %v3039_v0, %v6328_v24  ;;  %3334 = vmatpush1.bf16.msra.mxu0 %v1789_v57  ;;  %v957_v57 = vld [vmem:[%s5609_s14 + $0xff0] sm:$0xff]  ;;  %v950_v0 = vld [vmem:[%s5609_s14 + $0xfb8] sm:$0xff] }
 0x4d6   : > { %3375 = vmatpush1.bf16.msra.mxu1 %v1917_v61  ;;  %v3041_v2 = vpop.f32.mrf.mxu0  ;;  %3335 = vmatprep.subr.bf16.mxu0 %v1782_v13  ;;  %v1853_v61 = vunpack.c.h.s8.bf16 %v893_v54  ;;  %v1981_v13 = vunpack.c.h.s8.bf16 %v957_v57  ;;  %v1958_v12 = vunpack.c.l.s8.bf16 %v950_v0 }
 0x4d7   : > { %v3082_v5 = vpop.f32.mrf.mxu1  ;;  %3376 = vmatprep.subr.bf16.mxu1 %v1910_v16  ;;  %v6370_v63 = vadd.f32 %v3080_v1, %v3040_v31  ;;  %v3042_v34 = vadd.f32 %v3041_v2, %v6333_v29  ;;  %3365 = vmatprep.mubr.bf16.mxu0 %v5844_v44  ;;  %v1766_v29 = vunpack.c.l.s8.bf16 %v854_v23  ;;  %v1894_v44 = vunpack.c.l.s8.bf16 %v918_v62  ;;  %v886_v62 = vld [vmem:[%s5609_s14 + $0xdb8] sm:$0xff]  ;;  %v885_v2 = vld [vmem:[%s5609_s14 + $0xdb0] sm:$0xff] }
 0x4d8   : > { %3406 = vmatprep.mubr.bf16.mxu1 %v5854_v56  ;;  %v3043_v41 = vpop.f32.mrf.mxu0  ;;  %v1846_v16 = vunpack.c.l.s8.bf16 %v894_v43  ;;  %v1974_v23 = vunpack.c.l.s8.bf16 %v958_v28  ;;  %v1845_v1 = vunpack.c.l.s8.bf16 %v893_v54  ;;  %v1973_v31 = vunpack.c.l.s8.bf16 %v957_v57 }
 0x4d9   : > { %v3084_v24 = vpop.f32.mrf.mxu1  ;;  %v6375_v9 = vadd.f32 %v3082_v5, %v3042_v34  ;;  %3336 = vmatpush1.bf16.msra.mxu0 %v1781_v4  ;;  %v1838_v4 = vunpack.c.h.s8.bf16 %v886_v62  ;;  %v949_v5 = vld [vmem:[%s5609_s14 + $0xfb0] sm:$0xff]  ;;  %v1830_v8 = vunpack.c.l.s8.bf16 %v886_v62  ;;  %v878_v34 = vld [vmem:[%s5609_s14 + $0xd78] sm:$0xff] }
 0x4da   : > { %3377 = vmatpush1.bf16.msra.mxu1 %v1909_v59  ;;  %v3044_v6 = vpop.f32.mrf.mxu0  ;;  %3337 = vmatprep.subr.bf16.mxu0 %v1774_v49  ;;  %v1966_v59 = vunpack.c.h.s8.bf16 %v950_v0  ;;  %v1837_v49 = vunpack.c.h.s8.bf16 %v885_v2  ;;  %v942_v41 = vld [vmem:[%s5609_s14 + $0xf78] sm:$0xff]  ;;  %v1829_v24 = vunpack.c.l.s8.bf16 %v885_v2  ;;  %v1814_v14 = vunpack.c.l.s8.bf16 %v878_v34 }
 0x4db   : > { %v3085_v11 = vpop.f32.mrf.mxu1  ;;  %3378 = vmatprep.subr.bf16.mxu1 %v1902_v60  ;;  %v3440_v56 = vcombine.low %v6370_v63, %v6375_v9  ;;  %v1965_v60 = vunpack.c.h.s8.bf16 %v949_v5  ;;  %v1950_v6 = vunpack.c.h.s8.bf16 %v942_v41 }
 0x4dc   : > { %v877_v11 = vld [vmem:[%s5609_s14 + $0xd70] sm:$0xff] }
 0x4dd   : > { %3338 = vmatpush1.bf16.msra.mxu0 %v1773_v36  ;;  %v1957_v36 = vunpack.c.l.s8.bf16 %v949_v5 }
 0x4de   : > { %3379 = vmatpush1.bf16.msra.mxu1 %v1901_v46  ;;  %3339 = vmatprep.subr.bf16.mxu0 %v1766_v29  ;;  %v1822_v46 = vunpack.c.h.s8.bf16 %v878_v34  ;;  %v941_v29 = vld [vmem:[%s5609_s14 + $0xf70] sm:$0xff] }
 0x4df   : > { %3380 = vmatprep.subr.bf16.mxu1 %v1894_v44  ;;  %v1821_v44 = vunpack.c.h.s8.bf16 %v877_v11  ;;  %v1949_v58 = vunpack.c.h.s8.bf16 %v941_v29  ;;  %v1941_v15 = vunpack.c.l.s8.bf16 %v941_v29 }
 0x4e1   : > { %3340 = vmatpush1.bf16.msra.mxu0 %v1765_v3  ;;  %v1942_v3 = vunpack.c.l.s8.bf16 %v942_v41 }
 0x4e2   : > { %3381 = vmatpush1.bf16.msra.mxu1 %v1893_v7  ;;  %3341 = vmatprep.subr.bf16.mxu0 %v1758_v53  ;;  %v870_v7 = vld [vmem:[%s5609_s14 + $0xd38] sm:$0xff] }
 0x4e3   : > { %3382 = vmatprep.subr.bf16.mxu1 %v1886_v45  ;;  %v934_v53 = vld [vmem:[%s5609_s14 + $0xf38] sm:$0xff]  ;;  %v1813_v45 = vunpack.c.l.s8.bf16 %v877_v11  ;;  %v1806_v55 = vunpack.c.h.s8.bf16 %v870_v7  ;;  %v1798_v20 = vunpack.c.l.s8.bf16 %v870_v7 }
 0x4e5   : > { %3342 = vmatpush1.bf16.msra.mxu0 %v1757_v17  ;;  %v1934_v17 = vunpack.c.h.s8.bf16 %v934_v53 }
 0x4e6   : > { %3383 = vmatpush1.bf16.msra.mxu1 %v1885_v37  ;;  %3343 = vmatprep.subr.bf16.mxu0 %v1750_v18  ;;  %v869_v37 = vld [vmem:[%s5609_s14 + $0xd30] sm:$0xff] }
 0x4e7   : > { %3384 = vmatprep.subr.bf16.mxu1 %v1878_v40  ;;  %v933_v18 = vld [vmem:[%s5609_s14 + $0xf30] sm:$0xff]  ;;  %v1805_v40 = vunpack.c.h.s8.bf16 %v869_v37  ;;  %s6406_s14 = sld [smem:[#allocation6 + %s5302_s28]] }
 0x4e8   : > { %v1933_v19 = vunpack.c.h.s8.bf16 %v933_v18 }
 0x4e9   : > { %3344 = vmatpush1.bf16.msra.mxu0 %v1749_v51  ;;  %v1926_v51 = vunpack.c.l.s8.bf16 %v934_v53 }
 0x4ea   : > { %3385 = vmatpush1.bf16.msra.mxu1 %v1877_v22  ;;  %3345 = vmatprep.subr.bf16.mxu0 %v1742_v25  ;;  %v1797_v22 = vunpack.c.l.s8.bf16 %v869_v37  ;;  %v1925_v25 = vunpack.c.l.s8.bf16 %v933_v18 }
 0x4eb   : > { %3386 = vmatprep.subr.bf16.mxu1 %v1870_v27 }
 0x4ed   : > { %3346 = vmatpush1.bf16.msra.mxu0 %v1741_v33  ;;  %p4491_p13 = scmp.ne.s32.totalorder %s6406_s14, 1 }
 0x4ee   : > { %3387 = vmatpush1.bf16.msra.mxu1 %v1869_v35  ;;  %3347 = vmatprep.subr.bf16.mxu0 %v1734_v10 }
 0x4ef   : > { %3388 = vmatprep.subr.bf16.mxu1 %v1862_v42 }
 0x4f1   : > { %3348 = vmatpush1.bf16.msra.mxu0 %v1733_v47 }
 0x4f2   : > { %3389 = vmatpush1.bf16.msra.mxu1 %v1861_v48  ;;  %3349 = vmatprep.subr.bf16.mxu0 %v1854_v50 }
 0x4f3   : > { %3390 = vmatprep.subr.bf16.mxu1 %v1982_v26 }
 0x4f5   : > { %3350 = vmatpush2.bf16.msra.mxu0 %v1853_v61 }
 0x4f6   : > { %3391 = vmatpush2.bf16.msra.mxu1 %v1981_v13  ;;  %3351 = vmatprep.subr.bf16.mxu0 %v1846_v16 }
 0x4f7   : > { %3392 = vmatprep.subr.bf16.mxu1 %v1974_v23 }
 0x4f9   : > { %3352 = vmatpush2.bf16.msra.mxu0 %v1845_v1 }
 0x4fa   : > { %3393 = vmatpush2.bf16.msra.mxu1 %v1973_v31  ;;  %3353 = vmatprep.subr.bf16.mxu0 %v1838_v4 }
 0x4fb   : > { %3394 = vmatprep.subr.bf16.mxu1 %v1966_v59 }
 0x4fd   : > { %3354 = vmatpush2.bf16.msra.mxu0 %v1837_v49 }
 0x4fe   : > { %3395 = vmatpush2.bf16.msra.mxu1 %v1965_v60  ;;  %3355 = vmatprep.subr.bf16.mxu0 %v1830_v8 }
 0x4ff   : > { %3396 = vmatprep.subr.bf16.mxu1 %v1958_v12 }
 0x501   : > { %3356 = vmatpush2.bf16.msra.mxu0 %v1829_v24 }
 0x502   : > { %3397 = vmatpush2.bf16.msra.mxu1 %v1957_v36  ;;  %3357 = vmatprep.subr.bf16.mxu0 %v1822_v46 }
 0x503   : > { %3398 = vmatprep.subr.bf16.mxu1 %v1950_v6 }
 0x505   : > { %3358 = vmatpush2.bf16.msra.mxu0 %v1821_v44 }
 0x506   : > { %3399 = vmatpush2.bf16.msra.mxu1 %v1949_v58  ;;  %3359 = vmatprep.subr.bf16.mxu0 %v1814_v14 }
 0x507   : > { %3400 = vmatprep.subr.bf16.mxu1 %v1942_v3 }
 0x509   : > { %3360 = vmatpush2.bf16.msra.mxu0 %v1813_v45  ;;  %v3448_v45 = vrot.slane %v3440_v56, %v6204_v30 }
 0x50a   : > { %3401 = vmatpush2.bf16.msra.mxu1 %v1941_v15  ;;  %3361 = vmatprep.subr.bf16.mxu0 %v1806_v55  ;;  %v1984_v55 = vld [vmem:[#allocation2 + $0x8] sm:$0xff] }
 0x50b   : > { %3402 = vmatprep.subr.bf16.mxu1 %v1934_v17 }
 0x50d   : > { %3362 = vmatpush2.bf16.msra.mxu0 %v1805_v40 }
 0x50e   : > { %3403 = vmatpush2.bf16.msra.mxu1 %v1933_v19  ;;  %3363 = vmatprep.subr.bf16.mxu0 %v1798_v20 }
 0x50f   : > { %3404 = vmatprep.subr.bf16.mxu1 %v1926_v51 }
 0x511   : > { %3364 = vmatpush2.bf16.msra.mxu0 %v1797_v22 }
 0x512   : > { %3405 = vmatpush2.bf16.msra.mxu1 %v1925_v25 }
 0x514   : > { %v3121_v27 = vpop.f32.mrf.mxu0  ;;  %3366 = vmatmul.mubr.bf16.vlgmr.msra.gmra.mxu0 %v5890_v38 }
 0x515   : > { %v3162_v21 = vpop.f32.mrf.mxu1  ;;  %3407 = vmatmul.mubr.bf16.vlgmr.msra.gmra.mxu1 %v5896_v52 }
 0x516   : > { %v3163_v32 = vadd.f32 %v3162_v21, %v3121_v27  ;;  %v3123_v33 = vpop.f32.mrf.mxu0 }
 0x517   : > { %v3164_v35 = vpop.f32.mrf.mxu1 }
 0x518   : > { %v3165_v10 = vadd.f32 %v3164_v35, %v3123_v33  ;;  %v3125_v42 = vpop.f32.mrf.mxu0 }
 0x519   : > { %v3166_v43 = vpop.f32.mrf.mxu1 }
 0x51a   : > { %v3126_v28 = vpop.f32.mrf.mxu0 }
 0x51b   : > { %v3167_v47 = vpop.f32.mrf.mxu1 }
 0x554   : > { %v3203_v48 = vpop.f32.mrf.mxu0 }
 0x555   : > { %v3244_v50 = vpop.f32.mrf.mxu1  ;;  %v3204_v26 = vadd.f32 %v3203_v48, %v3163_v32 }
 0x556   : > { %v3205_v54 = vpop.f32.mrf.mxu0 }
 0x557   : > { %v3246_v57 = vpop.f32.mrf.mxu1  ;;  %v3245_v61 = vadd.f32 %v3244_v50, %v3204_v26  ;;  %v3206_v13 = vadd.f32 %v3205_v54, %v3165_v10 }
 0x558   : > { %v3207_v16 = vpop.f32.mrf.mxu0 }
 0x559   : > { %v3248_v38 = vpop.f32.mrf.mxu1  ;;  %v3247_v23 = vadd.f32 %v3246_v57, %v3206_v13 }
 0x55a   : > { %v3208_v52 = vpop.f32.mrf.mxu0 }
 0x55b   : > { %v3249_v62 = vpop.f32.mrf.mxu1 }
 0x594   : > { %v3285_v0 = vpop.f32.mrf.mxu0 }
 0x595   : > { %v3326_v1 = vpop.f32.mrf.mxu1  ;;  %v3286_v31 = vadd.f32 %v3285_v0, %v3245_v61 }
 0x596   : > { %v3287_v4 = vpop.f32.mrf.mxu0 }
 0x597   : > { %v3328_v59 = vpop.f32.mrf.mxu1  ;;  %v3327_v2 = vadd.f32 %v3326_v1, %v3286_v31  ;;  %v3288_v12 = vadd.f32 %v3287_v4, %v3247_v23 }
 0x598   : > { %v3289_v5 = vpop.f32.mrf.mxu0 }
 0x599   : > { %v3330_v49 = vpop.f32.mrf.mxu1  ;;  %v3329_v24 = vadd.f32 %v3328_v59, %v3288_v12 }
 0x59a   : > { %v3290_v60 = vpop.f32.mrf.mxu0 }
 0x59b   : > { %v3331_v8 = vpop.f32.mrf.mxu1 }
 0x5d4   : > { %v3367_v34 = vpop.f32.mrf.mxu0 }
 0x5d5   : > { %v3408_v41 = vpop.f32.mrf.mxu1  ;;  %v3368_v36 = vadd.f32 %v3367_v34, %v3327_v2 }
 0x5d6   : > { %v3369_v46 = vpop.f32.mrf.mxu0 }
 0x5d7   : > { %v3410_v6 = vpop.f32.mrf.mxu1  ;;  %v3370_v11 = vadd.f32 %v3369_v46, %v3329_v24  ;;  %v3409_v58 = vadd.f32 %v3408_v41, %v3368_v36 }
 0x5d8   : > { %v3371_v29 = vpop.f32.mrf.mxu0 }
 0x5d9   : > { %v3412_v44 = vpop.f32.mrf.mxu1  ;;  %v3411_v14 = vadd.f32 %v3410_v6, %v3370_v11 }
 0x5da   : > { %v3372_v3 = vpop.f32.mrf.mxu0 }
 0x5db   : > { %v3413_v7 = vpop.f32.mrf.mxu1  ;;  %v3441_v53 = vcombine.low %v3409_v58, %v3411_v14 }
 0x5dd   : > { %v3455_v15 = vrot.slane %v3441_v53, %v6204_v30 }
 0x5df   : > { %v3456_v17 = vcombine.low %v3448_v45, %v3455_v15  ;;  %3467 = sbr.rel (%p4491_p13) target bundleno = 1778 (0x6f2), region = 76 }
 0x5e1   : > { %v3460_v37 = vadd.f32 %v3456_v17, %v1984_v55 }
 0x5e3   : > { %3462 = vst [vmem:[#allocation2 + $0x8] sm:$0xff] %v3460_v37 }
 0x5e4   : > { %v4811_v63 = vld [vmem:[%s5633_s24 + $0x78] sm:$0xff]   ;;  %v4815_v40 = vld [vmem:[%s5633_s24 + $0x70] sm:$0xff]   ;;  %v4819_v22 = vld [vmem:[%s5633_s24 + $0x68] sm:$0xff]   ;;  %v3474_v16 = vsub.s32 0, %v5667_v39  ;;  %v3478_v23 = vsub.s32 1, %v5667_v39  ;;  %v3482_v62 = vsub.s32 2, %v5667_v39 }
 0x5e5   : > { %v4812_v9 = vld [vmem:[%s5633_s24 + $0xf8] sm:$0xff]   ;;  %4563 = vmatprep.subr.bf16.mxu0 %v4811_v63  ;;  %v4816_v19 = vld [vmem:[%s5633_s24 + $0xf0] sm:$0xff]   ;;  %v4820_v25 = vld [vmem:[%s5633_s24 + $0xe8] sm:$0xff]   ;;  %v3486_v1 = vsub.s32 3, %v5667_v39 }
 0x5e6   : > { %v4813_v56 = vld [vmem:[%s5633_s24 + $0x38] sm:$0xff]   ;;  %4585 = vmatprep.subr.bf16.mxu1 %v4812_v9  ;;  %v4817_v20 = vld [vmem:[%s5633_s24 + $0x30] sm:$0xff]   ;;  %v4821_v27 = vld [vmem:[%s5633_s24 + $0x28] sm:$0xff]   ;;  %v3490_v9 = vsub.s32 4, %v5667_v39 }
 0x5e7   : > { %v4814_v18 = vld [vmem:[%s5633_s24 + $0xb8] sm:$0xff]   ;;  %4564 = vmatpush3.bf16.msra.mxu0 %v4813_v56  ;;  %v4818_v51 = vld [vmem:[%s5633_s24 + $0xb0] sm:$0xff]   ;;  %v4822_v21 = vld [vmem:[%s5633_s24 + $0xa8] sm:$0xff]   ;;  %v3494_v56 = vsub.s32 5, %v5667_v39 }
 0x5e8   : > { %4586 = vmatpush3.bf16.msra.mxu1 %v4814_v18  ;;  %4565 = vmatprep.subr.bf16.mxu0 %v4815_v40  ;;  %v4823_v32 = vld [vmem:[%s5633_s24 + $0x60] sm:$0xff]   ;;  %v4827_v42 = vld [vmem:[%s5633_s24 + $0x58] sm:$0xff]   ;;  %v4831_v48 = vld [vmem:[%s5633_s24 + $0x50] sm:$0xff]   ;;  %v3498_v18 = vsub.s32 6, %v5667_v39  ;;  %v3502_v40 = vsub.s32 7, %v5667_v39 }
 0x5e9   : > { %4587 = vmatprep.subr.bf16.mxu1 %v4816_v19  ;;  %v4824_v33 = vld [vmem:[%s5633_s24 + $0xe0] sm:$0xff]   ;;  %v4828_v43 = vld [vmem:[%s5633_s24 + $0xd8] sm:$0xff]   ;;  %v4832_v50 = vld [vmem:[%s5633_s24 + $0xd0] sm:$0xff]  }
 0x5ea   : > { %v4825_v35 = vld [vmem:[%s5633_s24 + $0x20] sm:$0xff]   ;;  %v4829_v28 = vld [vmem:[%s5633_s24 + $0x18] sm:$0xff]   ;;  %v4833_v26 = vld [vmem:[%s5633_s24 + $0x10] sm:$0xff]  }
 0x5eb   : > { %4566 = vmatpush3.bf16.msra.mxu0 %v4817_v20  ;;  %v4826_v10 = vld [vmem:[%s5633_s24 + $0xa0] sm:$0xff]   ;;  %v4830_v47 = vld [vmem:[%s5633_s24 + $0x98] sm:$0xff]   ;;  %v4834_v54 = vld [vmem:[%s5633_s24 + $0x90] sm:$0xff]  }
 0x5ec   : > { %4588 = vmatpush3.bf16.msra.mxu1 %v4818_v51  ;;  %4567 = vmatprep.subr.bf16.mxu0 %v4819_v22  ;;  %v4835_v57 = vld [vmem:[%s5633_s24 + $0x48] sm:$0xff]   ;;  %v4839_v52 = vld [vmem:[%s5633_s24 + $0x40] sm:$0xff]   ;;  %v3470_v59 = vld [vmem:[%s361_s29] sm:$0xff] }
 0x5ed   : > { %4589 = vmatprep.subr.bf16.mxu1 %v4820_v25  ;;  %v4836_v61 = vld [vmem:[%s5633_s24 + $0xc8] sm:$0xff]   ;;  %v4840_v0 = vld [vmem:[%s5633_s24 + $0xc0] sm:$0xff]   ;;  %v3475_v5 = vrot.slane %v3470_v59, %v3474_v16  ;;  %v3479_v49 = vrot.slane %v3470_v59, %v3478_v23  ;;  %v3483_v60 = vrot.slane %v3470_v59, %v3482_v62  ;;  %v3487_v8 = vrot.slane %v3470_v59, %v3486_v1  ;;  %v4843_v12 = vld [vmem:[%s5633_s24 + $0x178] sm:$0xff]  }
 0x5ee   : > { %v4837_v13 = vld [vmem:[%s5633_s24 + $0x8] sm:$0xff]   ;;  %v4841_v31 = vld [vmem:[%s5633_s24] sm:$0xff]   ;;  %v4844_v46 = vld [vmem:[%s5633_s24 + $0x1f8] sm:$0xff]  }
 0x5ef   : > { %4568 = vmatpush3.bf16.msra.mxu0 %v4821_v27  ;;  %v4838_v38 = vld [vmem:[%s5633_s24 + $0x88] sm:$0xff]   ;;  %v4842_v4 = vld [vmem:[%s5633_s24 + $0x80] sm:$0xff]   ;;  %v3504_v6 = vcombine.low %v3475_v5, %v3479_v49  ;;  %v3505_v11 = vcombine.low %v3483_v60, %v3487_v8  ;;  %v3468_v3 = vld [vmem:[#allocation2] sm:$0xff] }
 0x5f0   : > { %4590 = vmatpush3.bf16.msra.mxu1 %v4822_v21  ;;  %4569 = vmatprep.subr.bf16.mxu0 %v4823_v32  ;;  %v3542_v2 = vld [vmem:[%s352_s9] sm:$0xff]  ;;  %v4845_v27 = vld [vmem:[%s5633_s24 + $0x138] sm:$0xff]   ;;  %v3491_v21 = vrot.slane %v3470_v59, %v3490_v9  ;;  %v4848_v39 = vld [vmem:[%s5633_s24 + $0x1f0] sm:$0xff]   ;;  %s6644_s9 = sld [smem:[#allocation38_spill]] }
 0x5f1   : > { %4591 = vmatprep.subr.bf16.mxu1 %v4824_v33  ;;  %v3547_v34 = vrot.slane %v3542_v2, %v3474_v16  ;;  %v3551_v41 = vrot.slane %v3542_v2, %v3478_v23  ;;  %v3555_v24 = vrot.slane %v3542_v2, %v3482_v62  ;;  %v3559_v36 = vrot.slane %v3542_v2, %v3486_v1  ;;  %v4847_v33 = vld [vmem:[%s5633_s24 + $0x170] sm:$0xff]   ;;  %v4853_v62 = vld [vmem:[%s5633_s24 + $0x128] sm:$0xff]   ;;  %v4857_v49 = vld [vmem:[%s5633_s24 + $0x120] sm:$0xff]  }
 0x5f2   : > { %v3512_v58 = vrot.slane %v3504_v6, %v6204_v30  ;;  %v3519_v14 = vrot.slane %v3505_v11, %v6204_v30  ;;  %v4850_v16 = vld [vmem:[%s5633_s24 + $0x1b0] sm:$0xff]   ;;  %v4859_v60 = vld [vmem:[%s5633_s24 + $0x158] sm:$0xff]  }
 0x5f3   : > { %4570 = vmatpush3.bf16.msra.mxu0 %v4825_v35  ;;  %v3576_v29 = vcombine.low %v3547_v34, %v3551_v41  ;;  %v3577_v44 = vcombine.low %v3555_v24, %v3559_v36  ;;  %v3495_v35 = vrot.slane %v3470_v59, %v3494_v56  ;;  %v4860_v34 = vld [vmem:[%s5633_s24 + $0x1d8] sm:$0xff]  }
 0x5f4   : > { %4592 = vmatpush3.bf16.msra.mxu1 %v4826_v10  ;;  %4571 = vmatprep.subr.bf16.mxu0 %v4827_v42  ;;  %v3520_v45 = vcombine.low %v3512_v58, %v3519_v14  ;;  %v3499_v10 = vrot.slane %v3470_v59, %v3498_v18  ;;  %v3503_v42 = vrot.slane %v3470_v59, %v3502_v40  ;;  %v4856_v59 = vld [vmem:[%s5633_s24 + $0x1e0] sm:$0xff]   ;;  %v4861_v24 = vld [vmem:[%s5633_s24 + $0x118] sm:$0xff]   ;;  %v4865_v58 = vld [vmem:[%s5633_s24 + $0x110] sm:$0xff]  }
 0x5f5   : > { %4593 = vmatprep.subr.bf16.mxu1 %v4828_v43  ;;  %v3584_v7 = vrot.slane %v3576_v29, %v6204_v30  ;;  %v3591_v53 = vrot.slane %v3577_v44, %v6204_v30  ;;  %v3469_v36 = vld [vmem:[#allocation2 + $0x8] sm:$0xff]  ;;  %v4864_v29 = vld [vmem:[%s5633_s24 + $0x1d0] sm:$0xff]   ;;  %v4867_v14 = vld [vmem:[%s5633_s24 + $0x148] sm:$0xff]  }
 0x5f6   : > { %v3540_v55 = vmul.f32 %v3520_v45, %v3468_v3  ;;  %v4862_v11 = vld [vmem:[%s5633_s24 + $0x198] sm:$0xff]   ;;  %v4868_v45 = vld [vmem:[%s5633_s24 + $0x1c8] sm:$0xff]  }
 0x5f7   : > { %4572 = vmatpush3.bf16.msra.mxu0 %v4829_v28  ;;  %v3592_v15 = vcombine.low %v3584_v7, %v3591_v53  ;;  %v4846_v28 = vld [vmem:[%s5633_s24 + $0x1b8] sm:$0xff]   ;;  %v4866_v53 = vld [vmem:[%s5633_s24 + $0x190] sm:$0xff]  }
 0x5f8   : > { %4594 = vmatpush3.bf16.msra.mxu1 %v4830_v47  ;;  %4573 = vmatprep.subr.bf16.mxu0 %v4831_v48  ;;  %v3563_v47 = vrot.slane %v3542_v2, %v3490_v9  ;;  %v3567_v48 = vrot.slane %v3542_v2, %v3494_v56  ;;  %v4870_v56 = vld [vmem:[%s5633_s24 + $0x188] sm:$0xff]  }
 0x5f9   : > { %4595 = vmatprep.subr.bf16.mxu1 %v4832_v50  ;;  %v3612_v17 = vadd.f32 %v3592_v15, %v3540_v55  ;;  %v3571_v50 = vrot.slane %v3542_v2, %v3498_v18  ;;  %v4872_v18 = vld [vmem:[%s5633_s24 + $0x1c0] sm:$0xff]  }
 0x5fa   : > { %v3593_v23 = vcombine.low %v3563_v47, %v3567_v48 }
 0x5fb   : > { %4574 = vmatpush3.bf16.msra.mxu0 %v4833_v26  ;;  %v3623_v37 = vrot.slane %v3612_v17, %v6204_v30  ;;  %v3616_v63 = vcombine.high %v3612_v17, %v3612_v17  ;;  %v3575_v26 = vrot.slane %v3542_v2, %v3502_v40  ;;  %v4869_v17 = vld [vmem:[%s5633_s24 + $0x108] sm:$0xff]  }
 0x5fc   : > { %4596 = vmatpush3.bf16.msra.mxu1 %v4834_v54  ;;  %4575 = vmatprep.subr.bf16.mxu0 %v4835_v57  ;;  %v4849_v54 = vld [vmem:[%s5633_s24 + $0x130] sm:$0xff]   ;;  %v4851_v57 = vld [vmem:[%s5633_s24 + $0x168] sm:$0xff]   ;;  %v3601_v2 = vrot.slane %v3593_v23, %v6204_v30 }
 0x5fd   : > { %4597 = vmatprep.subr.bf16.mxu1 %v4836_v61  ;;  %v3631_v19 = vcombine.high %v3623_v37, %v3623_v37  ;;  %v3630_v20 = vrot.slane %v3616_v63, %v6204_v30  ;;  %v3658_v51 = vpack.c.bf16 %v3623_v37, %v3623_v37  ;;  %v3521_v61 = vcombine.low %v3491_v21, %v3495_v35  ;;  %v4871_v37 = vld [vmem:[%s5633_s24 + $0x140] sm:$0xff]  }
 0x5ff   : > { %4576 = vmatpush3.bf16.msra.mxu0 %v4837_v13  ;;  %v3659_v22 = vpack.c.bf16 %v3631_v19, %v3631_v19  ;;  %v3632_v25 = vcombine.high %v3630_v20, %v3630_v20  ;;  %v3660_v32 = vpack.c.bf16 %v3630_v20, %v3630_v20  ;;  %v3522_v13 = vcombine.low %v3499_v10, %v3503_v42  ;;  %v4873_v19 = vld [vmem:[%s5633_s24 + $0x100] sm:$0xff]  }
 0x600   : > { %4598 = vmatpush3.bf16.msra.mxu1 %v4838_v38  ;;  %4577 = vmatprep.subr.bf16.mxu0 %v4839_v52  ;;  %v4852_v38 = vld [vmem:[%s5633_s24 + $0x1e8] sm:$0xff]   ;;  %v3594_v52 = vcombine.low %v3571_v50, %v3575_v26  ;;  %v3529_v1 = vrot.slane %v3521_v61, %v6204_v30  ;;  %v4874_v20 = vld [vmem:[%s5633_s24 + $0x180] sm:$0xff]  }
 0x601   : > { %4599 = vmatprep.subr.bf16.mxu1 %v4840_v0  ;;  %4211 = vmatprep.mubr.bf16.mxu0 %v3659_v22  ;;  %v3661_v43 = vpack.c.bf16 %v3632_v25, %v3632_v25  ;;  %v4855_v0 = vld [vmem:[%s5633_s24 + $0x160] sm:$0xff]  }
 0x602   : > { %v3608_v5 = vrot.slane %v3594_v52, %v6204_v30 }
 0x603   : > { %4578 = vmatpush3.bf16.msra.mxu0 %v4841_v31  ;;  %4251 = vmatprep.mubr.bf16.mxu1 %v3661_v43  ;;  %v3536_v31 = vrot.slane %v3522_v13, %v6204_v30  ;;  %v3666_v13 = vld [vmem:[%s6644_s9] sm:$0x3] }
 0x604   : > { %4600 = vmatpush3.bf16.msra.mxu1 %v4842_v4  ;;  %4607 = vmatprep.subr.bf16.mxu0 %v4843_v12  ;;  %v4854_v4 = vld [vmem:[%s5633_s24 + $0x1a8] sm:$0xff]   ;;  %v4858_v12 = vld [vmem:[%s5633_s24 + $0x1a0] sm:$0xff]   ;;  %v3609_v41 = vcombine.low %v3601_v2, %v3608_v5 }
 0x605   : > { %4629 = vmatprep.subr.bf16.mxu1 %v4844_v46  ;;  %v3537_v8 = vcombine.low %v3529_v1, %v3536_v31  ;;  %v4863_v46 = vld [vmem:[%s5633_s24 + $0x150] sm:$0xff]  }
 0x606   : > { %4212 = vmatmul.mubr.bf16.vlgmr.msra.gmra.mxu0 %v3658_v51 }
 0x607   : > { %4608 = vmatpush3.bf16.msra.mxu0 %v4845_v27  ;;  %4252 = vmatmul.mubr.bf16.vlgmr.msra.gmra.mxu1 %v3660_v32  ;;  %v3541_v6 = vmul.f32 %v3537_v8, %v3469_v36 }
 0x608   : > { %4609 = vmatprep.subr.bf16.mxu0 %v4847_v33  ;;  %4630 = vmatpush3.bf16.msra.mxu1 %v4846_v28 }
 0x609   : > { %4631 = vmatprep.subr.bf16.mxu1 %v4848_v39  ;;  %v3613_v44 = vadd.f32 %v3609_v41, %v3541_v6 }
 0x60b   : > { %4610 = vmatpush3.bf16.msra.mxu0 %v4849_v54  ;;  %v3640_v3 = vrot.slane %v3613_v44, %v6204_v30  ;;  %v3633_v7 = vcombine.high %v3613_v44, %v3613_v44 }
 0x60c   : > { %4611 = vmatprep.subr.bf16.mxu0 %v4851_v57  ;;  %4632 = vmatpush3.bf16.msra.mxu1 %v4850_v16 }
 0x60d   : > { %4633 = vmatprep.subr.bf16.mxu1 %v4852_v38  ;;  %v3648_v15 = vcombine.high %v3640_v3, %v3640_v3  ;;  %v3647_v55 = vrot.slane %v3633_v7, %v6204_v30  ;;  %v3662_v30 = vpack.c.bf16 %v3640_v3, %v3640_v3 }
 0x60f   : > { %4612 = vmatpush3.bf16.msra.mxu0 %v4853_v62  ;;  %v3663_v63 = vpack.c.bf16 %v3648_v15, %v3648_v15  ;;  %v3649_v9 = vcombine.high %v3647_v55, %v3647_v55  ;;  %v3664_v51 = vpack.c.bf16 %v3647_v55, %v3647_v55 }
 0x610   : > { %4613 = vmatprep.subr.bf16.mxu0 %v4855_v0  ;;  %4634 = vmatpush3.bf16.msra.mxu1 %v4854_v4 }
 0x611   : > { %4635 = vmatprep.subr.bf16.mxu1 %v4856_v59  ;;  %4291 = vmatprep.mubr.bf16.mxu0 %v3663_v63  ;;  %v3665_v40 = vpack.c.bf16 %v3649_v9, %v3649_v9 }
 0x613   : > { %4614 = vmatpush3.bf16.msra.mxu0 %v4857_v49  ;;  %4331 = vmatprep.mubr.bf16.mxu1 %v3665_v40 }
 0x614   : > { %4615 = vmatprep.subr.bf16.mxu0 %v4859_v60  ;;  %4636 = vmatpush3.bf16.msra.mxu1 %v4858_v12 }
 0x615   : > { %4637 = vmatprep.subr.bf16.mxu1 %v4860_v34 }
 0x617   : > { %4616 = vmatpush3.bf16.msra.mxu0 %v4861_v24 }
 0x618   : > { %4617 = vmatprep.subr.bf16.mxu0 %v4863_v46  ;;  %4638 = vmatpush3.bf16.msra.mxu1 %v4862_v11 }
 0x619   : > { %4639 = vmatprep.subr.bf16.mxu1 %v4864_v29 }
 0x61b   : > { %4618 = vmatpush3.bf16.msra.mxu0 %v4865_v58 }
 0x61c   : > { %4619 = vmatprep.subr.bf16.mxu0 %v4867_v14  ;;  %4640 = vmatpush3.bf16.msra.mxu1 %v4866_v53 }
 0x61d   : > { %4641 = vmatprep.subr.bf16.mxu1 %v4868_v45 }
 0x61f   : > { %4620 = vmatpush3.bf16.msra.mxu0 %v4869_v17 }
 0x620   : > { %4621 = vmatprep.subr.bf16.mxu0 %v4871_v37  ;;  %4642 = vmatpush3.bf16.msra.mxu1 %v4870_v56 }
 0x621   : > { %4643 = vmatprep.subr.bf16.mxu1 %v4872_v18 }
 0x623   : > { %4622 = vmatpush3.bf16.msra.mxu0 %v4873_v19 }
 0x624   : > { %4644 = vmatpush3.bf16.msra.mxu1 %v4874_v20 }
 0x626   : > { %4292 = vmatmul.mubr.bf16.vlgmr.msra.gmra.mxu0 %v3662_v30 }
 0x627   : > { %4332 = vmatmul.mubr.bf16.vlgmr.msra.gmra.mxu1 %v3664_v51 }
 0x6c6   : > { %v4579_v22 = vpop.f32.mrf.mxu0 }
 0x6c7   : > { %v4601_v25 = vpop.f32.mrf.mxu1 }
 0x6c8   : > { %v4580_v27 = vpop.f32.mrf.mxu0 }
 0x6c9   : > { %v4602_v21 = vpop.f32.mrf.mxu1  ;;  %v4581_v42 = vadd.f32 %v4580_v27, %v4579_v22 }
 0x6ca   : > { %v4582_v32 = vpop.f32.mrf.mxu0  ;;  %v4603_v43 = vadd.f32 %v4602_v21, %v4601_v25 }
 0x6cb   : > { %v4604_v33 = vpop.f32.mrf.mxu1 }
 0x6cc   : > { %v4583_v35 = vpop.f32.mrf.mxu0  ;;  %v4254_v48 = vadd.f32 %v4603_v43, %v4581_v42 }
 0x6cd   : > { %v4605_v10 = vpop.f32.mrf.mxu1 }
 0x6e6   : > { %v4623_v28 = vpop.f32.mrf.mxu0 }
 0x6e7   : > { %v4645_v39 = vpop.f32.mrf.mxu1 }
 0x6e8   : > { %v4624_v47 = vpop.f32.mrf.mxu0 }
 0x6e9   : > { %v4625_v50 = vadd.f32 %v4624_v47, %v4623_v28  ;;  %v4646_v26 = vpop.f32.mrf.mxu1 }
 0x6ea   : > { %v4626_v54 = vpop.f32.mrf.mxu0  ;;  %v4647_v61 = vadd.f32 %v4646_v26, %v4645_v39 }
 0x6eb   : > { %v4294_v57 = vadd.f32 %v4625_v50, %v4254_v48  ;;  %v4648_v16 = vpop.f32.mrf.mxu1 }
 0x6ec   : > { %v4627_v38 = vpop.f32.mrf.mxu0 }
 0x6ed   : > { %v4334_v23 = vadd.f32 %v4647_v61, %v4294_v57  ;;  %v4649_v52 = vpop.f32.mrf.mxu1 }
 0x6ef   : > { %v4339_v62 = vadd.f32 %v4334_v23, %v3666_v13 }
 0x6f1   : > { %4340 = vst [vmem:[%s6644_s9] sm:$0x3] %v4339_v62 }
 0x6f2 PF: > { %s6645_s29 = sld [smem:[#allocation27_spill]]  ;;  %p33_p4 = scmp.ge.s32.totalorder %s5321_s12, 8  }
 0x6f3   : > { %s6646_s22 = sld [smem:[#allocation28_spill]]  ;;  %s6648_s0 = smov %s5117_s18 }
 0x6f4   : > { %s6647_s23 = sld [smem:[#allocation31_spill]]  ;;  %s6649_s18 = smov %s5121_s19 }
 0x6f5   : > { %s6650_s19 = smov %s5557_s15  ;;  %s6651_s1 = smov %s5129_s20 }
 0x6f6   : > { %s6652_s20 = smov %s5133_s2  ;;  %s6653_s2 = smov %s5497_s21 }
 0x6f7   : > { %s6655_s24 = smov %s5153_s25  ;;  %s6656_s25 = smov %s5157_s26 }
 0x6f8   : > { %s6654_s21 = smov %s6645_s29  ;;  %s6657_s26 = smov %s5416_s11 }
 0x6f9   : > { %s6658_s27 = smov %s5321_s12  ;;  %35 = sbr.rel (!%p33_p4) target bundleno = 26 (0x1a), region = 136 }
 0x6fe   :  { %4352 = vsyncpa [#allocation8], 1 }
 0x6ff   :  { %4354 = vsyncpa [#allocation8 + $0x1], 1 }
 0x700   :  { %4355 = vsyncpa [#allocation10], 1 }
 0x701   :  { %4357 = vsyncpa [#allocation10 + $0x1], 1 }
 0x702   :  { %4358 = vsyncpa [#allocation13], 1 }
 0x703   :  { %4360 = vsyncpa [#allocation13 + $0x1], 1 }

</bundles_post_ra>
